<compile_context>
chip_gen: v5e
topology: v5e:2x2
jax: 0.10.0
libtpu: 0.0.40
codegen_flags: <defaults>
</compile_context>

<pallas_src>
import jax
import jax.numpy as jnp
from jax import lax
from jax.experimental import pallas as pl
from jax.experimental.pallas import tpu as pltpu

EMBED = 32          # embedding_dim (module default is 300; small for the demo)
NUM_CLASSES = 5
C_CONV = 256
GROUPS = 32
HIDDEN = 512
EPS = 1e-5
BRANCHES = ((3, 1), (4, 2), (5, 2))   # (kernel_size, padding) for conv1/2/3
PADMAX = max(p for _, p in BRANCHES)  # shared padded buffer uses max padding
NC_PAD = 128                          # lane-dense padded class dimension


def _group_onehot(num_channels, num_groups):
    """One-hot (C, G) map: channel c belongs to group c // (C // G)."""
    cs = num_channels // num_groups
    ch = lax.broadcasted_iota(jnp.int32, (num_channels, num_groups), 0)
    gr = lax.broadcasted_iota(jnp.int32, (num_channels, num_groups), 1)
    return ((ch // cs) == gr).astype(jnp.float32)


# ----------------------------------------------------------------------------
# Fused kernel: 3x (conv1d -> relu -> GN -> max) -> concat -> fc1 -> GN ->
#               relu -> (dropout = identity at inference) -> fc2
# ----------------------------------------------------------------------------
def textcnn_kernel(x_ref, wc1_ref, wc2_ref, wc3_ref,
                   cb_ref, cg_ref, cbt_ref,
                   g256_ref, g256t_ref, g512_ref, g512t_ref,
                   w1_ref, b1_ref, gfc_ref, bfc_ref, w2_ref, b2_ref,
                   out_ref, xpad_ref):
    bt, L, E = x_ref.shape

    # Zero-pad the sequence once in VMEM; all three branches slice from it.
    xpad_ref[...] = jnp.zeros(xpad_ref.shape, xpad_ref.dtype)
    for b in range(bt):
        xpad_ref[b, PADMAX:PADMAX + L, :] = x_ref[b]

    conv_w_refs = (wc1_ref, wc2_ref, wc3_ref)
    branch_feats = []
    for br, (ksize, pad) in enumerate(BRANCHES):
        lout = L + 2 * pad - ksize + 1
        off = PADMAX - pad
        w = conv_w_refs[br][...]                                # (K*E, 256) bf16

        # im2col: taps concatenated along lanes, batch folded into rows ->
        # one MXU matmul with contraction K*E instead of K tiny E-deep dots.
        rows = []
        for b in range(bt):
            taps = [xpad_ref[b, off + k: off + k + lout, :] for k in range(ksize)]
            rows.append(jnp.concatenate(taps, axis=-1))         # (lout, K*E) bf16
        lhs = jnp.concatenate(rows, axis=0)                     # (bt*lout, K*E)
        y = jnp.dot(lhs, w, preferred_element_type=jnp.float32)  # (bt*lout, 256) f32
        y = jnp.maximum(y + cb_ref[br:br + 1, :], 0.0)          # conv bias + ReLU

        # GroupNorm(32, 256): per-(batch, group) stats over lout*8 activations.
        y_rows = [y[b * lout:(b + 1) * lout, :] for b in range(bt)]
        ch_sum = jnp.concatenate(
            [jnp.sum(yb, axis=0, keepdims=True) for yb in y_rows], axis=0)
        ch_sq = jnp.concatenate(
            [jnp.sum(yb * yb, axis=0, keepdims=True) for yb in y_rows], axis=0)
        cnt = jnp.float32(lout * (C_CONV // GROUPS))
        g_mean = jnp.dot(ch_sum, g256_ref[...],
                         preferred_element_type=jnp.float32) / cnt
        g_msq = jnp.dot(ch_sq, g256_ref[...],
                        preferred_element_type=jnp.float32) / cnt
        g_var = jnp.maximum(g_msq - g_mean * g_mean, 0.0)       # clamp cancellation
        mean_c = jnp.dot(g_mean, g256t_ref[...],
                         preferred_element_type=jnp.float32)    # (bt, 256)
        inv_c = jnp.dot(lax.rsqrt(g_var + EPS), g256t_ref[...],
                        preferred_element_type=jnp.float32)     # (bt, 256)
        gamma = cg_ref[br:br + 1, :]
        beta = cbt_ref[br:br + 1, :]

        pooled = []
        for b in range(bt):
            yn = (y_rows[b] - mean_c[b:b + 1, :]) * inv_c[b:b + 1, :] * gamma + beta
            # NOTE: max-pool includes positions whose receptive field is all
            # zero padding, exactly as in the PyTorch reference.
            pooled.append(jnp.max(yn, axis=0, keepdims=True))   # (1, 256)
        branch_feats.append(jnp.concatenate(pooled, axis=0))    # (bt, 256)

    feat = jnp.concatenate(branch_feats, axis=-1)               # (bt, 768) f32

    # Head: fc1 -> GroupNorm(32, 512) -> ReLU -> (dropout = identity) -> fc2.
    h = jnp.dot(feat.astype(jnp.bfloat16), w1_ref[...],
                preferred_element_type=jnp.float32) + b1_ref[...]
    cnt = jnp.float32(HIDDEN // GROUPS)
    g_mean = jnp.dot(h, g512_ref[...], preferred_element_type=jnp.float32) / cnt
    g_msq = jnp.dot(h * h, g512_ref[...], preferred_element_type=jnp.float32) / cnt
    g_var = jnp.maximum(g_msq - g_mean * g_mean, 0.0)
    mean_c = jnp.dot(g_mean, g512t_ref[...], preferred_element_type=jnp.float32)
    inv_c = jnp.dot(lax.rsqrt(g_var + EPS), g512t_ref[...],
                    preferred_element_type=jnp.float32)
    hn = (h - mean_c) * inv_c * gfc_ref[...] + bfc_ref[...]
    hr = jnp.maximum(hn, 0.0)
    # TODO(synk): training-mode dropout (p=0.2) is omitted; inference identity.
    out_ref[...] = jnp.dot(hr.astype(jnp.bfloat16), w2_ref[...],
                           preferred_element_type=jnp.float32) + b2_ref[...]


def textcnn_forward(x, params, *, b_tile=None):
    B, L, E = x.shape
    if b_tile is None:
        b_tile = B if B <= 8 else 8
    assert B % b_tile == 0
    # Output block is (b_tile, 128): either it spans the whole batch or
    # b_tile must be a multiple of 8 (BlockSpec (8,128) rule).
    assert b_tile == B or b_tile % 8 == 0
    lpad = L + 2 * PADMAX

    x_bf = x.astype(jnp.bfloat16)
    wc = [w.astype(jnp.bfloat16) for w in params["conv_w"]]
    w1 = params["w1"].astype(jnp.bfloat16)
    # Lane-dense fc2: pad output columns 5 -> 128, slice back in the wrapper.
    w2p = jnp.zeros((HIDDEN, NC_PAD), jnp.bfloat16)
    w2p = w2p.at[:, :NUM_CLASSES].set(params["w2"].astype(jnp.bfloat16))
    b2p = jnp.zeros((1, NC_PAD), jnp.float32).at[:, :NUM_CLASSES].set(params["b2"])

    g256 = _group_onehot(C_CONV, GROUPS)
    g512 = _group_onehot(HIDDEN, GROUPS)

    operands = (x_bf, wc[0], wc[1], wc[2],
                params["conv_b"], params["conv_gamma"], params["conv_beta"],
                g256, g256.T, g512, g512.T,
                w1, params["b1"], params["gamma_fc"], params["beta_fc"],
                w2p, b2p)

    def rep_spec(a):
        nd = a.ndim
        return pl.BlockSpec(a.shape, lambda bi: (0,) * nd)

    in_specs = [pl.BlockSpec((b_tile, L, E), lambda bi: (bi, 0, 0))]
    in_specs += [rep_spec(a) for a in operands[1:]]

    out_pad = pl.pallas_call(
        textcnn_kernel,
        out_shape=jax.ShapeDtypeStruct((B, NC_PAD), jnp.float32),
        grid_spec=pltpu.PrefetchScalarGridSpec(
            num_scalar_prefetch=0,
            grid=(B // b_tile,),
            in_specs=in_specs,
            out_specs=pl.BlockSpec((b_tile, NC_PAD), lambda bi: (bi, 0)),
            scratch_shapes=[pltpu.VMEM((b_tile, lpad, E), jnp.bfloat16)],
        ),
        compiler_params=pltpu.CompilerParams(
            dimension_semantics=("parallel",)),
    )(*operands)
    return out_pad[:, :NUM_CLASSES]


# ----------------------------------------------------------------------------
# Pure-JAX reference mirroring the kernel's mixed precision (bf16 matmul
# operands, f32 accumulation, f32 GroupNorm math).
# ----------------------------------------------------------------------------
def textcnn_reference(x, params):
    B, L, E = x.shape
    xb = x.astype(jnp.bfloat16)
    feats = []
    for i, ((ksz, pad), w) in enumerate(zip(BRANCHES, params["conv_w"])):
        lout = L + 2 * pad - ksz + 1
        xp = jnp.pad(xb, ((0, 0), (pad, pad), (0, 0)))
        wb = w.astype(jnp.bfloat16)
        y = jnp.zeros((B, lout, C_CONV), jnp.float32)
        for k in range(ksz):
            y = y + jnp.einsum("ble,ec->blc", xp[:, k:k + lout, :],
                               wb[k * E:(k + 1) * E, :],
                               preferred_element_type=jnp.float32)
        y = jnp.maximum(y + params["conv_b"][i].reshape(1, 1, -1), 0.0)
        yg = y.reshape(B, lout, GROUPS, C_CONV // GROUPS)
        m = yg.mean(axis=(1, 3), keepdims=True)
        v = ((yg - m) ** 2).mean(axis=(1, 3), keepdims=True)
        yn = ((yg - m) / jnp.sqrt(v + EPS)).reshape(B, lout, C_CONV)
        yn = (yn * params["conv_gamma"][i].reshape(1, 1, -1)
              + params["conv_beta"][i].reshape(1, 1, -1))
        feats.append(yn.max(axis=1))
    feat = jnp.concatenate(feats, axis=1)
    h = jnp.dot(feat.astype(jnp.bfloat16), params["w1"].astype(jnp.bfloat16),
                preferred_element_type=jnp.float32) + params["b1"]
    hg = h.reshape(B, GROUPS, HIDDEN // GROUPS)
    m = hg.mean(axis=2, keepdims=True)
    v = ((hg - m) ** 2).mean(axis=2, keepdims=True)
    hn = ((hg - m) / jnp.sqrt(v + EPS)).reshape(B, HIDDEN)
    hn = hn * params["gamma_fc"] + params["beta_fc"]
    hr = jnp.maximum(hn, 0.0)
    return jnp.dot(hr.astype(jnp.bfloat16), params["w2"].astype(jnp.bfloat16),
                   preferred_element_type=jnp.float32) + params["b2"]


if __name__ == "__main__":
    B, L = 2, 16
    key = jax.random.PRNGKey(0)
    keys = iter(jax.random.split(key, 32))

    x = jax.random.normal(next(keys), (B, L, EMBED), jnp.float32)

    def nrm(k, shape, scale=0.05):
        return scale * jax.random.normal(k, shape, jnp.float32)

    params = dict(
        conv_w=[nrm(next(keys), (ksz * EMBED, C_CONV)) for ksz, _ in BRANCHES],
        conv_b=nrm(next(keys), (3, C_CONV)),
        conv_gamma=1.0 + nrm(next(keys), (3, C_CONV)),
        conv_beta=nrm(next(keys), (3, C_CONV)),
        w1=nrm(next(keys), (3 * C_CONV, HIDDEN)),
        b1=nrm(next(keys), (1, HIDDEN)),
        gamma_fc=1.0 + nrm(next(keys), (1, HIDDEN)),
        beta_fc=nrm(next(keys), (1, HIDDEN)),
        w2=nrm(next(keys), (HIDDEN, NUM_CLASSES)),
        b2=nrm(next(keys), (1, NUM_CLASSES)),
    )

    out = jax.block_until_ready(textcnn_forward(x, params))
    ref = jax.block_until_ready(textcnn_reference(x, params))

    assert out.shape == (B, NUM_CLASSES)
    assert bool(jnp.all(jnp.isfinite(out)))
    assert jnp.allclose(out, ref, rtol=5e-2, atol=5e-2), \
        float(jnp.max(jnp.abs(out - ref)))
    print("KERNEL_OK")
</pallas_src>

<mosaic_0001>
module attributes {stable_mosaic.version = 11 : i64} {
  func.func @textcnn_kernel(%arg0: i32, %arg1: memref<2x16x32xbf16, #tpu.memory_space<vmem>>, %arg2: memref<96x256xbf16, #tpu.memory_space<vmem>>, %arg3: memref<128x256xbf16, #tpu.memory_space<vmem>>, %arg4: memref<160x256xbf16, #tpu.memory_space<vmem>>, %arg5: memref<3x256xf32, #tpu.memory_space<vmem>>, %arg6: memref<3x256xf32, #tpu.memory_space<vmem>>, %arg7: memref<3x256xf32, #tpu.memory_space<vmem>>, %arg8: memref<256x32xf32, #tpu.memory_space<vmem>>, %arg9: memref<32x256xf32, #tpu.memory_space<vmem>>, %arg10: memref<512x32xf32, #tpu.memory_space<vmem>>, %arg11: memref<32x512xf32, #tpu.memory_space<vmem>>, %arg12: memref<768x512xbf16, #tpu.memory_space<vmem>>, %arg13: memref<1x512xf32, #tpu.memory_space<vmem>>, %arg14: memref<1x512xf32, #tpu.memory_space<vmem>>, %arg15: memref<1x512xf32, #tpu.memory_space<vmem>>, %arg16: memref<512x128xbf16, #tpu.memory_space<vmem>>, %arg17: memref<1x128xf32, #tpu.memory_space<vmem>>, %arg18: memref<2x128xf32, #tpu.memory_space<vmem>>, %arg19: memref<2x20x32xbf16, #tpu.memory_space<vmem>>) attributes {dimension_semantics = [#tpu.dimension_semantics<parallel>], iteration_bounds = array<i64: 1>, scalar_prefetch = 0 : i64, scratch_operands = 1 : i64, tpu.core_type = #tpu.core_type<tc>, window_params = [{transform_indices = @transform_0, window_bounds = array<i64: 2, 16, 32>}, {pipeline_mode = #tpu.pipeline_mode<synchronous>, transform_indices = @transform_1, window_bounds = array<i64: 96, 256>}, {pipeline_mode = #tpu.pipeline_mode<synchronous>, transform_indices = @transform_2, window_bounds = array<i64: 128, 256>}, {pipeline_mode = #tpu.pipeline_mode<synchronous>, transform_indices = @transform_3, window_bounds = array<i64: 160, 256>}, {pipeline_mode = #tpu.pipeline_mode<synchronous>, transform_indices = @transform_4, window_bounds = array<i64: 3, 256>}, {pipeline_mode = #tpu.pipeline_mode<synchronous>, transform_indices = @transform_5, window_bounds = array<i64: 3, 256>}, {pipeline_mode = #tpu.pipeline_mode<synchronous>, transform_indices = @transform_6, window_bounds = array<i64: 3, 256>}, {pipeline_mode = #tpu.pipeline_mode<synchronous>, transform_indices = @transform_7, window_bounds = array<i64: 256, 32>}, {pipeline_mode = #tpu.pipeline_mode<synchronous>, transform_indices = @transform_8, window_bounds = array<i64: 32, 256>}, {pipeline_mode = #tpu.pipeline_mode<synchronous>, transform_indices = @transform_9, window_bounds = array<i64: 512, 32>}, {pipeline_mode = #tpu.pipeline_mode<synchronous>, transform_indices = @transform_10, window_bounds = array<i64: 32, 512>}, {pipeline_mode = #tpu.pipeline_mode<synchronous>, transform_indices = @transform_11, window_bounds = array<i64: 768, 512>}, {pipeline_mode = #tpu.pipeline_mode<synchronous>, transform_indices = @transform_12, window_bounds = array<i64: 1, 512>}, {pipeline_mode = #tpu.pipeline_mode<synchronous>, transform_indices = @transform_13, window_bounds = array<i64: 1, 512>}, {pipeline_mode = #tpu.pipeline_mode<synchronous>, transform_indices = @transform_14, window_bounds = array<i64: 1, 512>}, {pipeline_mode = #tpu.pipeline_mode<synchronous>, transform_indices = @transform_15, window_bounds = array<i64: 512, 128>}, {pipeline_mode = #tpu.pipeline_mode<synchronous>, transform_indices = @transform_16, window_bounds = array<i64: 1, 128>}, {transform_indices = @transform_17, window_bounds = array<i64: 2, 128>}]} {
    %cst = arith.constant 0.000000e+00 : bf16
    %0 = vector.broadcast %cst : bf16 to vector<2x20x32xbf16>
    %c0 = arith.constant 0 : index
    %c0_0 = arith.constant 0 : index
    %c0_1 = arith.constant 0 : index
    %1 = vector.load %arg19[%c0, %c0_0, %c0_1] : memref<2x20x32xbf16, #tpu.memory_space<vmem>>, vector<2x20x32xbf16>
    tpu.vector_store %arg19[%c0, %c0_0, %c0_1], %0 {strides = array<i32>} : memref<2x20x32xbf16, #tpu.memory_space<vmem>>, vector<2x20x32xbf16>,
    %c0_2 = arith.constant 0 : index
    %c0_3 = arith.constant 0 : index
    %c0_4 = arith.constant 0 : index
    %2 = vector.load %arg1[%c0_2, %c0_3, %c0_4] : memref<2x16x32xbf16, #tpu.memory_space<vmem>>, vector<1x16x32xbf16>
    %3 = vector.shape_cast %2 : vector<1x16x32xbf16> to vector<16x32xbf16>
    %c0_5 = arith.constant 0 : index
    %c2 = arith.constant 2 : index
    %c0_6 = arith.constant 0 : index
    %4 = vector.load %arg19[%c0_5, %c2, %c0_6] : memref<2x20x32xbf16, #tpu.memory_space<vmem>>, vector<1x16x32xbf16>
    %5 = vector.shape_cast %4 : vector<1x16x32xbf16> to vector<16x32xbf16>
    %6 = vector.shape_cast %3 : vector<16x32xbf16> to vector<1x16x32xbf16>
    tpu.vector_store %arg19[%c0_5, %c2, %c0_6], %6 {strides = array<i32>} : memref<2x20x32xbf16, #tpu.memory_space<vmem>>, vector<1x16x32xbf16>,
    %c1 = arith.constant 1 : index
    %c0_7 = arith.constant 0 : index
    %c0_8 = arith.constant 0 : index
    %7 = vector.load %arg1[%c1, %c0_7, %c0_8] : memref<2x16x32xbf16, #tpu.memory_space<vmem>>, vector<1x16x32xbf16>
    %8 = vector.shape_cast %7 : vector<1x16x32xbf16> to vector<16x32xbf16>
    %c1_9 = arith.constant 1 : index
    %c2_10 = arith.constant 2 : index
    %c0_11 = arith.constant 0 : index
    %9 = vector.load %arg19[%c1_9, %c2_10, %c0_11] : memref<2x20x32xbf16, #tpu.memory_space<vmem>>, vector<1x16x32xbf16>
    %10 = vector.shape_cast %9 : vector<1x16x32xbf16> to vector<16x32xbf16>
    %11 = vector.shape_cast %8 : vector<16x32xbf16> to vector<1x16x32xbf16>
    tpu.vector_store %arg19[%c1_9, %c2_10, %c0_11], %11 {strides = array<i32>} : memref<2x20x32xbf16, #tpu.memory_space<vmem>>, vector<1x16x32xbf16>,
    %c0_12 = arith.constant 0 : index
    %c0_13 = arith.constant 0 : index
    %12 = vector.load %arg2[%c0_12, %c0_13] : memref<96x256xbf16, #tpu.memory_space<vmem>>, vector<96x256xbf16>
    %c0_14 = arith.constant 0 : index
    %c1_15 = arith.constant 1 : index
    %c0_16 = arith.constant 0 : index
    %13 = vector.load %arg19[%c0_14, %c1_15, %c0_16] : memref<2x20x32xbf16, #tpu.memory_space<vmem>>, vector<1x16x32xbf16>
    %14 = vector.shape_cast %13 : vector<1x16x32xbf16> to vector<16x32xbf16>
    %c0_17 = arith.constant 0 : index
    %c2_18 = arith.constant 2 : index
    %c0_19 = arith.constant 0 : index
    %15 = vector.load %arg19[%c0_17, %c2_18, %c0_19] : memref<2x20x32xbf16, #tpu.memory_space<vmem>>, vector<1x16x32xbf16>
    %16 = vector.shape_cast %15 : vector<1x16x32xbf16> to vector<16x32xbf16>
    %c0_20 = arith.constant 0 : index
    %c3 = arith.constant 3 : index
    %c0_21 = arith.constant 0 : index
    %17 = vector.load %arg19[%c0_20, %c3, %c0_21] : memref<2x20x32xbf16, #tpu.memory_space<vmem>>, vector<1x16x32xbf16>
    %18 = vector.shape_cast %17 : vector<1x16x32xbf16> to vector<16x32xbf16>
    %19 = tpu.concatenate %14, %16, %18 in 1 : vector<16x32xbf16>, vector<16x32xbf16>, vector<16x32xbf16> -> vector<16x96xbf16>
    %c1_22 = arith.constant 1 : index
    %c1_23 = arith.constant 1 : index
    %c0_24 = arith.constant 0 : index
    %20 = vector.load %arg19[%c1_22, %c1_23, %c0_24] : memref<2x20x32xbf16, #tpu.memory_space<vmem>>, vector<1x16x32xbf16>
    %21 = vector.shape_cast %20 : vector<1x16x32xbf16> to vector<16x32xbf16>
    %c1_25 = arith.constant 1 : index
    %c2_26 = arith.constant 2 : index
    %c0_27 = arith.constant 0 : index
    %22 = vector.load %arg19[%c1_25, %c2_26, %c0_27] : memref<2x20x32xbf16, #tpu.memory_space<vmem>>, vector<1x16x32xbf16>
    %23 = vector.shape_cast %22 : vector<1x16x32xbf16> to vector<16x32xbf16>
    %c1_28 = arith.constant 1 : index
    %c3_29 = arith.constant 3 : index
    %c0_30 = arith.constant 0 : index
    %24 = vector.load %arg19[%c1_28, %c3_29, %c0_30] : memref<2x20x32xbf16, #tpu.memory_space<vmem>>, vector<1x16x32xbf16>
    %25 = vector.shape_cast %24 : vector<1x16x32xbf16> to vector<16x32xbf16>
    %26 = tpu.concatenate %21, %23, %25 in 1 : vector<16x32xbf16>, vector<16x32xbf16>, vector<16x32xbf16> -> vector<16x96xbf16>
    %27 = tpu.concatenate %19, %26 in 0 : vector<16x96xbf16>, vector<16x96xbf16> -> vector<32x96xbf16>
    %cst_31 = arith.constant dense<0.000000e+00> : vector<32x256xf32>
    %28 = tpu.matmul %27, %12, %cst_31 {dimension_numbers = #tpu.dot_dimension_numbers<[1], [0], [0], [1], [0, 0, 1, 1], [], []>} : vector<32x96xbf16>, vector<96x256xbf16>, vector<32x256xf32> -> vector<32x256xf32>
    %c0_32 = arith.constant 0 : index
    %c0_33 = arith.constant 0 : index
    %29 = vector.load %arg5[%c0_32, %c0_33] : memref<3x256xf32, #tpu.memory_space<vmem>>, vector<1x256xf32>
    %30 = vector.broadcast %29 : vector<1x256xf32> to vector<32x256xf32>
    %31 = arith.addf %28, %30 : vector<32x256xf32>
    %cst_34 = arith.constant 0.000000e+00 : f32
    %32 = vector.broadcast %cst_34 : f32 to vector<32x256xf32>
    %33 = arith.maximumf %31, %32 : vector<32x256xf32>
    %34 = vector.extract_strided_slice %33 {offsets = [0, 0], sizes = [16, 256], strides = [1, 1]} : vector<32x256xf32> to vector<16x256xf32>
    %35 = vector.extract_strided_slice %33 {offsets = [16, 0], sizes = [16, 256], strides = [1, 1]} : vector<32x256xf32> to vector<16x256xf32>
    %cst_35 = arith.constant dense<0.000000e+00> : vector<256xf32>
    %36 = vector.multi_reduction <add>, %34, %cst_35 [0] : vector<16x256xf32> to vector<256xf32>
    %37 = vector.shape_cast %36 : vector<256xf32> to vector<1x256xf32>
    %cst_36 = arith.constant dense<0.000000e+00> : vector<256xf32>
    %38 = vector.multi_reduction <add>, %35, %cst_36 [0] : vector<16x256xf32> to vector<256xf32>
    %39 = vector.shape_cast %38 : vector<256xf32> to vector<1x256xf32>
    %40 = tpu.concatenate %37, %39 in 0 : vector<1x256xf32>, vector<1x256xf32> -> vector<2x256xf32>
    %41 = arith.mulf %34, %34 : vector<16x256xf32>
    %cst_37 = arith.constant dense<0.000000e+00> : vector<256xf32>
    %42 = vector.multi_reduction <add>, %41, %cst_37 [0] : vector<16x256xf32> to vector<256xf32>
    %43 = vector.shape_cast %42 : vector<256xf32> to vector<1x256xf32>
    %44 = arith.mulf %35, %35 : vector<16x256xf32>
    %cst_38 = arith.constant dense<0.000000e+00> : vector<256xf32>
    %45 = vector.multi_reduction <add>, %44, %cst_38 [0] : vector<16x256xf32> to vector<256xf32>
    %46 = vector.shape_cast %45 : vector<256xf32> to vector<1x256xf32>
    %47 = tpu.concatenate %43, %46 in 0 : vector<1x256xf32>, vector<1x256xf32> -> vector<2x256xf32>
    %c0_39 = arith.constant 0 : index
    %c0_40 = arith.constant 0 : index
    %48 = vector.load %arg8[%c0_39, %c0_40] : memref<256x32xf32, #tpu.memory_space<vmem>>, vector<256x32xf32>
    %cst_41 = arith.constant dense<0.000000e+00> : vector<2x32xf32>
    %49 = tpu.matmul %40, %48, %cst_41 {dimension_numbers = #tpu.dot_dimension_numbers<[1], [0], [0], [1], [0, 0, 1, 1], [], []>} : vector<2x256xf32>, vector<256x32xf32>, vector<2x32xf32> -> vector<2x32xf32>
    %cst_42 = arith.constant 1.280000e+02 : f32
    %50 = vector.broadcast %cst_42 : f32 to vector<2x32xf32>
    %51 = arith.divf %49, %50 : vector<2x32xf32>
    %c0_43 = arith.constant 0 : index
    %c0_44 = arith.constant 0 : index
    %52 = vector.load %arg8[%c0_43, %c0_44] : memref<256x32xf32, #tpu.memory_space<vmem>>, vector<256x32xf32>
    %cst_45 = arith.constant dense<0.000000e+00> : vector<2x32xf32>
    %53 = tpu.matmul %47, %52, %cst_45 {dimension_numbers = #tpu.dot_dimension_numbers<[1], [0], [0], [1], [0, 0, 1, 1], [], []>} : vector<2x256xf32>, vector<256x32xf32>, vector<2x32xf32> -> vector<2x32xf32>
    %cst_46 = arith.constant 1.280000e+02 : f32
    %54 = vector.broadcast %cst_46 : f32 to vector<2x32xf32>
    %55 = arith.divf %53, %54 : vector<2x32xf32>
    %56 = arith.mulf %51, %51 : vector<2x32xf32>
    %57 = arith.subf %55, %56 : vector<2x32xf32>
    %cst_47 = arith.constant 0.000000e+00 : f32
    %58 = vector.broadcast %cst_47 : f32 to vector<2x32xf32>
    %59 = arith.maximumf %57, %58 : vector<2x32xf32>
    %c0_48 = arith.constant 0 : index
    %c0_49 = arith.constant 0 : index
    %60 = vector.load %arg9[%c0_48, %c0_49] : memref<32x256xf32, #tpu.memory_space<vmem>>, vector<32x256xf32>
    %cst_50 = arith.constant dense<0.000000e+00> : vector<2x256xf32>
    %61 = tpu.matmul %51, %60, %cst_50 {dimension_numbers = #tpu.dot_dimension_numbers<[1], [0], [0], [1], [0, 0, 1, 1], [], []>} : vector<2x32xf32>, vector<32x256xf32>, vector<2x256xf32> -> vector<2x256xf32>
    %cst_51 = arith.constant 9.99999974E-6 : f32
    %62 = vector.broadcast %cst_51 : f32 to vector<2x32xf32>
    %63 = arith.addf %59, %62 : vector<2x32xf32>
    %64 = math.rsqrt %63 : vector<2x32xf32>
    %c0_52 = arith.constant 0 : index
    %c0_53 = arith.constant 0 : index
    %65 = vector.load %arg9[%c0_52, %c0_53] : memref<32x256xf32, #tpu.memory_space<vmem>>, vector<32x256xf32>
    %cst_54 = arith.constant dense<0.000000e+00> : vector<2x256xf32>
    %66 = tpu.matmul %64, %65, %cst_54 {dimension_numbers = #tpu.dot_dimension_numbers<[1], [0], [0], [1], [0, 0, 1, 1], [], []>} : vector<2x32xf32>, vector<32x256xf32>, vector<2x256xf32> -> vector<2x256xf32>
    %c0_55 = arith.constant 0 : index
    %c0_56 = arith.constant 0 : index
    %67 = vector.load %arg6[%c0_55, %c0_56] : memref<3x256xf32, #tpu.memory_space<vmem>>, vector<1x256xf32>
    %c0_57 = arith.constant 0 : index
    %c0_58 = arith.constant 0 : index
    %68 = vector.load %arg7[%c0_57, %c0_58] : memref<3x256xf32, #tpu.memory_space<vmem>>, vector<1x256xf32>
    %69 = vector.extract_strided_slice %61 {offsets = [0, 0], sizes = [1, 256], strides = [1, 1]} : vector<2x256xf32> to vector<1x256xf32>
    %70 = vector.broadcast %69 : vector<1x256xf32> to vector<16x256xf32>
    %71 = arith.subf %34, %70 : vector<16x256xf32>
    %72 = vector.extract_strided_slice %66 {offsets = [0, 0], sizes = [1, 256], strides = [1, 1]} : vector<2x256xf32> to vector<1x256xf32>
    %73 = vector.broadcast %72 : vector<1x256xf32> to vector<16x256xf32>
    %74 = arith.mulf %71, %73 : vector<16x256xf32>
    %75 = vector.broadcast %67 : vector<1x256xf32> to vector<16x256xf32>
    %76 = arith.mulf %74, %75 : vector<16x256xf32>
    %77 = vector.broadcast %68 : vector<1x256xf32> to vector<16x256xf32>
    %78 = arith.addf %76, %77 : vector<16x256xf32>
    %cst_59 = arith.constant dense<0xFF800000> : vector<256xf32>
    %79 = vector.multi_reduction <maximumf>, %78, %cst_59 [0] : vector<16x256xf32> to vector<256xf32>
    %80 = vector.shape_cast %79 : vector<256xf32> to vector<1x256xf32>
    %81 = vector.extract_strided_slice %61 {offsets = [1, 0], sizes = [1, 256], strides = [1, 1]} : vector<2x256xf32> to vector<1x256xf32>
    %82 = vector.broadcast %81 : vector<1x256xf32> to vector<16x256xf32>
    %83 = arith.subf %35, %82 : vector<16x256xf32>
    %84 = vector.extract_strided_slice %66 {offsets = [1, 0], sizes = [1, 256], strides = [1, 1]} : vector<2x256xf32> to vector<1x256xf32>
    %85 = vector.broadcast %84 : vector<1x256xf32> to vector<16x256xf32>
    %86 = arith.mulf %83, %85 : vector<16x256xf32>
    %87 = vector.broadcast %67 : vector<1x256xf32> to vector<16x256xf32>
    %88 = arith.mulf %86, %87 : vector<16x256xf32>
    %89 = vector.broadcast %68 : vector<1x256xf32> to vector<16x256xf32>
    %90 = arith.addf %88, %89 : vector<16x256xf32>
    %cst_60 = arith.constant dense<0xFF800000> : vector<256xf32>
    %91 = vector.multi_reduction <maximumf>, %90, %cst_60 [0] : vector<16x256xf32> to vector<256xf32>
    %92 = vector.shape_cast %91 : vector<256xf32> to vector<1x256xf32>
    %93 = tpu.concatenate %80, %92 in 0 : vector<1x256xf32>, vector<1x256xf32> -> vector<2x256xf32>
    %c0_61 = arith.constant 0 : index
    %c0_62 = arith.constant 0 : index
    %94 = vector.load %arg3[%c0_61, %c0_62] : memref<128x256xbf16, #tpu.memory_space<vmem>>, vector<128x256xbf16>
    %c0_63 = arith.constant 0 : index
    %c0_64 = arith.constant 0 : index
    %c0_65 = arith.constant 0 : index
    %95 = vector.load %arg19[%c0_63, %c0_64, %c0_65] : memref<2x20x32xbf16, #tpu.memory_space<vmem>>, vector<1x17x32xbf16>
    %96 = vector.shape_cast %95 : vector<1x17x32xbf16> to vector<17x32xbf16>
    %c0_66 = arith.constant 0 : index
    %c1_67 = arith.constant 1 : index
    %c0_68 = arith.constant 0 : index
    %97 = vector.load %arg19[%c0_66, %c1_67, %c0_68] : memref<2x20x32xbf16, #tpu.memory_space<vmem>>, vector<1x17x32xbf16>
    %98 = vector.shape_cast %97 : vector<1x17x32xbf16> to vector<17x32xbf16>
    %c0_69 = arith.constant 0 : index
    %c2_70 = arith.constant 2 : index
    %c0_71 = arith.constant 0 : index
    %99 = vector.load %arg19[%c0_69, %c2_70, %c0_71] : memref<2x20x32xbf16, #tpu.memory_space<vmem>>, vector<1x17x32xbf16>
    %100 = vector.shape_cast %99 : vector<1x17x32xbf16> to vector<17x32xbf16>
    %c0_72 = arith.constant 0 : index
    %c3_73 = arith.constant 3 : index
    %c0_74 = arith.constant 0 : index
    %101 = vector.load %arg19[%c0_72, %c3_73, %c0_74] : memref<2x20x32xbf16, #tpu.memory_space<vmem>>, vector<1x17x32xbf16>
    %102 = vector.shape_cast %101 : vector<1x17x32xbf16> to vector<17x32xbf16>
    %103 = tpu.concatenate %96, %98, %100, %102 in 1 : vector<17x32xbf16>, vector<17x32xbf16>, vector<17x32xbf16>, vector<17x32xbf16> -> vector<17x128xbf16>
    %c1_75 = arith.constant 1 : index
    %c0_76 = arith.constant 0 : index
    %c0_77 = arith.constant 0 : index
    %104 = vector.load %arg19[%c1_75, %c0_76, %c0_77] : memref<2x20x32xbf16, #tpu.memory_space<vmem>>, vector<1x17x32xbf16>
    %105 = vector.shape_cast %104 : vector<1x17x32xbf16> to vector<17x32xbf16>
    %c1_78 = arith.constant 1 : index
    %c1_79 = arith.constant 1 : index
    %c0_80 = arith.constant 0 : index
    %106 = vector.load %arg19[%c1_78, %c1_79, %c0_80] : memref<2x20x32xbf16, #tpu.memory_space<vmem>>, vector<1x17x32xbf16>
    %107 = vector.shape_cast %106 : vector<1x17x32xbf16> to vector<17x32xbf16>
    %c1_81 = arith.constant 1 : index
    %c2_82 = arith.constant 2 : index
    %c0_83 = arith.constant 0 : index
    %108 = vector.load %arg19[%c1_81, %c2_82, %c0_83] : memref<2x20x32xbf16, #tpu.memory_space<vmem>>, vector<1x17x32xbf16>
    %109 = vector.shape_cast %108 : vector<1x17x32xbf16> to vector<17x32xbf16>
    %c1_84 = arith.constant 1 : index
    %c3_85 = arith.constant 3 : index
    %c0_86 = arith.constant 0 : index
    %110 = vector.load %arg19[%c1_84, %c3_85, %c0_86] : memref<2x20x32xbf16, #tpu.memory_space<vmem>>, vector<1x17x32xbf16>
    %111 = vector.shape_cast %110 : vector<1x17x32xbf16> to vector<17x32xbf16>
    %112 = tpu.concatenate %105, %107, %109, %111 in 1 : vector<17x32xbf16>, vector<17x32xbf16>, vector<17x32xbf16>, vector<17x32xbf16> -> vector<17x128xbf16>
    %113 = tpu.concatenate %103, %112 in 0 : vector<17x128xbf16>, vector<17x128xbf16> -> vector<34x128xbf16>
    %cst_87 = arith.constant dense<0.000000e+00> : vector<34x256xf32>
    %114 = tpu.matmul %113, %94, %cst_87 {dimension_numbers = #tpu.dot_dimension_numbers<[1], [0], [0], [1], [0, 0, 1, 1], [], []>} : vector<34x128xbf16>, vector<128x256xbf16>, vector<34x256xf32> -> vector<34x256xf32>
    %c1_88 = arith.constant 1 : index
    %c0_89 = arith.constant 0 : index
    %115 = vector.load %arg5[%c1_88, %c0_89] : memref<3x256xf32, #tpu.memory_space<vmem>>, vector<1x256xf32>
    %116 = vector.broadcast %115 : vector<1x256xf32> to vector<34x256xf32>
    %117 = arith.addf %114, %116 : vector<34x256xf32>
    %cst_90 = arith.constant 0.000000e+00 : f32
    %118 = vector.broadcast %cst_90 : f32 to vector<34x256xf32>
    %119 = arith.maximumf %117, %118 : vector<34x256xf32>
    %120 = vector.extract_strided_slice %119 {offsets = [0, 0], sizes = [17, 256], strides = [1, 1]} : vector<34x256xf32> to vector<17x256xf32>
    %121 = vector.extract_strided_slice %119 {offsets = [17, 0], sizes = [17, 256], strides = [1, 1]} : vector<34x256xf32> to vector<17x256xf32>
    %cst_91 = arith.constant dense<0.000000e+00> : vector<256xf32>
    %122 = vector.multi_reduction <add>, %120, %cst_91 [0] : vector<17x256xf32> to vector<256xf32>
    %123 = vector.shape_cast %122 : vector<256xf32> to vector<1x256xf32>
    %cst_92 = arith.constant dense<0.000000e+00> : vector<256xf32>
    %124 = vector.multi_reduction <add>, %121, %cst_92 [0] : vector<17x256xf32> to vector<256xf32>
    %125 = vector.shape_cast %124 : vector<256xf32> to vector<1x256xf32>
    %126 = tpu.concatenate %123, %125 in 0 : vector<1x256xf32>, vector<1x256xf32> -> vector<2x256xf32>
    %127 = arith.mulf %120, %120 : vector<17x256xf32>
    %cst_93 = arith.constant dense<0.000000e+00> : vector<256xf32>
    %128 = vector.multi_reduction <add>, %127, %cst_93 [0] : vector<17x256xf32> to vector<256xf32>
    %129 = vector.shape_cast %128 : vector<256xf32> to vector<1x256xf32>
    %130 = arith.mulf %121, %121 : vector<17x256xf32>
    %cst_94 = arith.constant dense<0.000000e+00> : vector<256xf32>
    %131 = vector.multi_reduction <add>, %130, %cst_94 [0] : vector<17x256xf32> to vector<256xf32>
    %132 = vector.shape_cast %131 : vector<256xf32> to vector<1x256xf32>
    %133 = tpu.concatenate %129, %132 in 0 : vector<1x256xf32>, vector<1x256xf32> -> vector<2x256xf32>
    %c0_95 = arith.constant 0 : index
    %c0_96 = arith.constant 0 : index
    %134 = vector.load %arg8[%c0_95, %c0_96] : memref<256x32xf32, #tpu.memory_space<vmem>>, vector<256x32xf32>
    %cst_97 = arith.constant dense<0.000000e+00> : vector<2x32xf32>
    %135 = tpu.matmul %126, %134, %cst_97 {dimension_numbers = #tpu.dot_dimension_numbers<[1], [0], [0], [1], [0, 0, 1, 1], [], []>} : vector<2x256xf32>, vector<256x32xf32>, vector<2x32xf32> -> vector<2x32xf32>
    %cst_98 = arith.constant 1.360000e+02 : f32
    %136 = vector.broadcast %cst_98 : f32 to vector<2x32xf32>
    %137 = arith.divf %135, %136 : vector<2x32xf32>
    %c0_99 = arith.constant 0 : index
    %c0_100 = arith.constant 0 : index
    %138 = vector.load %arg8[%c0_99, %c0_100] : memref<256x32xf32, #tpu.memory_space<vmem>>, vector<256x32xf32>
    %cst_101 = arith.constant dense<0.000000e+00> : vector<2x32xf32>
    %139 = tpu.matmul %133, %138, %cst_101 {dimension_numbers = #tpu.dot_dimension_numbers<[1], [0], [0], [1], [0, 0, 1, 1], [], []>} : vector<2x256xf32>, vector<256x32xf32>, vector<2x32xf32> -> vector<2x32xf32>
    %cst_102 = arith.constant 1.360000e+02 : f32
    %140 = vector.broadcast %cst_102 : f32 to vector<2x32xf32>
    %141 = arith.divf %139, %140 : vector<2x32xf32>
    %142 = arith.mulf %137, %137 : vector<2x32xf32>
    %143 = arith.subf %141, %142 : vector<2x32xf32>
    %cst_103 = arith.constant 0.000000e+00 : f32
    %144 = vector.broadcast %cst_103 : f32 to vector<2x32xf32>
    %145 = arith.maximumf %143, %144 : vector<2x32xf32>
    %c0_104 = arith.constant 0 : index
    %c0_105 = arith.constant 0 : index
    %146 = vector.load %arg9[%c0_104, %c0_105] : memref<32x256xf32, #tpu.memory_space<vmem>>, vector<32x256xf32>
    %cst_106 = arith.constant dense<0.000000e+00> : vector<2x256xf32>
    %147 = tpu.matmul %137, %146, %cst_106 {dimension_numbers = #tpu.dot_dimension_numbers<[1], [0], [0], [1], [0, 0, 1, 1], [], []>} : vector<2x32xf32>, vector<32x256xf32>, vector<2x256xf32> -> vector<2x256xf32>
    %cst_107 = arith.constant 9.99999974E-6 : f32
    %148 = vector.broadcast %cst_107 : f32 to vector<2x32xf32>
    %149 = arith.addf %145, %148 : vector<2x32xf32>
    %150 = math.rsqrt %149 : vector<2x32xf32>
    %c0_108 = arith.constant 0 : index
    %c0_109 = arith.constant 0 : index
    %151 = vector.load %arg9[%c0_108, %c0_109] : memref<32x256xf32, #tpu.memory_space<vmem>>, vector<32x256xf32>
    %cst_110 = arith.constant dense<0.000000e+00> : vector<2x256xf32>
    %152 = tpu.matmul %150, %151, %cst_110 {dimension_numbers = #tpu.dot_dimension_numbers<[1], [0], [0], [1], [0, 0, 1, 1], [], []>} : vector<2x32xf32>, vector<32x256xf32>, vector<2x256xf32> -> vector<2x256xf32>
    %c1_111 = arith.constant 1 : index
    %c0_112 = arith.constant 0 : index
    %153 = vector.load %arg6[%c1_111, %c0_112] : memref<3x256xf32, #tpu.memory_space<vmem>>, vector<1x256xf32>
    %c1_113 = arith.constant 1 : index
    %c0_114 = arith.constant 0 : index
    %154 = vector.load %arg7[%c1_113, %c0_114] : memref<3x256xf32, #tpu.memory_space<vmem>>, vector<1x256xf32>
    %155 = vector.extract_strided_slice %147 {offsets = [0, 0], sizes = [1, 256], strides = [1, 1]} : vector<2x256xf32> to vector<1x256xf32>
    %156 = vector.broadcast %155 : vector<1x256xf32> to vector<17x256xf32>
    %157 = arith.subf %120, %156 : vector<17x256xf32>
    %158 = vector.extract_strided_slice %152 {offsets = [0, 0], sizes = [1, 256], strides = [1, 1]} : vector<2x256xf32> to vector<1x256xf32>
    %159 = vector.broadcast %158 : vector<1x256xf32> to vector<17x256xf32>
    %160 = arith.mulf %157, %159 : vector<17x256xf32>
    %161 = vector.broadcast %153 : vector<1x256xf32> to vector<17x256xf32>
    %162 = arith.mulf %160, %161 : vector<17x256xf32>
    %163 = vector.broadcast %154 : vector<1x256xf32> to vector<17x256xf32>
    %164 = arith.addf %162, %163 : vector<17x256xf32>
    %cst_115 = arith.constant dense<0xFF800000> : vector<256xf32>
    %165 = vector.multi_reduction <maximumf>, %164, %cst_115 [0] : vector<17x256xf32> to vector<256xf32>
    %166 = vector.shape_cast %165 : vector<256xf32> to vector<1x256xf32>
    %167 = vector.extract_strided_slice %147 {offsets = [1, 0], sizes = [1, 256], strides = [1, 1]} : vector<2x256xf32> to vector<1x256xf32>
    %168 = vector.broadcast %167 : vector<1x256xf32> to vector<17x256xf32>
    %169 = arith.subf %121, %168 : vector<17x256xf32>
    %170 = vector.extract_strided_slice %152 {offsets = [1, 0], sizes = [1, 256], strides = [1, 1]} : vector<2x256xf32> to vector<1x256xf32>
    %171 = vector.broadcast %170 : vector<1x256xf32> to vector<17x256xf32>
    %172 = arith.mulf %169, %171 : vector<17x256xf32>
    %173 = vector.broadcast %153 : vector<1x256xf32> to vector<17x256xf32>
    %174 = arith.mulf %172, %173 : vector<17x256xf32>
    %175 = vector.broadcast %154 : vector<1x256xf32> to vector<17x256xf32>
    %176 = arith.addf %174, %175 : vector<17x256xf32>
    %cst_116 = arith.constant dense<0xFF800000> : vector<256xf32>
    %177 = vector.multi_reduction <maximumf>, %176, %cst_116 [0] : vector<17x256xf32> to vector<256xf32>
    %178 = vector.shape_cast %177 : vector<256xf32> to vector<1x256xf32>
    %179 = tpu.concatenate %166, %178 in 0 : vector<1x256xf32>, vector<1x256xf32> -> vector<2x256xf32>
    %c0_117 = arith.constant 0 : index
    %c0_118 = arith.constant 0 : index
    %180 = vector.load %arg4[%c0_117, %c0_118] : memref<160x256xbf16, #tpu.memory_space<vmem>>, vector<160x256xbf16>
    %c0_119 = arith.constant 0 : index
    %c0_120 = arith.constant 0 : index
    %c0_121 = arith.constant 0 : index
    %181 = vector.load %arg19[%c0_119, %c0_120, %c0_121] : memref<2x20x32xbf16, #tpu.memory_space<vmem>>, vector<1x16x32xbf16>
    %182 = vector.shape_cast %181 : vector<1x16x32xbf16> to vector<16x32xbf16>
    %c0_122 = arith.constant 0 : index
    %c1_123 = arith.constant 1 : index
    %c0_124 = arith.constant 0 : index
    %183 = vector.load %arg19[%c0_122, %c1_123, %c0_124] : memref<2x20x32xbf16, #tpu.memory_space<vmem>>, vector<1x16x32xbf16>
    %184 = vector.shape_cast %183 : vector<1x16x32xbf16> to vector<16x32xbf16>
    %c0_125 = arith.constant 0 : index
    %c2_126 = arith.constant 2 : index
    %c0_127 = arith.constant 0 : index
    %185 = vector.load %arg19[%c0_125, %c2_126, %c0_127] : memref<2x20x32xbf16, #tpu.memory_space<vmem>>, vector<1x16x32xbf16>
    %186 = vector.shape_cast %185 : vector<1x16x32xbf16> to vector<16x32xbf16>
    %c0_128 = arith.constant 0 : index
    %c3_129 = arith.constant 3 : index
    %c0_130 = arith.constant 0 : index
    %187 = vector.load %arg19[%c0_128, %c3_129, %c0_130] : memref<2x20x32xbf16, #tpu.memory_space<vmem>>, vector<1x16x32xbf16>
    %188 = vector.shape_cast %187 : vector<1x16x32xbf16> to vector<16x32xbf16>
    %c0_131 = arith.constant 0 : index
    %c4 = arith.constant 4 : index
    %c0_132 = arith.constant 0 : index
    %189 = vector.load %arg19[%c0_131, %c4, %c0_132] : memref<2x20x32xbf16, #tpu.memory_space<vmem>>, vector<1x16x32xbf16>
    %190 = vector.shape_cast %189 : vector<1x16x32xbf16> to vector<16x32xbf16>
    %191 = tpu.concatenate %182, %184, %186, %188, %190 in 1 : vector<16x32xbf16>, vector<16x32xbf16>, vector<16x32xbf16>, vector<16x32xbf16>, vector<16x32xbf16> -> vector<16x160xbf16>
    %c1_133 = arith.constant 1 : index
    %c0_134 = arith.constant 0 : index
    %c0_135 = arith.constant 0 : index
    %192 = vector.load %arg19[%c1_133, %c0_134, %c0_135] : memref<2x20x32xbf16, #tpu.memory_space<vmem>>, vector<1x16x32xbf16>
    %193 = vector.shape_cast %192 : vector<1x16x32xbf16> to vector<16x32xbf16>
    %c1_136 = arith.constant 1 : index
    %c1_137 = arith.constant 1 : index
    %c0_138 = arith.constant 0 : index
    %194 = vector.load %arg19[%c1_136, %c1_137, %c0_138] : memref<2x20x32xbf16, #tpu.memory_space<vmem>>, vector<1x16x32xbf16>
    %195 = vector.shape_cast %194 : vector<1x16x32xbf16> to vector<16x32xbf16>
    %c1_139 = arith.constant 1 : index
    %c2_140 = arith.constant 2 : index
    %c0_141 = arith.constant 0 : index
    %196 = vector.load %arg19[%c1_139, %c2_140, %c0_141] : memref<2x20x32xbf16, #tpu.memory_space<vmem>>, vector<1x16x32xbf16>
    %197 = vector.shape_cast %196 : vector<1x16x32xbf16> to vector<16x32xbf16>
    %c1_142 = arith.constant 1 : index
    %c3_143 = arith.constant 3 : index
    %c0_144 = arith.constant 0 : index
    %198 = vector.load %arg19[%c1_142, %c3_143, %c0_144] : memref<2x20x32xbf16, #tpu.memory_space<vmem>>, vector<1x16x32xbf16>
    %199 = vector.shape_cast %198 : vector<1x16x32xbf16> to vector<16x32xbf16>
    %c1_145 = arith.constant 1 : index
    %c4_146 = arith.constant 4 : index
    %c0_147 = arith.constant 0 : index
    %200 = vector.load %arg19[%c1_145, %c4_146, %c0_147] : memref<2x20x32xbf16, #tpu.memory_space<vmem>>, vector<1x16x32xbf16>
    %201 = vector.shape_cast %200 : vector<1x16x32xbf16> to vector<16x32xbf16>
    %202 = tpu.concatenate %193, %195, %197, %199, %201 in 1 : vector<16x32xbf16>, vector<16x32xbf16>, vector<16x32xbf16>, vector<16x32xbf16>, vector<16x32xbf16> -> vector<16x160xbf16>
    %203 = tpu.concatenate %191, %202 in 0 : vector<16x160xbf16>, vector<16x160xbf16> -> vector<32x160xbf16>
    %cst_148 = arith.constant dense<0.000000e+00> : vector<32x256xf32>
    %204 = tpu.matmul %203, %180, %cst_148 {dimension_numbers = #tpu.dot_dimension_numbers<[1], [0], [0], [1], [0, 0, 1, 1], [], []>} : vector<32x160xbf16>, vector<160x256xbf16>, vector<32x256xf32> -> vector<32x256xf32>
    %c2_149 = arith.constant 2 : index
    %c0_150 = arith.constant 0 : index
    %205 = vector.load %arg5[%c2_149, %c0_150] : memref<3x256xf32, #tpu.memory_space<vmem>>, vector<1x256xf32>
    %206 = vector.broadcast %205 : vector<1x256xf32> to vector<32x256xf32>
    %207 = arith.addf %204, %206 : vector<32x256xf32>
    %cst_151 = arith.constant 0.000000e+00 : f32
    %208 = vector.broadcast %cst_151 : f32 to vector<32x256xf32>
    %209 = arith.maximumf %207, %208 : vector<32x256xf32>
    %210 = vector.extract_strided_slice %209 {offsets = [0, 0], sizes = [16, 256], strides = [1, 1]} : vector<32x256xf32> to vector<16x256xf32>
    %211 = vector.extract_strided_slice %209 {offsets = [16, 0], sizes = [16, 256], strides = [1, 1]} : vector<32x256xf32> to vector<16x256xf32>
    %cst_152 = arith.constant dense<0.000000e+00> : vector<256xf32>
    %212 = vector.multi_reduction <add>, %210, %cst_152 [0] : vector<16x256xf32> to vector<256xf32>
    %213 = vector.shape_cast %212 : vector<256xf32> to vector<1x256xf32>
    %cst_153 = arith.constant dense<0.000000e+00> : vector<256xf32>
    %214 = vector.multi_reduction <add>, %211, %cst_153 [0] : vector<16x256xf32> to vector<256xf32>
    %215 = vector.shape_cast %214 : vector<256xf32> to vector<1x256xf32>
    %216 = tpu.concatenate %213, %215 in 0 : vector<1x256xf32>, vector<1x256xf32> -> vector<2x256xf32>
    %217 = arith.mulf %210, %210 : vector<16x256xf32>
    %cst_154 = arith.constant dense<0.000000e+00> : vector<256xf32>
    %218 = vector.multi_reduction <add>, %217, %cst_154 [0] : vector<16x256xf32> to vector<256xf32>
    %219 = vector.shape_cast %218 : vector<256xf32> to vector<1x256xf32>
    %220 = arith.mulf %211, %211 : vector<16x256xf32>
    %cst_155 = arith.constant dense<0.000000e+00> : vector<256xf32>
    %221 = vector.multi_reduction <add>, %220, %cst_155 [0] : vector<16x256xf32> to vector<256xf32>
    %222 = vector.shape_cast %221 : vector<256xf32> to vector<1x256xf32>
    %223 = tpu.concatenate %219, %222 in 0 : vector<1x256xf32>, vector<1x256xf32> -> vector<2x256xf32>
    %c0_156 = arith.constant 0 : index
    %c0_157 = arith.constant 0 : index
    %224 = vector.load %arg8[%c0_156, %c0_157] : memref<256x32xf32, #tpu.memory_space<vmem>>, vector<256x32xf32>
    %cst_158 = arith.constant dense<0.000000e+00> : vector<2x32xf32>
    %225 = tpu.matmul %216, %224, %cst_158 {dimension_numbers = #tpu.dot_dimension_numbers<[1], [0], [0], [1], [0, 0, 1, 1], [], []>} : vector<2x256xf32>, vector<256x32xf32>, vector<2x32xf32> -> vector<2x32xf32>
    %cst_159 = arith.constant 1.280000e+02 : f32
    %226 = vector.broadcast %cst_159 : f32 to vector<2x32xf32>
    %227 = arith.divf %225, %226 : vector<2x32xf32>
    %c0_160 = arith.constant 0 : index
    %c0_161 = arith.constant 0 : index
    %228 = vector.load %arg8[%c0_160, %c0_161] : memref<256x32xf32, #tpu.memory_space<vmem>>, vector<256x32xf32>
    %cst_162 = arith.constant dense<0.000000e+00> : vector<2x32xf32>
    %229 = tpu.matmul %223, %228, %cst_162 {dimension_numbers = #tpu.dot_dimension_numbers<[1], [0], [0], [1], [0, 0, 1, 1], [], []>} : vector<2x256xf32>, vector<256x32xf32>, vector<2x32xf32> -> vector<2x32xf32>
    %cst_163 = arith.constant 1.280000e+02 : f32
    %230 = vector.broadcast %cst_163 : f32 to vector<2x32xf32>
    %231 = arith.divf %229, %230 : vector<2x32xf32>
    %232 = arith.mulf %227, %227 : vector<2x32xf32>
    %233 = arith.subf %231, %232 : vector<2x32xf32>
    %cst_164 = arith.constant 0.000000e+00 : f32
    %234 = vector.broadcast %cst_164 : f32 to vector<2x32xf32>
    %235 = arith.maximumf %233, %234 : vector<2x32xf32>
    %c0_165 = arith.constant 0 : index
    %c0_166 = arith.constant 0 : index
    %236 = vector.load %arg9[%c0_165, %c0_166] : memref<32x256xf32, #tpu.memory_space<vmem>>, vector<32x256xf32>
    %cst_167 = arith.constant dense<0.000000e+00> : vector<2x256xf32>
    %237 = tpu.matmul %227, %236, %cst_167 {dimension_numbers = #tpu.dot_dimension_numbers<[1], [0], [0], [1], [0, 0, 1, 1], [], []>} : vector<2x32xf32>, vector<32x256xf32>, vector<2x256xf32> -> vector<2x256xf32>
    %cst_168 = arith.constant 9.99999974E-6 : f32
    %238 = vector.broadcast %cst_168 : f32 to vector<2x32xf32>
    %239 = arith.addf %235, %238 : vector<2x32xf32>
    %240 = math.rsqrt %239 : vector<2x32xf32>
    %c0_169 = arith.constant 0 : index
    %c0_170 = arith.constant 0 : index
    %241 = vector.load %arg9[%c0_169, %c0_170] : memref<32x256xf32, #tpu.memory_space<vmem>>, vector<32x256xf32>
    %cst_171 = arith.constant dense<0.000000e+00> : vector<2x256xf32>
    %242 = tpu.matmul %240, %241, %cst_171 {dimension_numbers = #tpu.dot_dimension_numbers<[1], [0], [0], [1], [0, 0, 1, 1], [], []>} : vector<2x32xf32>, vector<32x256xf32>, vector<2x256xf32> -> vector<2x256xf32>
    %c2_172 = arith.constant 2 : index
    %c0_173 = arith.constant 0 : index
    %243 = vector.load %arg6[%c2_172, %c0_173] : memref<3x256xf32, #tpu.memory_space<vmem>>, vector<1x256xf32>
    %c2_174 = arith.constant 2 : index
    %c0_175 = arith.constant 0 : index
    %244 = vector.load %arg7[%c2_174, %c0_175] : memref<3x256xf32, #tpu.memory_space<vmem>>, vector<1x256xf32>
    %245 = vector.extract_strided_slice %237 {offsets = [0, 0], sizes = [1, 256], strides = [1, 1]} : vector<2x256xf32> to vector<1x256xf32>
    %246 = vector.broadcast %245 : vector<1x256xf32> to vector<16x256xf32>
    %247 = arith.subf %210, %246 : vector<16x256xf32>
    %248 = vector.extract_strided_slice %242 {offsets = [0, 0], sizes = [1, 256], strides = [1, 1]} : vector<2x256xf32> to vector<1x256xf32>
    %249 = vector.broadcast %248 : vector<1x256xf32> to vector<16x256xf32>
    %250 = arith.mulf %247, %249 : vector<16x256xf32>
    %251 = vector.broadcast %243 : vector<1x256xf32> to vector<16x256xf32>
    %252 = arith.mulf %250, %251 : vector<16x256xf32>
    %253 = vector.broadcast %244 : vector<1x256xf32> to vector<16x256xf32>
    %254 = arith.addf %252, %253 : vector<16x256xf32>
    %cst_176 = arith.constant dense<0xFF800000> : vector<256xf32>
    %255 = vector.multi_reduction <maximumf>, %254, %cst_176 [0] : vector<16x256xf32> to vector<256xf32>
    %256 = vector.shape_cast %255 : vector<256xf32> to vector<1x256xf32>
    %257 = vector.extract_strided_slice %237 {offsets = [1, 0], sizes = [1, 256], strides = [1, 1]} : vector<2x256xf32> to vector<1x256xf32>
    %258 = vector.broadcast %257 : vector<1x256xf32> to vector<16x256xf32>
    %259 = arith.subf %211, %258 : vector<16x256xf32>
    %260 = vector.extract_strided_slice %242 {offsets = [1, 0], sizes = [1, 256], strides = [1, 1]} : vector<2x256xf32> to vector<1x256xf32>
    %261 = vector.broadcast %260 : vector<1x256xf32> to vector<16x256xf32>
    %262 = arith.mulf %259, %261 : vector<16x256xf32>
    %263 = vector.broadcast %243 : vector<1x256xf32> to vector<16x256xf32>
    %264 = arith.mulf %262, %263 : vector<16x256xf32>
    %265 = vector.broadcast %244 : vector<1x256xf32> to vector<16x256xf32>
    %266 = arith.addf %264, %265 : vector<16x256xf32>
    %cst_177 = arith.constant dense<0xFF800000> : vector<256xf32>
    %267 = vector.multi_reduction <maximumf>, %266, %cst_177 [0] : vector<16x256xf32> to vector<256xf32>
    %268 = vector.shape_cast %267 : vector<256xf32> to vector<1x256xf32>
    %269 = tpu.concatenate %256, %268 in 0 : vector<1x256xf32>, vector<1x256xf32> -> vector<2x256xf32>
    %270 = tpu.concatenate %93, %179, %269 in 1 : vector<2x256xf32>, vector<2x256xf32>, vector<2x256xf32> -> vector<2x768xf32>
    %271 = arith.truncf %270 : vector<2x768xf32> to vector<2x768xbf16>
    %c0_178 = arith.constant 0 : index
    %c0_179 = arith.constant 0 : index
    %272 = vector.load %arg12[%c0_178, %c0_179] : memref<768x512xbf16, #tpu.memory_space<vmem>>, vector<768x512xbf16>
    %cst_180 = arith.constant dense<0.000000e+00> : vector<2x512xf32>
    %273 = tpu.matmul %271, %272, %cst_180 {dimension_numbers = #tpu.dot_dimension_numbers<[1], [0], [0], [1], [0, 0, 1, 1], [], []>} : vector<2x768xbf16>, vector<768x512xbf16>, vector<2x512xf32> -> vector<2x512xf32>
    %c0_181 = arith.constant 0 : index
    %c0_182 = arith.constant 0 : index
    %274 = vector.load %arg13[%c0_181, %c0_182] : memref<1x512xf32, #tpu.memory_space<vmem>>, vector<1x512xf32>
    %275 = vector.broadcast %274 : vector<1x512xf32> to vector<2x512xf32>
    %276 = arith.addf %273, %275 : vector<2x512xf32>
    %c0_183 = arith.constant 0 : index
    %c0_184 = arith.constant 0 : index
    %277 = vector.load %arg10[%c0_183, %c0_184] : memref<512x32xf32, #tpu.memory_space<vmem>>, vector<512x32xf32>
    %cst_185 = arith.constant dense<0.000000e+00> : vector<2x32xf32>
    %278 = tpu.matmul %276, %277, %cst_185 {dimension_numbers = #tpu.dot_dimension_numbers<[1], [0], [0], [1], [0, 0, 1, 1], [], []>} : vector<2x512xf32>, vector<512x32xf32>, vector<2x32xf32> -> vector<2x32xf32>
    %cst_186 = arith.constant 1.600000e+01 : f32
    %279 = vector.broadcast %cst_186 : f32 to vector<2x32xf32>
    %280 = arith.divf %278, %279 : vector<2x32xf32>
    %281 = arith.mulf %276, %276 : vector<2x512xf32>
    %c0_187 = arith.constant 0 : index
    %c0_188 = arith.constant 0 : index
    %282 = vector.load %arg10[%c0_187, %c0_188] : memref<512x32xf32, #tpu.memory_space<vmem>>, vector<512x32xf32>
    %cst_189 = arith.constant dense<0.000000e+00> : vector<2x32xf32>
    %283 = tpu.matmul %281, %282, %cst_189 {dimension_numbers = #tpu.dot_dimension_numbers<[1], [0], [0], [1], [0, 0, 1, 1], [], []>} : vector<2x512xf32>, vector<512x32xf32>, vector<2x32xf32> -> vector<2x32xf32>
    %cst_190 = arith.constant 1.600000e+01 : f32
    %284 = vector.broadcast %cst_190 : f32 to vector<2x32xf32>
    %285 = arith.divf %283, %284 : vector<2x32xf32>
    %286 = arith.mulf %280, %280 : vector<2x32xf32>
    %287 = arith.subf %285, %286 : vector<2x32xf32>
    %cst_191 = arith.constant 0.000000e+00 : f32
    %288 = vector.broadcast %cst_191 : f32 to vector<2x32xf32>
    %289 = arith.maximumf %287, %288 : vector<2x32xf32>
    %c0_192 = arith.constant 0 : index
    %c0_193 = arith.constant 0 : index
    %290 = vector.load %arg11[%c0_192, %c0_193] : memref<32x512xf32, #tpu.memory_space<vmem>>, vector<32x512xf32>
    %cst_194 = arith.constant dense<0.000000e+00> : vector<2x512xf32>
    %291 = tpu.matmul %280, %290, %cst_194 {dimension_numbers = #tpu.dot_dimension_numbers<[1], [0], [0], [1], [0, 0, 1, 1], [], []>} : vector<2x32xf32>, vector<32x512xf32>, vector<2x512xf32> -> vector<2x512xf32>
    %cst_195 = arith.constant 9.99999974E-6 : f32
    %292 = vector.broadcast %cst_195 : f32 to vector<2x32xf32>
    %293 = arith.addf %289, %292 : vector<2x32xf32>
    %294 = math.rsqrt %293 : vector<2x32xf32>
    %c0_196 = arith.constant 0 : index
    %c0_197 = arith.constant 0 : index
    %295 = vector.load %arg11[%c0_196, %c0_197] : memref<32x512xf32, #tpu.memory_space<vmem>>, vector<32x512xf32>
    %cst_198 = arith.constant dense<0.000000e+00> : vector<2x512xf32>
    %296 = tpu.matmul %294, %295, %cst_198 {dimension_numbers = #tpu.dot_dimension_numbers<[1], [0], [0], [1], [0, 0, 1, 1], [], []>} : vector<2x32xf32>, vector<32x512xf32>, vector<2x512xf32> -> vector<2x512xf32>
    %297 = arith.subf %276, %291 : vector<2x512xf32>
    %298 = arith.mulf %297, %296 : vector<2x512xf32>
    %c0_199 = arith.constant 0 : index
    %c0_200 = arith.constant 0 : index
    %299 = vector.load %arg14[%c0_199, %c0_200] : memref<1x512xf32, #tpu.memory_space<vmem>>, vector<1x512xf32>
    %300 = vector.broadcast %299 : vector<1x512xf32> to vector<2x512xf32>
    %301 = arith.mulf %298, %300 : vector<2x512xf32>
    %c0_201 = arith.constant 0 : index
    %c0_202 = arith.constant 0 : index
    %302 = vector.load %arg15[%c0_201, %c0_202] : memref<1x512xf32, #tpu.memory_space<vmem>>, vector<1x512xf32>
    %303 = vector.broadcast %302 : vector<1x512xf32> to vector<2x512xf32>
    %304 = arith.addf %301, %303 : vector<2x512xf32>
    %cst_203 = arith.constant 0.000000e+00 : f32
    %305 = vector.broadcast %cst_203 : f32 to vector<2x512xf32>
    %306 = arith.maximumf %304, %305 : vector<2x512xf32>
    %307 = arith.truncf %306 : vector<2x512xf32> to vector<2x512xbf16>
    %c0_204 = arith.constant 0 : index
    %c0_205 = arith.constant 0 : index
    %308 = vector.load %arg16[%c0_204, %c0_205] : memref<512x128xbf16, #tpu.memory_space<vmem>>, vector<512x128xbf16>
    %cst_206 = arith.constant dense<0.000000e+00> : vector<2x128xf32>
    %309 = tpu.matmul %307, %308, %cst_206 {dimension_numbers = #tpu.dot_dimension_numbers<[1], [0], [0], [1], [0, 0, 1, 1], [], []>} : vector<2x512xbf16>, vector<512x128xbf16>, vector<2x128xf32> -> vector<2x128xf32>
    %c0_207 = arith.constant 0 : index
    %c0_208 = arith.constant 0 : index
    %310 = vector.load %arg17[%c0_207, %c0_208] : memref<1x128xf32, #tpu.memory_space<vmem>>, vector<1x128xf32>
    %311 = vector.broadcast %310 : vector<1x128xf32> to vector<2x128xf32>
    %312 = arith.addf %309, %311 : vector<2x128xf32>
    %c0_209 = arith.constant 0 : index
    %c0_210 = arith.constant 0 : index
    %313 = vector.load %arg18[%c0_209, %c0_210] : memref<2x128xf32, #tpu.memory_space<vmem>>, vector<2x128xf32>
    tpu.vector_store %arg18[%c0_209, %c0_210], %312 {strides = array<i32>} : memref<2x128xf32, #tpu.memory_space<vmem>>, vector<2x128xf32>,
    return
  }
  func.func @transform_0(%arg0: i32) -> (i32, i32, i32) {
    %c0_i32 = arith.constant 0 : i32
    %c0_i32_0 = arith.constant 0 : i32
    %c0_i32_1 = arith.constant 0 : i32
    return %arg0, %c0_i32, %c0_i32_0 : i32, i32, i32
  }
  func.func @transform_1(%arg0: i32) -> (i32, i32) {
    %c0_i32 = arith.constant 0 : i32
    %c0_i32_0 = arith.constant 0 : i32
    %c0_i32_1 = arith.constant 0 : i32
    return %c0_i32, %c0_i32_0 : i32, i32
  }
  func.func @transform_2(%arg0: i32) -> (i32, i32) {
    %c0_i32 = arith.constant 0 : i32
    %c0_i32_0 = arith.constant 0 : i32
    %c0_i32_1 = arith.constant 0 : i32
    return %c0_i32, %c0_i32_0 : i32, i32
  }
  func.func @transform_3(%arg0: i32) -> (i32, i32) {
    %c0_i32 = arith.constant 0 : i32
    %c0_i32_0 = arith.constant 0 : i32
    %c0_i32_1 = arith.constant 0 : i32
    return %c0_i32, %c0_i32_0 : i32, i32
  }
  func.func @transform_4(%arg0: i32) -> (i32, i32) {
    %c0_i32 = arith.constant 0 : i32
    %c0_i32_0 = arith.constant 0 : i32
    %c0_i32_1 = arith.constant 0 : i32
    return %c0_i32, %c0_i32_0 : i32, i32
  }
  func.func @transform_5(%arg0: i32) -> (i32, i32) {
    %c0_i32 = arith.constant 0 : i32
    %c0_i32_0 = arith.constant 0 : i32
    %c0_i32_1 = arith.constant 0 : i32
    return %c0_i32, %c0_i32_0 : i32, i32
  }
  func.func @transform_6(%arg0: i32) -> (i32, i32) {
    %c0_i32 = arith.constant 0 : i32
    %c0_i32_0 = arith.constant 0 : i32
    %c0_i32_1 = arith.constant 0 : i32
    return %c0_i32, %c0_i32_0 : i32, i32
  }
  func.func @transform_7(%arg0: i32) -> (i32, i32) {
    %c0_i32 = arith.constant 0 : i32
    %c0_i32_0 = arith.constant 0 : i32
    %c0_i32_1 = arith.constant 0 : i32
    return %c0_i32, %c0_i32_0 : i32, i32
  }
  func.func @transform_8(%arg0: i32) -> (i32, i32) {
    %c0_i32 = arith.constant 0 : i32
    %c0_i32_0 = arith.constant 0 : i32
    %c0_i32_1 = arith.constant 0 : i32
    return %c0_i32, %c0_i32_0 : i32, i32
  }
  func.func @transform_9(%arg0: i32) -> (i32, i32) {
    %c0_i32 = arith.constant 0 : i32
    %c0_i32_0 = arith.constant 0 : i32
    %c0_i32_1 = arith.constant 0 : i32
    return %c0_i32, %c0_i32_0 : i32, i32
  }
  func.func @transform_10(%arg0: i32) -> (i32, i32) {
    %c0_i32 = arith.constant 0 : i32
    %c0_i32_0 = arith.constant 0 : i32
    %c0_i32_1 = arith.constant 0 : i32
    return %c0_i32, %c0_i32_0 : i32, i32
  }
  func.func @transform_11(%arg0: i32) -> (i32, i32) {
    %c0_i32 = arith.constant 0 : i32
    %c0_i32_0 = arith.constant 0 : i32
    %c0_i32_1 = arith.constant 0 : i32
    return %c0_i32, %c0_i32_0 : i32, i32
  }
  func.func @transform_12(%arg0: i32) -> (i32, i32) {
    %c0_i32 = arith.constant 0 : i32
    %c0_i32_0 = arith.constant 0 : i32
    %c0_i32_1 = arith.constant 0 : i32
    return %c0_i32, %c0_i32_0 : i32, i32
  }
  func.func @transform_13(%arg0: i32) -> (i32, i32) {
    %c0_i32 = arith.constant 0 : i32
    %c0_i32_0 = arith.constant 0 : i32
    %c0_i32_1 = arith.constant 0 : i32
    return %c0_i32, %c0_i32_0 : i32, i32
  }
  func.func @transform_14(%arg0: i32) -> (i32, i32) {
    %c0_i32 = arith.constant 0 : i32
    %c0_i32_0 = arith.constant 0 : i32
    %c0_i32_1 = arith.constant 0 : i32
    return %c0_i32, %c0_i32_0 : i32, i32
  }
  func.func @transform_15(%arg0: i32) -> (i32, i32) {
    %c0_i32 = arith.constant 0 : i32
    %c0_i32_0 = arith.constant 0 : i32
    %c0_i32_1 = arith.constant 0 : i32
    return %c0_i32, %c0_i32_0 : i32, i32
  }
  func.func @transform_16(%arg0: i32) -> (i32, i32) {
    %c0_i32 = arith.constant 0 : i32
    %c0_i32_0 = arith.constant 0 : i32
    %c0_i32_1 = arith.constant 0 : i32
    return %c0_i32, %c0_i32_0 : i32, i32
  }
  func.func @transform_17(%arg0: i32) -> (i32, i32) {
    %c0_i32 = arith.constant 0 : i32
    %c0_i32_0 = arith.constant 0 : i32
    return %arg0, %c0_i32 : i32, i32
  }
}

</mosaic_0001>

<bundles_post_ra>
// kernel: tpu_custom_call.1
= control target key start
LH: loop header
LB: loop body
LE: loop exit
PB: predicated region body
PF: predicated region fallthrough
CT: control target
= control target key end

     0   :  { %s8144_s0 = inlined_call_operand.hbm [shape: bf16[2,16,32], index: 0, kind: input, shape index: {}]   ;;  %s8145_s1 = inlined_call_operand.vmem [shape: bf16[96,256], index: 1, kind: input, shape index: {}]   ;;  %s8146_s2 = inlined_call_operand.vmem [shape: bf16[128,256], index: 2, kind: input, shape index: {}]   ;;  %s8147_s3 = inlined_call_operand.vmem [shape: bf16[160,256], index: 3, kind: input, shape index: {}]   ;;  %s8148_s4 = inlined_call_operand.hbm [shape: f32[3,256], index: 4, kind: input, shape index: {}]   ;;  %s8149_s5 = inlined_call_operand.hbm [shape: f32[3,256], index: 5, kind: input, shape index: {}]   ;;  %s8150_s6 = inlined_call_operand.hbm [shape: f32[3,256], index: 6, kind: input, shape index: {}]   ;;  %s8151_s7 = inlined_call_operand.vmem [shape: f32[256,32], index: 7, kind: input, shape index: {}]   ;;  %s8152_s8 = inlined_call_operand.vmem [shape: f32[32,256], index: 8, kind: input, shape index: {}]   ;;  %s8153_s9 = inlined_call_operand.vmem [shape: f32[512,32], index: 9, kind: input, shape index: {}]   ;;  %s8154_s10 = inlined_call_operand.vmem [shape: f32[32,512], index: 10, kind: input, shape index: {}]   ;;  %s8155_s11 = inlined_call_operand.hbm [shape: bf16[768,512], index: 11, kind: input, shape index: {}]   ;;  %s8156_s12 = inlined_call_operand.vmem [shape: f32[1,512], index: 12, kind: input, shape index: {}]   ;;  %s8157_s13 = inlined_call_operand.vmem [shape: f32[1,512], index: 13, kind: input, shape index: {}]   ;;  %s8158_s14 = inlined_call_operand.hbm [shape: f32[1,512], index: 14, kind: input, shape index: {}]   ;;  %s8159_s15 = inlined_call_operand.vmem [shape: bf16[512,128], index: 15, kind: input, shape index: {}]   ;;  %s8160_s16 = inlined_call_operand.vmem [shape: f32[1,128], index: 16, kind: input, shape index: {}]   ;;  %s8161_s17 = inlined_call_operand.hbm [shape: f32[2,128], index: 17, kind: output, shape index: {}]  }
   0x1   :  { %8182 = sst [smem:[#allocation36_spill]] %s8144_s0 }
   0x2   :  { %8183 = sst [smem:[#allocation37_spill]] %s8145_s1 }
   0x3   :  { %22 = vsyncpa [#allocation4], 0 }
   0x4   :  { %23 = vsyncpa [#allocation7], 0 }
   0x5   :  { %24 = vsyncpa [#allocation10], 0 }
   0x6   :  { %25 = vsyncpa [#allocation13], 0  ;;  %s51_s26 = sshll.u32 %s8148_s4, 4  ;;  %s52_s26 = int_to_ptr.hbm [resolvable:$true] %s51_s26 }
   0x7   :  { %26 = vsyncpa [#allocation5], 0  ;;  %s6046_s27 = smov [#allocation6]   ;;  %s73_s30 = sshll.u32 %s8150_s6, 4  ;;  %s74_s30 = int_to_ptr.hbm [resolvable:$true] %s73_s30 }
   0x8   :  { %s53_s28 = sshll.u32 %s6046_s27, 4  ;;  %s6047_s18 = smov [#allocation9]   ;;  %s54_s28 = int_to_ptr.vmem [resolvable:$true] %s53_s28 }
   0x9   :  { %56 = dma.hbm_to_vmem [thread:$0]  %s52_s26, 128, %s54_s28, [#allocation7]  }
   0xa   :  { %s75_s19 = sshll.u32 %s6047_s18, 4  ;;  %s8184_s21 = sld [smem:[#allocation36_spill]]  ;;  %s76_s19 = int_to_ptr.vmem [resolvable:$true] %s75_s19 }
   0xb   :  { %78 = dma.hbm_to_vmem [thread:$0]  %s74_s30, 128, %s76_s19, [#allocation10]  }
   0xc   :  { %s6048_s4 = smov [#allocation3]   ;;  %s62_s27 = sshll.u32 %s8149_s5, 4  ;;  %s63_s27 = int_to_ptr.hbm [resolvable:$true] %s62_s27 }
   0xd   :  { %s33_s23 = sshll.u32 %s6048_s4, 4  ;;  %s6049_s29 = smov 64   ;;  %s34_s23 = int_to_ptr.vmem [resolvable:$true] %s33_s23 }
   0xe   :  { %s6050_s6 = smov 4   ;;  %s6051_s26 = smov [#allocation8]  }
   0xf   :  { %s64_s28 = sshll.u32 %s6051_s26, 4  ;;  %s91_s1 = sshll.u32 %s8155_s11, 4  ;;  %s65_s28 = int_to_ptr.vmem [resolvable:$true] %s64_s28  ;;  %s92_s1 = int_to_ptr.hbm [resolvable:$true] %s91_s1 }
  0x10   :  { %s31_s22 = sshll.u32 %s8184_s21, 4  ;;  %s6052_s30 = smov [#allocation11]   ;;  %s32_s22 = int_to_ptr.hbm [resolvable:$true] %s31_s22 }
  0x11   :  { %39 = dma.hbm_to_vmem [thread:$0]  %s32_s22, 256, %s34_s23, [#allocation4], %s6049_s29, %s6049_s29, %s6050_s6  }
  0x12   :  { %67 = dma.hbm_to_vmem [thread:$0]  %s63_s27, 128, %s65_s28, [#allocation7]  }
  0x13   :  { %s93_s19 = sshll.u32 %s6052_s30, 4  ;;  %s109_s21 = sshll.u32 %s8158_s14, 4  ;;  %s94_s19 = int_to_ptr.vmem [resolvable:$true] %s93_s19  ;;  %s110_s21 = int_to_ptr.hbm [resolvable:$true] %s109_s21 }
  0x14   :  { %s6053_s4 = smov 256   ;;  %s6054_s24 = smov 16  }
  0x15   :  { %99 = dma.hbm_to_vmem [thread:$0]  %s92_s1, 24576, %s94_s19, [#allocation10], %s6053_s4, %s6053_s4, %s6054_s24  }
  0x16   :  { %s6055_s22 = smov [#allocation12]  }
  0x17   :  { %s111_s23 = sshll.u32 %s6055_s22, 4  ;;  %s112_s23 = int_to_ptr.vmem [resolvable:$true] %s111_s23 }
  0x18   :  { %114 = dma.hbm_to_vmem [thread:$0]  %s110_s21, 64, %s112_s23, [#allocation13]  }
  0x19   :  { %6036 = dma.done.wait [#allocation4], 256  }
  0x1a   :  { %6037 = vsyncadd [#allocation4], 4294967040 }
  0x1b   :  { %6038 = dma.done.wait [#allocation7], 256  }
  0x1c   :  { %6039 = vsyncadd [#allocation7], 4294967040 }
  0x1d   :  { %6040 = dma.done.wait [#allocation10], 24704  }
  0x1e   :  { %6041 = vsyncadd [#allocation10], 4294942592 }
  0x1f   :  { %6042 = dma.done.wait [#allocation13], 64  }
  0x20   :  { %6043 = vsyncadd [#allocation13], 4294967232  ;;  %vm147_vm0 = vcmask 254976   ;;  %v6056_v0 = vmov 0   ;;  %vm144_vm1 = vcmask 257024   ;;  %vm156_vm2 = vcmask 1040384  }
  0x21   :  { %148 = vst.msk [vmem:[#allocation2 + $0x8] sm:$0x3] %vm147_vm0, %v6056_v0  ;;  %vm157_vm3 = vcmask 1044484   ;;  %vm167_vm4 = vcmask 257025   ;;  %v153_v1 = vld [vmem:[#allocation3 + $0x4] sm:$0xf] }
  0x22   :  { %151 = vst.msk [vmem:[#allocation2 + $0x14] sm:$0x3] %vm147_vm0, %v6056_v0  ;;  %v152_v2 = vld [vmem:[#allocation3] sm:$0xf]  ;;  %v174_v3 = vld [vmem:[#allocation3 + $0xc] sm:$0xf]  ;;  %vm158_vm6 = vmor %vm156_vm2, %vm157_vm3 }
  0x23   :  { %145 = vst.msk [vmem:[#allocation2] sm:$0xf] %vm144_vm1, %v6056_v0  ;;  %v161_v4 = vrot.slane %v153_v1, 7  ;;  %v159_v5 = vrot.slane %v152_v2, 7  ;;  %v179_v6 = vrot.slane %v174_v3, 7  ;;  %vm170_vm5 = vcmask 253952  }
  0x24   :  { %146 = vst.msk [vmem:[#allocation2 + $0x4] sm:$0xf] %vm144_vm1, %v6056_v0  ;;  %v173_v7 = vld [vmem:[#allocation3 + $0x8] sm:$0xf]  ;;  %s6057_s11 = smov 32   ;;  %vm239_vm8 = vcmask 1046528  }
  0x25   :  { %149 = vst.msk [vmem:[#allocation2 + $0xc] sm:$0xf] %vm144_vm1, %v6056_v0  ;;  %v177_v8 = vrot.slane %v173_v7, 7  ;;  %v163_v9 = vrot.slane %v161_v4, 4  ;;  %v160_v10 = vrot.slane %v159_v5, 4  ;;  %v181_v11 = vrot.slane %v179_v6, 4 }
  0x26   :  { %150 = vst.msk [vmem:[#allocation2 + $0x10] sm:$0xf] %vm144_vm1, %v6056_v0  ;;  %vm217_vm7 = vsmask.f32 7424  ;;  %vm855_vm9 = vsmask.f32 6400 }
  0x27   :  { %168 = vst.msk [vmem:[#allocation2] sm:$0xe] %vm167_vm4, %v159_v5  ;;  %v178_v12 = vrot.slane %v177_v8, 4  ;;  %v162_v13 = vsel %vm158_vm6, %v160_v10, %v161_v4  ;;  %s6058_s14 = smov 96   ;;  %s8189_s6 = sld [smem:[#allocation37_spill]]  ;;  %vm247_vm10 = vcmask 261120  }
  0x28   :  { %186 = vst.msk [vmem:[#allocation2 + $0xc] sm:$0xe] %vm167_vm4, %v177_v8  ;;  %vm253_vm11 = vcmask 523264   ;;  %vm397_vm12 = vcmask 785408   ;;  %vm913_vm13 = vsmask.f32 256 }
  0x29   :  { %171 = vst.msk [vmem:[#allocation2 + $0x8] sm:$0x1] %vm170_vm5, %v163_v9  ;;  %v180_v14 = vsel %vm158_vm6, %v178_v12, %v179_v6  ;;  %vm925_vm14 = vmand %vm156_vm2, %vm913_vm13  ;;  %s6062_s19 = smov [#allocation14]  }
  0x2a   :  { %169 = vst.msk [vmem:[#allocation2 + $0x4] sm:$0xf] %vm144_vm1, %v162_v13  ;;  %s4377_s20 = sshll.u32 %s6062_s19, 4  ;;  %s4378_s20 = int_to_ptr.vmem [resolvable:$true] %s4377_s20 }
  0x2b   :  { %188 = vst.msk [vmem:[#allocation2 + $0x14] sm:$0x1] %vm170_vm5, %v181_v11  ;;  %vm1537_vm5 = vcmask 1045504  }
  0x2c   :  { %187 = vst.msk [vmem:[#allocation2 + $0x10] sm:$0xf] %vm144_vm1, %v180_v14 }
  0x2e   :  { %v204_v15 = vld [vmem:[#allocation2] sm:$0xe] }
  0x2f   :  { %v215_v17 = vunpack.c.l.b16 %v204_v15  ;;  %v261_v19 = vld [vmem:[#allocation2 + $0xc] sm:$0xe] }
  0x30   :  { %v203_v16 = vld [vmem:[#allocation2 + $0x8] sm:$0x1]  ;;  %v272_v28 = vunpack.c.l.b16 %v261_v19 }
  0x31   :  { %v205_v18 = vld [vmem:[#allocation2 + $0x8] sm:$0x3]  ;;  %v211_v20 = vunpack.c.l.b16 %v203_v16  ;;  %v6182_v21 = vld [vmem:[#allocation2] sm:$0xff]  }
  0x32   :  { %8185 = vst [vmem:[#allocation20_spill] sm:$0xff] %v6182_v21  ;;  %v8164_v22 = vunpack.c.h.b16 %v6182_v21  ;;  %v260_v23 = vld [vmem:[#allocation2 + $0x14] sm:$0x1]  ;;  %v237_v25 = vunpack.c.l.b16 %v205_v18  ;;  %v848_v56 = vshll.u32 %v6182_v21, 16  ;;  %v846_v62 = vshrl.u32 %v6182_v21, 16 }
  0x33   :  { %v6185_v24 = vpack.c.b16 %v211_v20, %v211_v20  ;;  %v6187_v26 = vld [vmem:[#allocation2 + $0xc] sm:$0xff]   ;;  %v268_v27 = vunpack.c.l.b16 %v260_v23  ;;  %v262_v40 = vld [vmem:[#allocation2 + $0x14] sm:$0x3] }
  0x34   :  { %8186 = vst [vmem:[#allocation21_spill] sm:$0xff] %v6187_v26  ;;  %v6191_v29 = vpack.c.b16 %v8164_v22, %v215_v17  ;;  %v8163_v30 = vunpack.c.h.b16 %v6187_v26  ;;  %v6201_v36 = vpack.c.b16 %v237_v25, %v237_v25  ;;  %v293_v46 = vunpack.c.l.b16 %v262_v40  ;;  %v5524_v40 = vld [vmem:[%s8189_s6 + $0x44] sm:$0xf] }
  0x35   :  { %v230_v31 = vshrl.u32 %v6185_v24, 16  ;;  %v226_v32 = vshll.u32 %v6185_v24, 16  ;;  %v6198_v35 = vpack.c.b16 %v268_v27, %v268_v27  ;;  %v883_v54 = vshll.u32 %v6187_v26, 16  ;;  %v4434_v27 = vld [vmem:[%s8189_s6 + $0x50] sm:$0xf] }
  0x36   :  { %v219_v33 = vshrl.u32 %v6191_v29, 16  ;;  %v221_v34 = vshll.u32 %v6191_v29, 16  ;;  %8187 = vst [vmem:[#allocation22_spill] sm:$0xff] %v6201_v36  ;;  %v6205_v37 = vpack.c.b16 %v8163_v30, %v272_v28  ;;  %v241_v45 = vrot.slane %v6201_v36, 1  ;;  %v5527_v28 = vld [vmem:[%s8189_s6 + $0x54] sm:$0xf0] }
  0x37   :  { %234 = vrot.lane.b32.xlu1 %v230_v31, %s6057_s11  ;;  %v228_v39 = vrot.slane %v226_v32, 1  ;;  %v282_v41 = vshll.u32 %v6198_v35, 16  ;;  %v8165_v51 = vrot.slane %v6191_v29, 1  ;;  %v6215_v52 = vpack.c.b16 %v293_v46, %v293_v46  ;;  %v5526_v31 = vld [vmem:[%s8189_s6 + $0x54] sm:$0xf] }
  0x38   :  { %v223_v38 = vrot.slane %v221_v34, 1  ;;  %v275_v42 = vshrl.u32 %v6205_v37, 16  ;;  %v277_v43 = vshll.u32 %v6205_v37, 16  ;;  %v295_v55 = vrot.slane %v6205_v37, 1  ;;  %v5522_v46 = vld [vmem:[%s8189_s6 + $0x34] sm:$0xf] }
  0x39   :  { %v284_v48 = vrot.slane %v282_v41, 1  ;;  %8188 = vst [vmem:[#allocation23_spill] sm:$0xff] %v6215_v52  ;;  %v242_v57 = vsel %vm239_vm8, %v8165_v51, %v241_v45  ;;  %v296_v58 = vrot.slane %v6215_v52, 1  ;;  %v881_v59 = vshrl.u32 %v6187_v26, 16 }
  0x3a   :  { %v224_v44 = vor.u32 %v223_v38, %v219_v33  ;;  %v279_v47 = vrot.slane %v277_v43, 1  ;;  %v885_v60 = vrot.slane %v883_v54, 1  ;;  %v850_v63 = vrot.slane %v848_v56, 1  ;;  %v4426_v38 = vld [vmem:[%s8189_s6 + $0x40] sm:$0xf] }
  0x3b   :  { %v297_v61 = vsel %vm239_vm8, %v295_v55, %v296_v58  ;;  %v860_v0 = vshrl.u32 %v6201_v36, 16  ;;  %v863_v1 = vshll.u32 %v6201_v36, 16  ;;  %v286_v3 = vshrl.u32 %v6198_v35, 16  ;;  %v5520_v54 = vld [vmem:[%s8189_s6 + $0x24] sm:$0xf] }
  0x3c   :  { %v229_v49 = vsel %vm217_vm7, %v224_v44, %v228_v39  ;;  %v280_v50 = vor.u32 %v279_v47, %v275_v42  ;;  %v886_v2 = vor.u32 %v885_v60, %v881_v59  ;;  %v897_v4 = vshll.u32 %v6215_v52, 16  ;;  %v4418_v44 = vld [vmem:[%s8189_s6 + $0x30] sm:$0xf]  ;;  %v5519_v60 = vld [vmem:[%s8189_s6 + $0x14] sm:$0xf0] }
  0x3d   :  { %232 = vrot.lane.b32.xlu0 %v229_v49, %s6057_s11  ;;  %v851_v5 = vor.u32 %v850_v63, %v846_v62  ;;  %v856_v6 = vrot.slane %v219_v33, 1  ;;  %v857_v7 = vrot.slane %v221_v34, 2  ;;  %v862_v8 = vrot.slane %v860_v0, 1  ;;  %v4436_v33 = vld [vmem:[%s8189_s6 + $0x58] sm:$0xf0] }
  0x3e   :  { %v285_v53 = vsel %vm217_vm7, %v280_v50, %v284_v48  ;;  %v865_v9 = vrot.slane %v863_v1, 2  ;;  %v894_v10 = vshrl.u32 %v6215_v52, 16  ;;  %v887_v11 = vsel %vm217_vm7, %v886_v2, %v284_v48  ;;  %v4420_v48 = vld [vmem:[%s8189_s6 + $0x38] sm:$0xf0]  ;;  %v4410_v50 = vld [vmem:[%s8189_s6 + $0x20] sm:$0xf] }
  0x3f   :  { %245 = vrot.lane.b32.xlu1 %v241_v45, %s6049_s29  ;;  %288 = vrot.lane.b32.xlu2 %v285_v53, %s6057_s11  ;;  %v899_v12 = vrot.slane %v897_v4, 2  ;;  %v852_v13 = vsel %vm217_vm7, %v851_v5, %v228_v39  ;;  %v890_v14 = vrot.slane %v275_v42, 1  ;;  %v891_v15 = vrot.slane %v277_v43, 2  ;;  %v5525_v39 = vld [vmem:[%s8189_s6 + $0x44] sm:$0xf0] }
  0x40   :  { %v858_v16 = vor.u32 %v857_v7, %v856_v6  ;;  %v866_v17 = vor.u32 %v865_v9, %v862_v8  ;;  %v896_v18 = vrot.slane %v894_v10, 1  ;;  %v4435_v32 = vor.u32 %v5527_v28, %v4434_v27  ;;  %v4428_v42 = vld [vmem:[%s8189_s6 + $0x48] sm:$0xf0]  ;;  %v5523_v45 = vld [vmem:[%s8189_s6 + $0x34] sm:$0xf0] }
  0x41   :  { %v892_v20 = vor.u32 %v891_v15, %v890_v14  ;;  %v4439_v34 = vor.u32 %v5526_v31, %v4436_v33  ;;  %v4427_v41 = vor.u32 %v5525_v39, %v4426_v38  ;;  %v4431_v43 = vor.u32 %v5524_v40, %v4428_v42  ;;  %v5521_v53 = vld [vmem:[%s8189_s6 + $0x24] sm:$0xf0]  ;;  %v4402_v59 = vld [vmem:[%s8189_s6 + $0x10] sm:$0xf]  ;;  %v4404_v63 = vld [vmem:[%s8189_s6 + $0x18] sm:$0xf0] }
  0x42   :  { %v900_v19 = vor.u32 %v899_v12, %v896_v18  ;;  %v867_v23 = vsel %vm855_vm9, %v858_v16, %v866_v17  ;;  %406 = vmatpush.bf16.msra.mxu0 %v4435_v32  ;;  %v4419_v47 = vor.u32 %v5523_v45, %v4418_v44  ;;  %v4423_v49 = vor.u32 %v5522_v46, %v4420_v48  ;;  %v4394_v1 = vld [vmem:[%s8189_s6] sm:$0xf]  ;;  %v5517_v2 = vld [vmem:[%s8189_s6 + $0x4] sm:$0xf0]  ;;  %v4396_v5 = vld [vmem:[%s8189_s6 + $0x8] sm:$0xf0] }
  0x43   :  { %425 = vmatpush.bf16.msra.mxu1 %v4439_v34  ;;  %v4411_v56 = vor.u32 %v5521_v53, %v4410_v50  ;;  %v4403_v62 = vor.u32 %v5519_v60, %v4402_v59  ;;  %v4395_v4 = vor.u32 %v5517_v2, %v4394_v1  ;;  %v8198_v52 = vrot.slane %v6191_v29, 1 }
  0x44   :  { %v901_v25 = vsel %vm855_vm9, %v892_v20, %v900_v19  ;;  %vm1478_vm9 = vcmask 1047553  }
  0x45   :  { %243 = vrot.lane.b32.xlu0 %v242_v57, %s6049_s29  ;;  %v4412_v57 = vld [vmem:[%s8189_s6 + $0x28] sm:$0xf0] }
  0x46   :  { %407 = vmatpush.bf16.msra.mxu0 %v4427_v41 }
  0x47   :  { %300 = vrot.lane.b32.xlu1 %v296_v58, %s6049_s29  ;;  %298 = vrot.lane.b32.xlu2 %v297_v61, %s6049_s29  ;;  %v4415_v58 = vor.u32 %v5520_v54, %v4412_v57  ;;  %v5518_v61 = vld [vmem:[%s8189_s6 + $0x14] sm:$0xf] }
  0x48   :  { %426 = vmatpush.bf16.msra.mxu1 %v4431_v43  ;;  %v4407_v0 = vor.u32 %v5518_v61, %v4404_v63 }
  0x4a   :  { %408 = vmatpush.bf16.msra.mxu0 %v4419_v47 }
  0x4c   :  { %427 = vmatpush.bf16.msra.mxu1 %v4423_v49 }
  0x4d   :  { %290 = vrot.lane.b32.xlu0 %v286_v3, %s6057_s11  ;;  %v5516_v3 = vld [vmem:[%s8189_s6 + $0x4] sm:$0xf]  ;;  %s4379_s6 = sshll.u32 %s8161_s17, 4  ;;  %s4380_s6 = int_to_ptr.hbm [resolvable:$true] %s4379_s6 }
  0x4e   :  { %409 = vmatpush.bf16.msra.mxu0 %v4411_v56  ;;  %v4399_v6 = vor.u32 %v5516_v3, %v4396_v5  ;;  %v6361_v3 = vld [vmem:[%s8151_s7 + $0x78] sm:$0xff]  ;;  %v6373_v5 = vld [vmem:[%s8151_s7 + $0x70] sm:$0xff] }
  0x4f   :  { %888 = vrot.lane.b32.xlu1 %v887_v11, %s6057_s11  ;;  %853 = vrot.lane.b32.xlu2 %v852_v13, %s6057_s11 }
  0x50   :  { %428 = vmatpush.bf16.msra.mxu1 %v4415_v58  ;;  %551 = vmatpush.msra.mxu2 %v6361_v3 }
  0x52   :  { %410 = vmatpush.bf16.msra.mxu0 %v4403_v62  ;;  %552 = vmatpush.msra.mxu2 %v6373_v5 }
  0x54   :  { %429 = vmatpush.bf16.msra.mxu1 %v4407_v0 }
  0x55   :  { %868 = vrot.lane.b32.xlu0 %v867_v23, %s6058_s14 }
  0x56   :  { %411 = vmatpush.bf16.msra.mxu0 %v4395_v4  ;;  %v6366_v4 = vld [vmem:[%s8151_s7 + $0xf8] sm:$0xff] }
  0x57   :  { %904 = vrot.lane.b32.xlu1 %v896_v18, %s6058_s14  ;;  %902 = vrot.lane.b32.xlu2 %v901_v25, %s6058_s14 }
  0x58   :  { %430 = vmatpush.bf16.msra.mxu1 %v4399_v6  ;;  %571 = vmatpush.msra.mxu3 %v6366_v4  ;;  %v6378_v6 = vld [vmem:[%s8151_s7 + $0xf0] sm:$0xff] }
  0x5a   :  { %599 = vmatpush.msrb.mxu0 %v6361_v3  ;;  %572 = vmatpush.msra.mxu3 %v6378_v6 }
  0x5c   :  { %619 = vmatpush.msrb.mxu1 %v6366_v4  ;;  %600 = vmatpush.msrb.mxu0 %v6373_v5 }
  0x5d   :  { %870 = vrot.lane.b32.xlu0 %v862_v8, %s6058_s14 }
  0x5e   :  { %620 = vmatpush.msrb.mxu1 %v6378_v6 }
  0x99   :  { %v289_v7 = vpop.permute.xlu2 %288 }
  0x9a   :  { %v304_v27 = vsel %vm247_vm10, %v6187_v26, %v289_v7  ;;  %v6389_v7 = vld [vmem:[%s8151_s7 + $0x68] sm:$0xff] }
  0x9b   :  { %553 = vmatpush.msra.mxu2 %v6389_v7  ;;  %601 = vmatpush.msrb.mxu0 %v6389_v7 }
  0xa1   :  { %v299_v9 = vpop.permute.xlu2 %298 }
  0xa2   :  { %v308_v32 = vsel %vm253_vm11, %v304_v27, %v299_v9  ;;  %v6485_v27 = vld [vmem:[%s8151_s7 + $0x30] sm:$0xff] }
  0xa3   :  { %v323_v41 = vshll.u32 %v308_v32, 16  ;;  %v321_v46 = vshrl.u32 %v308_v32, 16 }
  0xa5   :  { %v325_v47 = vrot.slane %v323_v41, 1  ;;  %v6511_v41 = vld [vmem:[%s8151_s7 + $0x20] sm:$0xff] }
  0xa7   :  { %v326_v54 = vor.u32 %v325_v47, %v321_v46  ;;  %v6534_v46 = vld [vmem:[%s8151_s7 + $0x98] sm:$0xff]  ;;  %v6543_v47 = vld [vmem:[%s8151_s7 + $0x10] sm:$0xff] }
  0xa9   :  { %v235_v8 = vpop.permute.xlu1 %234  ;;  %v6325_v18 = vpop.permute.xlu2 %853 }
  0xaa   :  { %v252_v12 = vsel %vm247_vm10, %v6185_v24, %v235_v8  ;;  %v6394_v8 = vld [vmem:[%s8151_s7 + $0xe8] sm:$0xff] }
  0xab   :  { %573 = vmatpush.msra.mxu3 %v6394_v8  ;;  %621 = vmatpush.msrb.mxu1 %v6394_v8 }
  0xaf   :  { %v233_v10 = vpop.permute.xlu0 %232 }
  0xb0   :  { %v250_v14 = vsel %vm247_vm10, %v6182_v21, %v233_v10  ;;  %v6406_v10 = vld [vmem:[%s8151_s7 + $0xe0] sm:$0xff] }
  0xb1   :  { %v246_v11 = vpop.permute.xlu1 %245  ;;  %v6337_v40 = vpop.permute.xlu2 %902  ;;  %574 = vmatpush.msra.mxu3 %v6406_v10  ;;  %622 = vmatpush.msrb.mxu1 %v6406_v10 }
  0xb2   :  { %v257_v13 = vsel %vm253_vm11, %v252_v12, %v246_v11  ;;  %8191 = vst [vmem:[#allocation25_spill] sm:$0xff] %v6337_v40  ;;  %v6415_v11 = vld [vmem:[%s8151_s7 + $0x58] sm:$0xff] }
  0xb3   :  { %v317_v17 = vshll.u32 %v257_v13, 16  ;;  %v6420_v12 = vld [vmem:[%s8151_s7 + $0xd8] sm:$0xff] }
  0xb4   :  { %575 = vmatpush.msra.mxu3 %v6420_v12  ;;  %623 = vmatpush.msrb.mxu1 %v6420_v12 }
  0xb5   :  { %v319_v28 = vrot.slane %v317_v17, 1  ;;  %v6448_v17 = vld [vmem:[%s8151_s7 + $0xc8] sm:$0xff] }
  0xb7   :  { %v6321_v15 = vpop.permute.xlu0 %243 }
  0xb8   :  { %v255_v16 = vsel %vm253_vm11, %v250_v14, %v6321_v15  ;;  %v6434_v14 = vld [vmem:[%s8151_s7 + $0xd0] sm:$0xff] }
  0xb9   :  { %v313_v19 = vshll.u32 %v255_v16, 16  ;;  %v301_v20 = vpop.permute.xlu1 %300  ;;  %v311_v23 = vshrl.u32 %v255_v16, 16  ;;  %576 = vmatpush.msra.mxu3 %v6434_v14  ;;  %v6443_v16 = vld [vmem:[%s8151_s7 + $0x48] sm:$0xff]  ;;  %624 = vmatpush.msrb.mxu1 %v6434_v14 }
  0xbb   :  { %v315_v25 = vrot.slane %v313_v19, 1  ;;  %577 = vmatpush.msra.mxu3 %v6448_v17  ;;  %v6457_v19 = vld [vmem:[%s8151_s7 + $0x40] sm:$0xff]  ;;  %625 = vmatpush.msrb.mxu1 %v6448_v17 }
  0xbd   :  { %v316_v31 = vor.u32 %v315_v25, %v311_v23  ;;  %v6471_v23 = vld [vmem:[%s8151_s7 + $0x38] sm:$0xff] }
  0xbe   :  { %v6476_v25 = vld [vmem:[%s8151_s7 + $0xb8] sm:$0xff] }
  0xbf   :  { %v291_v33 = vpop.permute.xlu0 %290  ;;  %v320_v34 = vsel %vm217_vm7, %v316_v31, %v319_v28  ;;  %v6490_v28 = vld [vmem:[%s8151_s7 + $0xb0] sm:$0xff]  ;;  %v331_v31 = vld [vmem:[#allocation6] ss:$4 sm:$0x3] }
  0xc0   :  { %4440 = vmatmul.msk.bf16.vlgmr.msra.gmra.mxu0 %vm397_vm12, %v320_v34  ;;  %4442 = vmatmul.msk.bf16.vlgmr.msra.gmra.mxu1 %vm397_vm12, %v320_v34  ;;  %v306_v38 = vsel %vm247_vm10, %v6198_v35, %v291_v33  ;;  %v6499_v34 = vld [vmem:[%s8151_s7 + $0x28] sm:$0xff] }
  0xc1   :  { %v6335_v39 = vpop.permute.xlu1 %888  ;;  %v310_v45 = vsel %vm253_vm11, %v306_v38, %v301_v20  ;;  %v6462_v20 = vld [vmem:[%s8151_s7 + $0xc0] sm:$0xff]  ;;  %v6504_v38 = vld [vmem:[%s8151_s7 + $0xa8] sm:$0xff] }
  0xc2   :  { %8190 = vst [vmem:[#allocation24_spill] sm:$0xff] %v6335_v39  ;;  %v907_v42 = vsel %vm247_vm10, %v6187_v26, %v6335_v39  ;;  %v327_v50 = vshll.u32 %v310_v45, 16  ;;  %578 = vmatpush.msra.mxu3 %v6462_v20  ;;  %626 = vmatpush.msrb.mxu1 %v6462_v20 }
  0xc3   :  { %v908_v43 = vsel %vm253_vm11, %v907_v42, %v299_v9  ;;  %v6401_v9 = vld [vmem:[%s8151_s7 + $0x60] sm:$0xff] }
  0xc4   :  { %v910_v44 = vsel %vm397_vm12, %v908_v43, %v6337_v40  ;;  %v329_v59 = vrot.slane %v327_v50, 1  ;;  %554 = vmatpush.msra.mxu2 %v6401_v9  ;;  %602 = vmatpush.msrb.mxu0 %v6401_v9  ;;  %v6518_v42 = vld [vmem:[%s8151_s7 + $0xa0] sm:$0xff]  ;;  %v6520_v43 = vperm.slane %v331_v31, 0 }
  0xc5   :  { %v914_v48 = vshrl.u32 %v910_v44, 16  ;;  %v917_v58 = vshll.u32 %v910_v44, 16  ;;  %579 = vmatpush.msra.mxu3 %v6476_v25  ;;  %627 = vmatpush.msrb.mxu1 %v6476_v25  ;;  %v6522_v44 = vperm.slane %v331_v31, 1 }
  0xc6   :  { %v330_v0 = vsel %vm217_vm7, %v326_v54, %v329_v59  ;;  %555 = vmatpush.msra.mxu2 %v6415_v11  ;;  %603 = vmatpush.msrb.mxu0 %v6415_v11  ;;  %v6559_v54 = vld [vmem:[%s8151_s7 + $0x8] sm:$0xff] }
  0xc7   :  { %v6346_v49 = vpop.permute.xlu0 %868  ;;  %v916_v57 = vrot.slane %v914_v48, 7  ;;  %580 = vmatpush.msra.mxu3 %v6490_v28  ;;  %628 = vmatpush.msrb.mxu1 %v6490_v28  ;;  %v6548_v48 = vld [vmem:[%s8151_s7 + $0x90] sm:$0xff] }
  0xc9   :  { %v905_v53 = vpop.permute.xlu1 %904  ;;  %v919_v62 = vor.u32 %v917_v58, %v916_v57  ;;  %581 = vmatpush.msra.mxu3 %v6504_v38  ;;  %629 = vmatpush.msrb.mxu1 %v6504_v38 }
  0xca   :  { %v912_v56 = vsel %vm397_vm12, %v310_v45, %v905_v53  ;;  %v6529_v45 = vld [vmem:[%s8151_s7 + $0x18] sm:$0xff] }
  0xcb   :  { %v920_v60 = vshll.u32 %v912_v56, 16  ;;  %582 = vmatpush.msra.mxu3 %v6518_v42  ;;  %630 = vmatpush.msrb.mxu1 %v6518_v42  ;;  %v6564_v56 = vld [vmem:[%s8151_s7 + $0x88] sm:$0xff] }
  0xcd   :  { %v6349_v61 = vsel %vm913_vm13, %v916_v57, %v920_v60  ;;  %583 = vmatpush.msra.mxu3 %v6534_v46  ;;  %631 = vmatpush.msrb.mxu1 %v6534_v46 }
  0xce   :  { %8192 = vst [vmem:[#allocation26_spill] sm:$0xff] %v6349_v61 }
  0xcf   :  { %v871_v63 = vpop.permute.xlu0 %870  ;;  %584 = vmatpush.msra.mxu3 %v6548_v48  ;;  %632 = vmatpush.msrb.mxu1 %v6548_v48 }
  0xd0   :  { %v879_v1 = vsel %vm397_vm12, %v257_v13, %v871_v63  ;;  %4441 = vmatmul.msk.bf16.gmra.mxu0 %vm397_vm12, %v330_v0  ;;  %4443 = vmatmul.msk.bf16.gmra.mxu1 %vm397_vm12, %v330_v0  ;;  %v6429_v13 = vld [vmem:[%s8151_s7 + $0x50] sm:$0xff]  ;;  %v6580_v63 = vld [vmem:[%s8151_s7 + $0x80] sm:$0xff] }
  0xd1   :  { %v6356_v2 = vsel %vm925_vm14, %v879_v1, %v919_v62  ;;  %556 = vmatpush.msra.mxu2 %v6429_v13  ;;  %604 = vmatpush.msrb.mxu0 %v6429_v13  ;;  %v6575_v62 = vld [vmem:[%s8151_s7] sm:$0xff] }
  0xd2   :  { %8193 = vst [vmem:[#allocation27_spill] sm:$0xff] %v6356_v2  ;;  %585 = vmatpush.msra.mxu3 %v6564_v56  ;;  %633 = vmatpush.msrb.mxu1 %v6564_v56 }
  0xd3   :  { %557 = vmatpush.msra.mxu2 %v6443_v16  ;;  %605 = vmatpush.msrb.mxu0 %v6443_v16 }
  0xd4   :  { %586 = vmatpush.msra.mxu3 %v6580_v63  ;;  %634 = vmatpush.msrb.mxu1 %v6580_v63 }
  0xd5   :  { %558 = vmatpush.msra.mxu2 %v6457_v19  ;;  %606 = vmatpush.msrb.mxu0 %v6457_v19 }
  0xd6   :  { %1221 = vmatpush.msra.mxu1 %v6366_v4 }
  0xd7   :  { %559 = vmatpush.msra.mxu2 %v6471_v23  ;;  %607 = vmatpush.msrb.mxu0 %v6471_v23 }
  0xd8   :  { %1222 = vmatpush.msra.mxu1 %v6378_v6 }
  0xd9   :  { %560 = vmatpush.msra.mxu2 %v6485_v27  ;;  %608 = vmatpush.msrb.mxu0 %v6485_v27 }
  0xda   :  { %1223 = vmatpush.msra.mxu1 %v6394_v8 }
  0xdb   :  { %561 = vmatpush.msra.mxu2 %v6499_v34  ;;  %609 = vmatpush.msrb.mxu0 %v6499_v34 }
  0xdc   :  { %1224 = vmatpush.msra.mxu1 %v6406_v10 }
  0xdd   :  { %562 = vmatpush.msra.mxu2 %v6511_v41  ;;  %610 = vmatpush.msrb.mxu0 %v6511_v41 }
  0xde   :  { %1225 = vmatpush.msra.mxu1 %v6420_v12 }
  0xdf   :  { %563 = vmatpush.msra.mxu2 %v6529_v45  ;;  %611 = vmatpush.msrb.mxu0 %v6529_v45 }
  0xe0   :  { %1226 = vmatpush.msra.mxu1 %v6434_v14 }
  0xe1   :  { %564 = vmatpush.msra.mxu2 %v6543_v47  ;;  %612 = vmatpush.msrb.mxu0 %v6543_v47 }
  0xe2   :  { %1227 = vmatpush.msra.mxu1 %v6448_v17 }
  0xe3   :  { %565 = vmatpush.msra.mxu2 %v6559_v54  ;;  %613 = vmatpush.msrb.mxu0 %v6559_v54 }
  0xe4   :  { %1228 = vmatpush.msra.mxu1 %v6462_v20 }
  0xe5   :  { %566 = vmatpush.msra.mxu2 %v6575_v62  ;;  %614 = vmatpush.msrb.mxu0 %v6575_v62 }
  0xe6   :  { %1229 = vmatpush.msra.mxu1 %v6476_v25 }
  0xe7   :  { %1201 = vmatpush.msra.mxu0 %v6361_v3 }
  0xe8   :  { %1230 = vmatpush.msra.mxu1 %v6490_v28 }
  0xe9   :  { %1202 = vmatpush.msra.mxu0 %v6373_v5 }
  0xea   :  { %1231 = vmatpush.msra.mxu1 %v6504_v38 }
  0xeb   :  { %1203 = vmatpush.msra.mxu0 %v6389_v7 }
  0xec   :  { %1232 = vmatpush.msra.mxu1 %v6518_v42 }
  0xed   :  { %1204 = vmatpush.msra.mxu0 %v6401_v9 }
  0xee   :  { %1233 = vmatpush.msra.mxu1 %v6534_v46 }
  0xef   :  { %1205 = vmatpush.msra.mxu0 %v6415_v11 }
  0xf0   :  { %1234 = vmatpush.msra.mxu1 %v6548_v48 }
  0xf1   :  { %1206 = vmatpush.msra.mxu0 %v6429_v13 }
  0xf2   :  { %1235 = vmatpush.msra.mxu1 %v6564_v56 }
  0xf3   :  { %1207 = vmatpush.msra.mxu0 %v6443_v16 }
  0xf4   :  { %1236 = vmatpush.msra.mxu1 %v6580_v63 }
  0xf5   :  { %1208 = vmatpush.msra.mxu0 %v6457_v19 }
  0xf7   :  { %1209 = vmatpush.msra.mxu0 %v6471_v23 }
  0xf9   :  { %1210 = vmatpush.msra.mxu0 %v6485_v27 }
  0xfb   :  { %1211 = vmatpush.msra.mxu0 %v6499_v34 }
  0xfd   :  { %1212 = vmatpush.msra.mxu0 %v6511_v41 }
  0xff   :  { %1213 = vmatpush.msra.mxu0 %v6529_v45 }
 0x101   :  { %1214 = vmatpush.msra.mxu0 %v6543_v47 }
 0x103   :  { %1215 = vmatpush.msra.mxu0 %v6559_v54 }
 0x105   :  { %1216 = vmatpush.msra.mxu0 %v6575_v62 }
 0x13d   :  { %v413_v32 = vpop.f32.mrf.mxu0  ;;  %v432_v33 = vpop.f32.mrf.mxu1 }
 0x13e   :  { %v414_v50 = vadd.f32 %v413_v32, %v6520_v43  ;;  %v433_v53 = vadd.f32 %v432_v33, %v6522_v44 }
 0x140   :  { %v6584_v0 = vmax.f32 %v414_v50, 0.0  ;;  %v6586_v1 = vmax.f32 %v433_v53, 0.0  ;;  %v1555_v53 = vrot.slane %v6198_v35, 1 }
 0x142   :  { %8194 = vst [vmem:[#allocation28_spill] sm:$0xff] %v6584_v0  ;;  %v482_v35 = vmul.f32 %v6586_v1, %v6586_v1  ;;  %v1556_v40 = vsel %vm239_vm8, %v295_v55, %v1555_v53 }
 0x143   :  { %8195 = vst [vmem:[#allocation29_spill] sm:$0xff] %v6586_v1  ;;  %1557 = vrot.lane.b32.xlu0 %v1556_v40, %s6049_s29 }
 0x145   :  { %v415_v57 = vpop.f32.mrf.mxu0  ;;  %v434_v58 = vpop.f32.mrf.mxu1 }
 0x146   :  { %v416_v59 = vadd.f32 %v415_v57, %v6520_v43  ;;  %v435_v60 = vadd.f32 %v434_v58, %v6522_v44  ;;  %v1530_v57 = vrot.slane %v6185_v24, 1  ;;  %v6607_v58 = vld [vmem:[%s8152_s8 + $0x30] sm:$0xff] }
 0x147   :  { %666 = vmatpush.msrb.mxu2 %v6607_v58 }
 0x148   :  { %v6588_v31 = vmax.f32 %v416_v59, 0.0  ;;  %v6590_v32 = vmax.f32 %v435_v60, 0.0  ;;  %v6612_v59 = vld [vmem:[%s8152_s8 + $0x38] sm:$0xff]  ;;  %v481_v60 = vmul.f32 %v6584_v0, %v6584_v0  ;;  %v1531_v39 = vsel %vm239_vm8, %v8198_v52, %v1530_v57 }
 0x149   :  { %686 = vmatpush.msrb.mxu3 %v6612_v59  ;;  %1532 = vrot.lane.b32.xlu2 %v1531_v39, %s6049_s29 }
 0x14a   :  { %8196 = vst [vmem:[#allocation30_spill] sm:$0xff] %v6588_v31  ;;  %v483_v33 = vmul.f32 %v6588_v31, %v6588_v31  ;;  %v484_v50 = vmul.f32 %v6590_v32, %v6590_v32  ;;  %v450_v24 = vadd.f32 %v6588_v31, %v6584_v0  ;;  %v457_v30 = vadd.f32 %v6590_v32, %v6586_v1 }
 0x14b   :  { %8197 = vst [vmem:[#allocation31_spill] sm:$0xff] %v6590_v32 }
 0x14c   :  { %v485_v31 = vadd.f32 %v483_v33, %v481_v60  ;;  %v492_v32 = vadd.f32 %v484_v50, %v482_v35  ;;  %v451_v37 = vrot.slane %v450_v24, 4  ;;  %v458_v55 = vrot.slane %v457_v30, 4 }
 0x14d   :  { %v418_v22 = vpop.f32.mrf.mxu0  ;;  %v437_v51 = vpop.f32.mrf.mxu1 }
 0x14e   :  { %v419_v29 = vadd.f32 %v418_v22, %v6520_v43  ;;  %v438_v52 = vadd.f32 %v437_v51, %v6522_v44  ;;  %v486_v53 = vrot.slane %v485_v31, 4  ;;  %v493_v40 = vrot.slane %v492_v32, 4 }
 0x14f   :  { %v452_v39 = vadd.f32 %v451_v37, %v450_v24  ;;  %v459_v33 = vadd.f32 %v458_v55, %v457_v30 }
 0x150   :  { %v6643_v50 = vmax.f32 %v419_v29, 0.0  ;;  %v6645_v57 = vmax.f32 %v438_v52, 0.0  ;;  %v494_v1 = vadd.f32 %v493_v40, %v492_v32  ;;  %v487_v0 = vadd.f32 %v486_v53, %v485_v31 }
 0x151   :  { %v453_v29 = vrot.slane %v452_v39, 2 }
 0x152   :  { %8199 = vst [vmem:[#allocation32_spill] sm:$0xff] %v6643_v50  ;;  %v499_v37 = vmul.f32 %v6643_v50, %v6643_v50  ;;  %v500_v55 = vmul.f32 %v6645_v57, %v6645_v57  ;;  %v488_v53 = vrot.slane %v487_v0, 2  ;;  %v495_v40 = vrot.slane %v494_v1, 2 }
 0x153   :  { %8200 = vst [vmem:[#allocation33_spill] sm:$0xff] %v6645_v57 }
 0x154   :  { %v489_v21 = vadd.f32 %v488_v53, %v487_v0  ;;  %v496_v61 = vadd.f32 %v495_v40, %v494_v1 }
 0x155   :  { %v420_v60 = vpop.f32.mrf.mxu0  ;;  %v439_v22 = vpop.f32.mrf.mxu1 }
 0x156   :  { %v421_v51 = vadd.f32 %v420_v60, %v6520_v43  ;;  %v440_v35 = vadd.f32 %v439_v22, %v6522_v44  ;;  %v460_v43 = vrot.slane %v459_v33, 2  ;;  %v490_v0 = vrot.slane %v489_v21, 1 }
 0x157   :  { %v497_v1 = vrot.slane %v496_v61, 1 }
 0x158   :  { %v6653_v30 = vmax.f32 %v421_v51, 0.0  ;;  %v6655_v24 = vmax.f32 %v440_v35, 0.0  ;;  %v461_v26 = vadd.f32 %v460_v43, %v459_v33 }
 0x15a   :  { %8201 = vst [vmem:[#allocation34_spill] sm:$0xff] %v6653_v30  ;;  %v464_v44 = vadd.f32 %v6653_v30, %v6643_v50  ;;  %v501_v31 = vmul.f32 %v6653_v30, %v6653_v30  ;;  %v471_v32 = vadd.f32 %v6655_v24, %v6645_v57  ;;  %v502_v52 = vmul.f32 %v6655_v24, %v6655_v24 }
 0x15b   :  { %8202 = vst [vmem:[#allocation35_spill] sm:$0xff] %v6655_v24  ;;  %v454_v50 = vadd.f32 %v453_v29, %v452_v39  ;;  %v462_v33 = vrot.slane %v461_v26, 1 }
 0x15c   :  { %v465_v60 = vrot.slane %v464_v44, 4  ;;  %v503_v22 = vadd.f32 %v501_v31, %v499_v37  ;;  %v472_v51 = vrot.slane %v471_v32, 4  ;;  %v510_v35 = vadd.f32 %v502_v52, %v500_v55 }
 0x15d   :  { %v455_v39 = vrot.slane %v454_v50, 1 }
 0x15e   :  { %v466_v57 = vadd.f32 %v465_v60, %v464_v44  ;;  %v504_v30 = vrot.slane %v503_v22, 4  ;;  %v473_v36 = vadd.f32 %v472_v51, %v471_v32  ;;  %v511_v24 = vrot.slane %v510_v35, 4 }
 0x15f   :  { %v456_v40 = vadd.f32 %v455_v39, %v454_v50  ;;  %v463_v60 = vadd.f32 %v462_v33, %v461_v26  ;;  %v491_v51 = vadd.f32 %v490_v0, %v489_v21  ;;  %v6727_v21 = vld [vmem:[%s8152_s8 + $0x20] sm:$0xff]  ;;  %v4490_v33 = vld [vmem:[%s8146_s2 + $0x50] sm:$0xf] }
 0x160   :  { %v467_v2 = vrot.slane %v466_v57, 2  ;;  %v474_v37 = vrot.slane %v473_v36, 2  ;;  %v505_v31 = vadd.f32 %v504_v30, %v503_v22  ;;  %v512_v55 = vadd.f32 %v511_v24, %v510_v35  ;;  %667 = vmatpush.msrb.mxu2 %v6727_v21 }
 0x161   :  { %v498_v35 = vadd.f32 %v497_v1, %v496_v61  ;;  %v6732_v61 = vld [vmem:[%s8152_s8 + $0x28] sm:$0xff] }
 0x162   :  { %v468_v29 = vadd.f32 %v467_v2, %v466_v57  ;;  %v475_v43 = vadd.f32 %v474_v37, %v473_v36  ;;  %v506_v44 = vrot.slane %v505_v31, 2  ;;  %v513_v32 = vrot.slane %v512_v55, 2  ;;  %687 = vmatpush.msrb.mxu3 %v6732_v61 }
 0x164   :  { %v469_v52 = vrot.slane %v468_v29, 1  ;;  %v476_v53 = vrot.slane %v475_v43, 1  ;;  %v507_v30 = vadd.f32 %v506_v44, %v505_v31  ;;  %v514_v24 = vadd.f32 %v513_v32, %v512_v55  ;;  %v5538_v44 = vld [vmem:[%s8146_s2 + $0x54] sm:$0xf]  ;;  %v4492_v32 = vld [vmem:[%s8146_s2 + $0x58] sm:$0xf0] }
 0x166   :  { %v470_v2 = vadd.f32 %v469_v52, %v468_v29  ;;  %v477_v36 = vadd.f32 %v476_v53, %v475_v43  ;;  %v508_v57 = vrot.slane %v507_v30, 1  ;;  %v515_v22 = vrot.slane %v514_v24, 1  ;;  %v5539_v43 = vld [vmem:[%s8146_s2 + $0x54] sm:$0xf0]  ;;  %v4482_v53 = vld [vmem:[%s8146_s2 + $0x40] sm:$0xf] }
 0x167   :  { %v4491_v1 = vor.u32 %v5539_v43, %v4490_v33  ;;  %v4495_v52 = vor.u32 %v5538_v44, %v4492_v32 }
 0x168   :  { %v479_v37 = vsel %vm156_vm2, %v456_v40, %v470_v2  ;;  %v480_v31 = vsel %vm156_vm2, %v463_v60, %v477_v36  ;;  %v509_v50 = vadd.f32 %v508_v57, %v507_v30  ;;  %v516_v26 = vadd.f32 %v515_v22, %v514_v24  ;;  %v5537_v30 = vld [vmem:[%s8146_s2 + $0x44] sm:$0xf0]  ;;  %v5536_v40 = vld [vmem:[%s8146_s2 + $0x44] sm:$0xf]  ;;  %v4484_v60 = vld [vmem:[%s8146_s2 + $0x48] sm:$0xf0] }
 0x169   :  { %567 = vmatmul.f32.vlgmr.msra.gmra.mxu2 %v479_v37  ;;  %587 = vmatmul.f32.vlgmr.msra.gmra.mxu3 %v480_v31  ;;  %v4483_v2 = vor.u32 %v5537_v30, %v4482_v53  ;;  %v4487_v36 = vor.u32 %v5536_v40, %v4484_v60  ;;  %v4474_v57 = vld [vmem:[%s8146_s2 + $0x30] sm:$0xf]  ;;  %v5535_v22 = vld [vmem:[%s8146_s2 + $0x34] sm:$0xf0] }
 0x16a   :  { %v517_v55 = vsel %vm156_vm2, %v491_v51, %v509_v50  ;;  %v518_v39 = vsel %vm156_vm2, %v498_v35, %v516_v26  ;;  %v5534_v51 = vld [vmem:[%s8146_s2 + $0x34] sm:$0xf]  ;;  %v4476_v35 = vld [vmem:[%s8146_s2 + $0x38] sm:$0xf0]  ;;  %v4475_v37 = vor.u32 %v5535_v22, %v4474_v57  ;;  %v4466_v50 = vld [vmem:[%s8146_s2 + $0x20] sm:$0xf] }
 0x16b   :  { %615 = vmatmul.f32.vlgmr.msrb.gmra.mxu0 %v517_v55  ;;  %635 = vmatmul.f32.vlgmr.msrb.gmra.mxu1 %v518_v39  ;;  %v4479_v31 = vor.u32 %v5534_v51, %v4476_v35  ;;  %v5533_v55 = vld [vmem:[%s8146_s2 + $0x24] sm:$0xf0]  ;;  %v5532_v39 = vld [vmem:[%s8146_s2 + $0x24] sm:$0xf] }
 0x16c   :  { %1249 = vmatpush.msrb.mxu0 %v6361_v3  ;;  %1269 = vmatpush.msrb.mxu1 %v6366_v4  ;;  %v6739_v3 = vld [vmem:[%s8152_s8 + $0x10] sm:$0xff]  ;;  %v6744_v4 = vld [vmem:[%s8152_s8 + $0x18] sm:$0xff] }
 0x16d   :  { %668 = vmatpush.msrb.mxu2 %v6739_v3  ;;  %688 = vmatpush.msrb.mxu3 %v6744_v4 }
 0x16e   :  { %1250 = vmatpush.msrb.mxu0 %v6373_v5  ;;  %1270 = vmatpush.msrb.mxu1 %v6378_v6  ;;  %v6751_v5 = vld [vmem:[%s8152_s8] sm:$0xff]  ;;  %v6756_v6 = vld [vmem:[%s8152_s8 + $0x8] sm:$0xff] }
 0x16f   :  { %669 = vmatpush.msrb.mxu2 %v6751_v5  ;;  %689 = vmatpush.msrb.mxu3 %v6756_v6 }
 0x170   :  { %1251 = vmatpush.msrb.mxu0 %v6389_v7  ;;  %1271 = vmatpush.msrb.mxu1 %v6394_v8  ;;  %v6059_v7 = vmov 128.0  }
 0x171   :  { %720 = vmatpush.msra.mxu2 %v6607_v58  ;;  %740 = vmatpush.msra.mxu3 %v6612_v59  ;;  %5812 = vrcp.f32 %v6059_v7  ;;  %v4468_v7 = vld [vmem:[%s8146_s2 + $0x28] sm:$0xf0] }
 0x172   :  { %1252 = vmatpush.msrb.mxu0 %v6401_v9  ;;  %1272 = vmatpush.msrb.mxu1 %v6406_v10 }
 0x173   :  { %721 = vmatpush.msra.mxu2 %v6727_v21  ;;  %741 = vmatpush.msra.mxu3 %v6732_v61 }
 0x174   :  { %1253 = vmatpush.msrb.mxu0 %v6415_v11  ;;  %1273 = vmatpush.msrb.mxu1 %v6420_v12 }
 0x175   :  { %722 = vmatpush.msra.mxu2 %v6739_v3  ;;  %742 = vmatpush.msra.mxu3 %v6744_v4 }
 0x176   :  { %1254 = vmatpush.msrb.mxu0 %v6429_v13  ;;  %1274 = vmatpush.msrb.mxu1 %v6434_v14 }
 0x177   :  { %723 = vmatpush.msra.mxu2 %v6751_v5  ;;  %743 = vmatpush.msra.mxu3 %v6756_v6  ;;  %v5813_v8 = vpop.eup %5812 }
 0x178   :  { %1255 = vmatpush.msrb.mxu0 %v6443_v16  ;;  %1275 = vmatpush.msrb.mxu1 %v6448_v17  ;;  %v592_v9 = vmul.f32 128.0, %v5813_v8  ;;  %v4506_v16 = vld [vmem:[%s8146_s2 + $0x70] sm:$0xf]  ;;  %vm596_vm15 = vweird.f32 %v5813_v8  ;;  %v5543_v17 = vld [vmem:[%s8146_s2 + $0x74] sm:$0xf0] }
 0x17a   :  { %1256 = vmatpush.msrb.mxu0 %v6457_v19  ;;  %1276 = vmatpush.msrb.mxu1 %v6462_v20  ;;  %v593_v10 = vsub.f32 1.0, %v592_v9  ;;  %v5542_v19 = vld [vmem:[%s8146_s2 + $0x74] sm:$0xf]  ;;  %v4508_v20 = vld [vmem:[%s8146_s2 + $0x78] sm:$0xf0]  ;;  %v4467_v9 = vor.u32 %v5533_v55, %v4466_v50 }
 0x17c   :  { %1257 = vmatpush.msrb.mxu0 %v6471_v23  ;;  %1277 = vmatpush.msrb.mxu1 %v6476_v25  ;;  %v594_v11 = vmul.f32 %v5813_v8, %v593_v10  ;;  %v4471_v10 = vor.u32 %v5532_v39, %v4468_v7 }
 0x17e   :  { %1258 = vmatpush.msrb.mxu0 %v6485_v27  ;;  %1278 = vmatpush.msrb.mxu1 %v6490_v28  ;;  %v595_v13 = vadd.f32 %v5813_v8, %v594_v11 }
 0x180   :  { %1259 = vmatpush.msrb.mxu0 %v6499_v34  ;;  %1279 = vmatpush.msrb.mxu1 %v6504_v38  ;;  %v6780_v34 = vsel %vm596_vm15, %v5813_v8, %v595_v13  ;;  %v4507_v38 = vor.u32 %v5543_v17, %v4506_v16  ;;  %v5531_v13 = vld [vmem:[%s8146_s2 + $0x14] sm:$0xf0]  ;;  %v4460_v16 = vld [vmem:[%s8146_s2 + $0x18] sm:$0xf0] }
 0x182   :  { %1260 = vmatpush.msrb.mxu0 %v6511_v41  ;;  %1280 = vmatpush.msrb.mxu1 %v6518_v42  ;;  %v4511_v41 = vor.u32 %v5542_v19, %v4508_v20  ;;  %v4498_v42 = vld [vmem:[%s8146_s2 + $0x60] sm:$0xf] }
 0x184   :  { %1261 = vmatpush.msrb.mxu0 %v6529_v45  ;;  %1281 = vmatpush.msrb.mxu1 %v6534_v46  ;;  %v5541_v46 = vld [vmem:[%s8146_s2 + $0x64] sm:$0xf0] }
 0x186   :  { %1262 = vmatpush.msrb.mxu0 %v6543_v47  ;;  %1282 = vmatpush.msrb.mxu1 %v6548_v48  ;;  %v5540_v47 = vld [vmem:[%s8146_s2 + $0x64] sm:$0xf]  ;;  %v4500_v48 = vld [vmem:[%s8146_s2 + $0x68] sm:$0xf0] }
 0x188   :  { %1263 = vmatpush.msrb.mxu0 %v6559_v54  ;;  %1283 = vmatpush.msrb.mxu1 %v6564_v56 }
 0x18a   :  { %1264 = vmatpush.msrb.mxu0 %v6575_v62  ;;  %1284 = vmatpush.msrb.mxu1 %v6580_v63  ;;  %v4499_v62 = vor.u32 %v5541_v46, %v4498_v42  ;;  %v4503_v63 = vor.u32 %v5540_v47, %v4500_v48  ;;  %v5826_v47 = vld [vmem:[#allocation2] sm:$0xff]  }
 0x18b   :  { %v873_v48 = vsel %vm247_vm10, %v5826_v47, %v6325_v18 }
 0x1e8   :  { %v616_v12 = vpop.f32.mrf.mxu0  ;;  %v636_v14 = vpop.f32.mrf.mxu1 }
 0x1e9   :  { %v637_v27 = vadd.f32 %v636_v14, %v616_v12  ;;  %v4458_v12 = vld [vmem:[%s8146_s2 + $0x10] sm:$0xf]  ;;  %v5530_v14 = vld [vmem:[%s8146_s2 + $0x14] sm:$0xf] }
 0x1ea   :  { %v4459_v20 = vor.u32 %v5531_v13, %v4458_v12 }
 0x1eb   :  { %v639_v54 = vmul.f32 %v637_v27, %v6780_v34  ;;  %v5529_v27 = vld [vmem:[%s8146_s2 + $0x4] sm:$0xf0] }
 0x1ec   :  { %v568_v23 = vpop.f32.mrf.mxu2  ;;  %v588_v25 = vpop.f32.mrf.mxu3 }
 0x1ed   :  { %v589_v28 = vadd.f32 %v588_v25, %v568_v23  ;;  %v4463_v23 = vor.u32 %v5530_v14, %v4460_v16  ;;  %v4450_v25 = vld [vmem:[%s8146_s2] sm:$0xf] }
 0x1ef   :  { %v598_v45 = vmul.f32 %v6780_v34, %v589_v28  ;;  %v5528_v28 = vld [vmem:[%s8146_s2 + $0x4] sm:$0xf] }
 0x1f1   :  { %v640_v56 = vmul.f32 %v598_v45, %v598_v45  ;;  %4444 = vmatmul.msk.f32.vlgmr.msrb.gmra.mxu2 %vm247_vm10, %v598_v45  ;;  %4445 = vmatmul.msk.f32.vlgmr.msrb.gmra.mxu3 %vm247_vm10, %v598_v45  ;;  %v4451_v45 = vor.u32 %v5529_v27, %v4450_v25 }
 0x1f2   :  { %1014 = vmatpush.bf16.msrb.mxu2 %v4507_v38  ;;  %1037 = vmatpush.bf16.msrb.mxu3 %v4511_v41  ;;  %v4452_v38 = vld [vmem:[%s8146_s2 + $0x8] sm:$0xf0] }
 0x1f3   :  { %v641_v29 = vsub.f32 %v639_v54, %v640_v56  ;;  %v4455_v46 = vor.u32 %v5528_v28, %v4452_v38  ;;  %v874_v54 = vsel %vm253_vm11, %v873_v48, %v6321_v15  ;;  %v8204_v15 = vld [vmem:[#allocation26_spill] sm:$0xff] }
 0x1f4   :  { %v876_v56 = vsel %vm397_vm12, %v874_v54, %v6346_v49 }
 0x1f5   :  { %v642_v0 = vmax.f32 %v641_v29, 0.0 }
 0x1f6   :  { %1015 = vmatpush.bf16.msrb.mxu2 %v4499_v62  ;;  %1038 = vmatpush.bf16.msrb.mxu3 %v4503_v63  ;;  %v8203_v62 = vld [vmem:[#allocation27_spill] sm:$0xff] }
 0x1f7   :  { %v694_v24 = vadd.f32 1e-05, %v642_v0 }
 0x1f9   :  { %5814 = vrsqrt.f32 %v694_v24  ;;  %vm701_vm1 = vweird.f32 %v694_v24 }
 0x1fa   :  { %1016 = vmatpush.bf16.msrb.mxu2 %v4491_v1  ;;  %1039 = vmatpush.bf16.msrb.mxu3 %v4495_v52  ;;  %v928_v52 = vld [vmem:[#allocation6 + $0x1] ss:$4 sm:$0x3] }
 0x1fb   :  { %v930_v53 = vperm.slane %v928_v52, 0  ;;  %v931_v30 = vperm.slane %v928_v52, 1 }
 0x1fe   :  { %1017 = vmatpush.bf16.msrb.mxu2 %v4483_v2  ;;  %1040 = vmatpush.bf16.msrb.mxu3 %v4487_v36 }
 0x1ff   :  { %v5815_v26 = vpop.eup %5814 }
 0x200   :  { %v696_v8 = vmul.f32 %v5815_v26, %v694_v24  ;;  %vm702_vm0 = vweird.f32 %v5815_v26 }
 0x201   :  { %vm703_vm3 = vmor %vm701_vm1, %vm702_vm0 }
 0x202   :  { %1018 = vmatpush.bf16.msrb.mxu2 %v4475_v37  ;;  %1041 = vmatpush.bf16.msrb.mxu3 %v4479_v31  ;;  %v697_v11 = vmul.f32 %v5815_v26, %v696_v8 }
 0x204   :  { %v698_v17 = vmul.f32 0.5, %v697_v11 }
 0x206   :  { %1019 = vmatpush.bf16.msrb.mxu2 %v4467_v9  ;;  %1042 = vmatpush.bf16.msrb.mxu3 %v4471_v10  ;;  %v699_v19 = vsub.f32 1.5, %v698_v17 }
 0x208   :  { %v700_v41 = vmul.f32 %v5815_v26, %v699_v19 }
 0x20a   :  { %v704_v42 = vsel %vm703_vm3, %v5815_v26, %v700_v41  ;;  %1020 = vmatpush.bf16.msrb.mxu2 %v4459_v20  ;;  %1043 = vmatpush.bf16.msrb.mxu3 %v4463_v23 }
 0x20b   :  { %4446 = vmatmul.msk.f32.vlgmr.msra.gmra.mxu2 %vm247_vm10, %v704_v42  ;;  %4447 = vmatmul.msk.f32.vlgmr.msra.gmra.mxu3 %vm247_vm10, %v704_v42 }
 0x20e   :  { %1021 = vmatpush.bf16.msrb.mxu2 %v4451_v45  ;;  %1044 = vmatpush.bf16.msrb.mxu3 %v4455_v46 }
 0x212   :  { %1362 = vmatpush.msra.mxu2 %v6607_v58  ;;  %1382 = vmatpush.msra.mxu3 %v6612_v59 }
 0x213   :  { %1022 = vmatmul.bf16.vlgmr.msrb.gmra.mxu2 %v876_v56  ;;  %1045 = vmatmul.bf16.vlgmr.msrb.gmra.mxu3 %v876_v56 }
 0x214   :  { %1363 = vmatpush.msra.mxu2 %v6727_v21  ;;  %1383 = vmatpush.msra.mxu3 %v6732_v61 }
 0x216   :  { %1364 = vmatpush.msra.mxu2 %v6739_v3  ;;  %1384 = vmatpush.msra.mxu3 %v6744_v4 }
 0x218   :  { %1365 = vmatpush.msra.mxu2 %v6751_v5  ;;  %1385 = vmatpush.msra.mxu3 %v6756_v6 }
 0x223   :  { %1027 = vmatmul.bf16.gmra.mxu2 %v8203_v62  ;;  %1050 = vmatmul.bf16.gmra.mxu3 %v8203_v62 }
 0x233   :  { %1032 = vmatmul.bf16.gmra.mxu2 %v8204_v15  ;;  %1055 = vmatmul.bf16.gmra.mxu3 %v8204_v15 }
 0x274   :  { %v6890_v63 = vpop.f32.mrf.mxu2  ;;  %v6892_v33 = vpop.f32.mrf.mxu3 }
 0x28e   :  { %v6894_v29 = vpop.f32.mrf.mxu2  ;;  %v6896_v43 = vpop.f32.mrf.mxu3 }
 0x296   :  { %v1023_v44 = vpop.f32.mrf.mxu2  ;;  %v1046_v32 = vpop.f32.mrf.mxu3 }
 0x297   :  { %v1024_v22 = vadd.f32 %v1023_v44, %v930_v53  ;;  %v1047_v51 = vadd.f32 %v1046_v32, %v931_v30 }
 0x299   :  { %v6906_v26 = vmax.f32 %v1024_v22, 0.0  ;;  %v6908_v55 = vmax.f32 %v1047_v51, 0.0 }
 0x29b   :  { %v1131_v23 = vmul.f32 %v6906_v26, %v6906_v26  ;;  %v1132_v41 = vmul.f32 %v6908_v55, %v6908_v55 }
 0x29e   :  { %v1025_v0 = vpop.f32.mrf.mxu2  ;;  %v1048_v1 = vpop.f32.mrf.mxu3 }
 0x29f   :  { %v1026_v24 = vadd.f32 %v1025_v0, %v930_v53  ;;  %v1049_v40 = vadd.f32 %v1048_v1, %v931_v30 }
 0x2a1   :  { %v6902_v31 = vmax.f32 %v1026_v24, 0.0  ;;  %v6904_v50 = vmax.f32 %v1049_v40, 0.0 }
 0x2a3   :  { %v1070_v8 = vadd.f32 %v6902_v31, %v6906_v26  ;;  %v1079_v9 = vadd.f32 %v6904_v50, %v6908_v55  ;;  %v1133_v16 = vmul.f32 %v6902_v31, %v6902_v31  ;;  %v1134_v25 = vmul.f32 %v6904_v50, %v6904_v50 }
 0x2a5   :  { %v1137_v42 = vadd.f32 %v1133_v16, %v1131_v23  ;;  %v1146_v48 = vadd.f32 %v1134_v25, %v1132_v41 }
 0x2a6   :  { %v1028_v60 = vpop.f32.mrf.mxu2  ;;  %v1051_v2 = vpop.f32.mrf.mxu3 }
 0x2a7   :  { %v1029_v36 = vadd.f32 %v1028_v60, %v930_v53  ;;  %v1052_v57 = vadd.f32 %v1051_v2, %v931_v30 }
 0x2a9   :  { %v6898_v35 = vmax.f32 %v1029_v36, 0.0  ;;  %v6900_v37 = vmax.f32 %v1052_v57, 0.0 }
 0x2ab   :  { %v1071_v39 = vsel %vm156_vm2, %v6898_v35, 0.0  ;;  %v1080_v7 = vsel %vm156_vm2, %v6900_v37, 0.0  ;;  %v1135_v12 = vmul.f32 %v6898_v35, %v6898_v35  ;;  %v1136_v20 = vmul.f32 %v6900_v37, %v6900_v37 }
 0x2ac   :  { %v1072_v17 = vadd.f32 %v1071_v39, %v1070_v8  ;;  %v1081_v19 = vadd.f32 %v1080_v7, %v1079_v9  ;;  %v1098_v32 = vrot.slane %v6900_v37, 1  ;;  %v1095_v0 = vrot.slane %v6898_v35, 1 }
 0x2ad   :  { %v1138_v38 = vsel %vm156_vm2, %v1135_v12, 0.0  ;;  %v1147_v47 = vsel %vm156_vm2, %v1136_v20, 0.0  ;;  %v1165_v36 = vrot.slane %v1135_v12, 1  ;;  %v1168_v7 = vrot.slane %v1136_v20, 1 }
 0x2ae   :  { %v1030_v10 = vpop.f32.mrf.mxu2  ;;  %v1053_v11 = vpop.f32.mrf.mxu3  ;;  %v1073_v45 = vrot.slane %v1072_v17, 4  ;;  %v1082_v46 = vrot.slane %v1081_v19, 4  ;;  %v1139_v44 = vadd.f32 %v1138_v38, %v1137_v42  ;;  %v1148_v2 = vadd.f32 %v1147_v47, %v1146_v48 }
 0x2af   :  { %v1031_v13 = vadd.f32 %v1030_v10, %v930_v53  ;;  %v1054_v14 = vadd.f32 %v1053_v11, %v931_v30 }
 0x2b0   :  { %v1074_v40 = vadd.f32 %v1073_v45, %v1072_v17  ;;  %v1083_v60 = vadd.f32 %v1082_v46, %v1081_v19  ;;  %v1140_v9 = vrot.slane %v1139_v44, 4  ;;  %v1149_v16 = vrot.slane %v1148_v2, 4 }
 0x2b1   :  { %v6928_v27 = vmax.f32 %v1031_v13, 0.0  ;;  %v6930_v28 = vmax.f32 %v1054_v14, 0.0 }
 0x2b2   :  { %v1075_v13 = vrot.slane %v1074_v40, 2  ;;  %v1084_v14 = vrot.slane %v1083_v60, 2 }
 0x2b3   :  { %v1155_v54 = vmul.f32 %v6928_v27, %v6928_v27  ;;  %v1156_v56 = vmul.f32 %v6930_v28, %v6930_v28  ;;  %v1096_v24 = vrot.slane %v6928_v27, 1  ;;  %v1099_v57 = vrot.slane %v6930_v28, 1 }
 0x2b5   :  { %v1166_v39 = vrot.slane %v1155_v54, 1  ;;  %v1169_v8 = vrot.slane %v1156_v56, 1  ;;  %v1097_v12 = vsel %vm239_vm8, %v1095_v0, %v1096_v24  ;;  %v1100_v17 = vsel %vm239_vm8, %v1098_v32, %v1099_v57 }
 0x2b6   :  { %v1033_v62 = vpop.f32.mrf.mxu2  ;;  %v1056_v15 = vpop.f32.mrf.mxu3 }
 0x2b7   :  { %v1034_v1 = vadd.f32 %v1033_v62, %v930_v53  ;;  %v1057_v52 = vadd.f32 %v1056_v15, %v931_v30  ;;  %v1167_v25 = vsel %vm239_vm8, %v1165_v36, %v1166_v39  ;;  %v1170_v47 = vsel %vm239_vm8, %v1168_v7, %v1169_v8 }
 0x2b9   :  { %v6944_v22 = vmax.f32 %v1034_v1, 0.0  ;;  %v6946_v51 = vmax.f32 %v1057_v52, 0.0 }
 0x2bb   :  { %v1101_v10 = vrot.slane %v6944_v22, 1  ;;  %v1157_v53 = vmul.f32 %v6944_v22, %v6944_v22  ;;  %v1103_v30 = vrot.slane %v6946_v51, 1  ;;  %v1158_v11 = vmul.f32 %v6946_v51, %v6946_v51 }
 0x2bd   :  { %v1102_v19 = vsel %vm239_vm8, %v1096_v24, %v1101_v10  ;;  %v1171_v20 = vrot.slane %v1157_v53, 1  ;;  %v1104_v23 = vsel %vm239_vm8, %v1099_v57, %v1103_v30  ;;  %v1173_v42 = vrot.slane %v1158_v11, 1 }
 0x2be   :  { %v1111_v38 = vadd.f32 %v1102_v19, %v1097_v12  ;;  %v1120_v41 = vadd.f32 %v1104_v23, %v1100_v17  ;;  %v1035_v45 = vpop.f32.mrf.mxu2  ;;  %v1058_v46 = vpop.f32.mrf.mxu3  ;;  %v1112_v48 = vsel %vm156_vm2, %v1101_v10, 0.0  ;;  %v1121_v56 = vsel %vm156_vm2, %v1103_v30, 0.0 }
 0x2bf   :  { %v1172_v54 = vsel %vm239_vm8, %v1166_v39, %v1171_v20  ;;  %v1174_v0 = vsel %vm239_vm8, %v1169_v8, %v1173_v42  ;;  %v1182_v1 = vsel %vm156_vm2, %v1171_v20, 0.0  ;;  %v1191_v53 = vsel %vm156_vm2, %v1173_v42, 0.0 }
 0x2c0   :  { %v1113_v62 = vadd.f32 %v1112_v48, %v1111_v38  ;;  %v1181_v15 = vadd.f32 %v1172_v54, %v1167_v25  ;;  %v1122_v32 = vadd.f32 %v1121_v56, %v1120_v41  ;;  %v1190_v52 = vadd.f32 %v1174_v0, %v1170_v47 }
 0x2c1   :  { %v1076_v11 = vadd.f32 %v1075_v13, %v1074_v40  ;;  %v1085_v10 = vadd.f32 %v1084_v14, %v1083_v60  ;;  %v1141_v12 = vadd.f32 %v1140_v9, %v1139_v44  ;;  %v1150_v19 = vadd.f32 %v1149_v16, %v1148_v2 }
 0x2c2   :  { %v1114_v24 = vrot.slane %v1113_v62, 4  ;;  %v1183_v36 = vadd.f32 %v1182_v1, %v1181_v15  ;;  %v1123_v57 = vrot.slane %v1122_v32, 4  ;;  %v1192_v7 = vadd.f32 %v1191_v53, %v1190_v52  ;;  %v5559_v53 = vld [vmem:[%s8147_s3 + $0x74] sm:$0xf0] }
 0x2c3   :  { %v1077_v41 = vrot.slane %v1076_v11, 1  ;;  %v1086_v20 = vrot.slane %v1085_v10, 1  ;;  %v1142_v45 = vrot.slane %v1141_v12, 2  ;;  %v1151_v42 = vrot.slane %v1150_v19, 2 }
 0x2c4   :  { %v1115_v39 = vadd.f32 %v1114_v24, %v1113_v62  ;;  %v1184_v17 = vrot.slane %v1183_v36, 4  ;;  %v1124_v30 = vadd.f32 %v1123_v57, %v1122_v32  ;;  %v1193_v23 = vrot.slane %v1192_v7, 4  ;;  %v4582_v57 = vld [vmem:[%s8147_s3 + $0x70] sm:$0xf] }
 0x2c5   :  { %v1078_v9 = vadd.f32 %v1077_v41, %v1076_v11  ;;  %v1143_v13 = vadd.f32 %v1142_v45, %v1141_v12  ;;  %v1087_v16 = vadd.f32 %v1086_v20, %v1085_v10  ;;  %v1152_v15 = vadd.f32 %v1151_v42, %v1150_v19  ;;  %v5553_v41 = vld [vmem:[%s8147_s3 + $0x44] sm:$0xf0]  ;;  %v4550_v45 = vld [vmem:[%s8147_s3 + $0x30] sm:$0xf] }
 0x2c6   :  { %v1116_v25 = vrot.slane %v1115_v39, 2  ;;  %v1125_v38 = vrot.slane %v1124_v30, 2  ;;  %v1185_v8 = vadd.f32 %v1184_v17, %v1183_v36  ;;  %v1194_v46 = vadd.f32 %v1193_v23, %v1192_v7  ;;  %v4566_v23 = vld [vmem:[%s8147_s3 + $0x50] sm:$0xf] }
 0x2c7   :  { %v1144_v24 = vrot.slane %v1143_v13, 1  ;;  %v1153_v36 = vrot.slane %v1152_v15, 1 }
 0x2c8   :  { %v1117_v47 = vadd.f32 %v1116_v25, %v1115_v39  ;;  %v1126_v48 = vadd.f32 %v1125_v38, %v1124_v30  ;;  %v1186_v54 = vrot.slane %v1185_v8, 2  ;;  %v1195_v56 = vrot.slane %v1194_v46, 2  ;;  %v5557_v39 = vld [vmem:[%s8147_s3 + $0x64] sm:$0xf0]  ;;  %v5555_v25 = vld [vmem:[%s8147_s3 + $0x54] sm:$0xf0] }
 0x2c9   :  { %v1145_v10 = vadd.f32 %v1144_v24, %v1143_v13  ;;  %v1154_v12 = vadd.f32 %v1153_v36, %v1152_v15  ;;  %v4567_v38 = vor.u32 %v5555_v25, %v4566_v23  ;;  %v5563_v13 = vld [vmem:[%s8147_s3 + $0x94] sm:$0xf0]  ;;  %v4590_v15 = vld [vmem:[%s8147_s3 + $0x80] sm:$0xf]  ;;  %v4584_v24 = vld [vmem:[%s8147_s3 + $0x78] sm:$0xf0] }
 0x2ca   :  { %v1118_v40 = vrot.slane %v1117_v47, 1  ;;  %v1127_v60 = vrot.slane %v1126_v48, 1  ;;  %v1187_v44 = vadd.f32 %v1186_v54, %v1185_v8  ;;  %v1196_v14 = vadd.f32 %v1195_v56, %v1194_v46  ;;  %v4558_v8 = vld [vmem:[%s8147_s3 + $0x40] sm:$0xf]  ;;  %v5551_v46 = vld [vmem:[%s8147_s3 + $0x34] sm:$0xf0] }
 0x2cb   :  { %v4559_v20 = vor.u32 %v5553_v41, %v4558_v8  ;;  %v5549_v54 = vld [vmem:[%s8147_s3 + $0x24] sm:$0xf0]  ;;  %v4534_v56 = vld [vmem:[%s8147_s3 + $0x10] sm:$0xf]  ;;  %v5550_v8 = vld [vmem:[%s8147_s3 + $0x34] sm:$0xf] }
 0x2cc   :  { %v1119_v2 = vadd.f32 %v1118_v40, %v1117_v47  ;;  %v1128_v62 = vadd.f32 %v1127_v60, %v1126_v48  ;;  %v1188_v1 = vrot.slane %v1187_v44, 1  ;;  %v1197_v52 = vrot.slane %v1196_v14, 1  ;;  %v4542_v48 = vld [vmem:[%s8147_s3 + $0x20] sm:$0xf]  ;;  %v5547_v40 = vld [vmem:[%s8147_s3 + $0x14] sm:$0xf0] }
 0x2cd   :  { %v4551_v47 = vor.u32 %v5551_v46, %v4550_v45  ;;  %v4543_v42 = vor.u32 %v5549_v54, %v4542_v48  ;;  %v4535_v60 = vor.u32 %v5547_v40, %v4534_v56  ;;  %v4552_v41 = vld [vmem:[%s8147_s3 + $0x38] sm:$0xf0]  ;;  %v5548_v45 = vld [vmem:[%s8147_s3 + $0x24] sm:$0xf]  ;;  %v4544_v46 = vld [vmem:[%s8147_s3 + $0x28] sm:$0xf0] }
 0x2ce   :  { %v1129_v32 = vsel %vm156_vm2, %v1078_v9, %v1119_v2  ;;  %v1130_v0 = vsel %vm156_vm2, %v1087_v16, %v1128_v62  ;;  %v1189_v7 = vadd.f32 %v1188_v1, %v1187_v44  ;;  %v1198_v11 = vadd.f32 %v1197_v52, %v1196_v14  ;;  %v4598_v9 = vld [vmem:[%s8147_s3 + $0x90] sm:$0xf]  ;;  %v4526_v2 = vld [vmem:[%s8147_s3] sm:$0xf]  ;;  %v5545_v16 = vld [vmem:[%s8147_s3 + $0x4] sm:$0xf0] }
 0x2cf   :  { %1217 = vmatmul.f32.vlgmr.msra.gmra.mxu0 %v1129_v32  ;;  %1237 = vmatmul.f32.vlgmr.msra.gmra.mxu1 %v1130_v0  ;;  %v6060_v44 = vmov 136.0   ;;  %v4599_v14 = vor.u32 %v5563_v13, %v4598_v9  ;;  %v4527_v62 = vor.u32 %v5545_v16, %v4526_v2  ;;  %v5561_v32 = vld [vmem:[%s8147_s3 + $0x84] sm:$0xf0]  ;;  %v5558_v52 = vld [vmem:[%s8147_s3 + $0x74] sm:$0xf]  ;;  %v5564_v9 = vld [vmem:[#allocation2] sm:$0xff] }
 0x2d0   :  { %1308 = vmatpush.msra.mxu0 %v6607_v58  ;;  %1328 = vmatpush.msra.mxu1 %v6612_v59  ;;  %v4583_v58 = vor.u32 %v5559_v53, %v4582_v57  ;;  %v4574_v59 = vld [vmem:[%s8147_s3 + $0x60] sm:$0xf]  ;;  %v1199_v17 = vsel %vm156_vm2, %v1145_v10, %v1189_v7  ;;  %v1200_v30 = vsel %vm156_vm2, %v1154_v12, %v1198_v11  ;;  %5816 = vrcp.f32 %v6060_v44  ;;  %v5556_v53 = vld [vmem:[%s8147_s3 + $0x64] sm:$0xf]  ;;  %v4576_v7 = vld [vmem:[%s8147_s3 + $0x68] sm:$0xf0] }
 0x2d1   :  { %v4575_v19 = vor.u32 %v5557_v39, %v4574_v59  ;;  %v4591_v0 = vor.u32 %v5561_v32, %v4590_v15  ;;  %v4587_v36 = vor.u32 %v5558_v52, %v4584_v24  ;;  %v4579_v11 = vor.u32 %v5556_v53, %v4576_v7  ;;  %v5554_v12 = vld [vmem:[%s8147_s3 + $0x54] sm:$0xf]  ;;  %v4536_v15 = vld [vmem:[%s8147_s3 + $0x18] sm:$0xf0]  ;;  %v5560_v7 = vld [vmem:[%s8147_s3 + $0x84] sm:$0xf] }
 0x2d2   :  { %1309 = vmatpush.msra.mxu0 %v6727_v21  ;;  %1329 = vmatpush.msra.mxu1 %v6732_v61  ;;  %v8207_v2 = vld [vmem:[#allocation22_spill] sm:$0xff] }
 0x2d3   :  { %1722 = vmatpush.bf16.msrb.mxu2 %v4587_v36  ;;  %v1539_v16 = vrot.slane %v8207_v2, 2  ;;  %v5562_v32 = vld [vmem:[%s8147_s3 + $0x94] sm:$0xf]  ;;  %v4600_v24 = vld [vmem:[%s8147_s3 + $0x98] sm:$0xf0]  ;;  %v1558_v2 = vpop.permute.xlu0 %1557 }
 0x2d4   :  { %1310 = vmatpush.msra.mxu0 %v6739_v3  ;;  %1330 = vmatpush.msra.mxu1 %v6744_v4  ;;  %v5544_v36 = vld [vmem:[%s8147_s3 + $0x4] sm:$0xf]  ;;  %v5827_v53 = vld [vmem:[%s8151_s7 + $0x78] sm:$0xff] }
 0x2d6   :  { %1311 = vmatpush.msra.mxu0 %v6751_v5  ;;  %1331 = vmatpush.msra.mxu1 %v6756_v6  ;;  %v5817_v1 = vpop.eup %5816 }
 0x2d7   :  { %1265 = vmatmul.f32.vlgmr.msrb.gmra.mxu0 %v1199_v17  ;;  %1285 = vmatmul.f32.vlgmr.msrb.gmra.mxu1 %v1200_v30  ;;  %v1242_v57 = vmul.f32 136.0, %v5817_v1  ;;  %v1524_v17 = vld [vmem:[#allocation2] sm:$0xc]  ;;  %v5552_v30 = vld [vmem:[%s8147_s3 + $0x44] sm:$0xf]  ;;  %vm1246_vm4 = vweird.f32 %v5817_v1 }
 0x2d8   :  { %1684 = vmatpush.bf16.msrb.mxu0 %v4583_v58  ;;  %1709 = vmatpush.bf16.msrb.mxu1 %v4599_v14  ;;  %v4568_v58 = vld [vmem:[%s8147_s3 + $0x58] sm:$0xf0] }
 0x2d9   :  { %v1243_v10 = vsub.f32 1.0, %v1242_v57  ;;  %1723 = vmatpush.bf16.msrb.mxu2 %v4579_v11  ;;  %v4571_v59 = vor.u32 %v5554_v12, %v4568_v58  ;;  %v4528_v57 = vld [vmem:[%s8147_s3 + $0x8] sm:$0xf0] }
 0x2da   :  { %v4592_v11 = vld [vmem:[%s8147_s3 + $0x88] sm:$0xf0]  ;;  %v4531_v58 = vor.u32 %v5544_v36, %v4528_v57 }
 0x2db   :  { %v1244_v39 = vmul.f32 %v5817_v1, %v1243_v10  ;;  %v5837_v57 = vld [vmem:[%s8151_s7 + $0x28] sm:$0xff] }
 0x2dc   :  { %1685 = vmatpush.bf16.msrb.mxu0 %v4575_v19  ;;  %1710 = vmatpush.bf16.msrb.mxu1 %v4591_v0  ;;  %v4560_v19 = vld [vmem:[%s8147_s3 + $0x48] sm:$0xf0]  ;;  %v1542_v0 = vsel %vm247_vm10, %v5564_v9, %v6325_v18  ;;  %v4603_v18 = vor.u32 %v5562_v32, %v4600_v24  ;;  %v5834_v9 = vld [vmem:[%s8151_s7 + $0x40] sm:$0xff]  ;;  %v5835_v32 = vld [vmem:[%s8151_s7 + $0x38] sm:$0xff] }
 0x2dd   :  { %1724 = vmatpush.bf16.msrb.mxu2 %v4571_v59  ;;  %v4563_v23 = vor.u32 %v5552_v30, %v4560_v19  ;;  %v1245_v25 = vadd.f32 %v5817_v1, %v1244_v39  ;;  %v5828_v59 = vld [vmem:[%s8151_s7 + $0x70] sm:$0xff]  ;;  %v4595_v19 = vor.u32 %v5560_v7, %v4592_v11  ;;  %v5838_v11 = vld [vmem:[%s8151_s7 + $0x20] sm:$0xff] }
 0x2de   :  { %1747 = vmatpush.bf16.msrb.mxu3 %v4603_v18 }
 0x2df   :  { %v1247_v54 = vsel %vm1246_vm4, %v5817_v1, %v1245_v25  ;;  %v1533_v1 = vpop.permute.xlu2 %1532 }
 0x2e0   :  { %1686 = vmatpush.bf16.msrb.mxu0 %v4567_v38  ;;  %v1535_v38 = vunpack.c.l.b16 %v1524_v17  ;;  %v1544_v39 = vsel %vm253_vm11, %v1542_v0, %v1533_v1  ;;  %v5836_v0 = vld [vmem:[%s8151_s7 + $0x30] sm:$0xff] }
 0x2e1   :  { %1725 = vmatpush.bf16.msrb.mxu2 %v4563_v23  ;;  %v5829_v23 = vld [vmem:[%s8151_s7 + $0x68] sm:$0xff] }
 0x2e2   :  { %1748 = vmatpush.bf16.msrb.mxu3 %v4595_v19 }
 0x2e4   :  { %1687 = vmatpush.bf16.msrb.mxu0 %v4559_v20  ;;  %v4555_v20 = vor.u32 %v5550_v8, %v4552_v41  ;;  %v1549_v8 = vld [vmem:[#allocation2 + $0xc] sm:$0xc]  ;;  %v7120_v41 = vsel %vm397_vm12, %v1544_v39, %v6346_v49 }
 0x2e6   :  { %1726 = vmatpush.bf16.msrb.mxu2 %v4555_v20  ;;  %v5830_v20 = vld [vmem:[%s8151_s7 + $0x60] sm:$0xff] }
 0x2e8   :  { %1688 = vmatpush.bf16.msrb.mxu0 %v4551_v47 }
 0x2ec   :  { %1689 = vmatpush.bf16.msrb.mxu0 %v4543_v42  ;;  %v8205_v42 = vld [vmem:[#allocation20_spill] sm:$0xff] }
 0x2ed   :  { %v8206_v56 = vunpack.c.h.b16 %v8205_v42  ;;  %v5565_v42 = vld [vmem:[#allocation2 + $0xc] sm:$0xff] }
 0x2ef   :  { %v1536_v40 = vpack.c.b16 %v8206_v56, %v1535_v38  ;;  %v8208_v56 = vld [vmem:[#allocation21_spill] sm:$0xff] }
 0x2f0   :  { %1690 = vmatpush.bf16.msrb.mxu0 %v4535_v60  ;;  %v4547_v60 = vor.u32 %v5548_v45, %v4544_v46  ;;  %v1560_v46 = vunpack.c.l.b16 %v1549_v8  ;;  %v7191_v8 = vld [vmem:[%s8152_s8 + $0x30] sm:$0xff] }
 0x2f1   :  { %v1538_v14 = vrot.slane %v1536_v40, 2  ;;  %v8209_v40 = vunpack.c.h.b16 %v8208_v56  ;;  %v5859_v56 = vld [vmem:[%s8151_s7 + $0x80] sm:$0xff] }
 0x2f2   :  { %1727 = vmatpush.bf16.msrb.mxu2 %v4547_v60 }
 0x2f3   :  { %v7113_v30 = vsel %vm1537_vm5, %v1538_v14, %v1539_v16  ;;  %v1561_v60 = vpack.c.b16 %v8209_v40, %v1560_v46  ;;  %v5848_v46 = vld [vmem:[%s8151_s7 + $0xd8] sm:$0xff] }
 0x2f4   :  { %1691 = vmatpush.bf16.msrb.mxu0 %v4527_v62  ;;  %v5546_v62 = vld [vmem:[%s8147_s3 + $0x14] sm:$0xf]  ;;  %v7248_v40 = vld [vmem:[%s8152_s8 + $0x38] sm:$0xff] }
 0x2f5   :  { %v4539_v52 = vor.u32 %v5546_v62, %v4536_v15  ;;  %v1562_v16 = vrot.slane %v1561_v60, 2  ;;  %v8211_v62 = vld [vmem:[#allocation23_spill] sm:$0xff] }
 0x2f6   :  { %v1563_v15 = vrot.slane %v8211_v62, 2  ;;  %v4982_v60 = vld [vmem:[#allocation11 + $0x2e0] sm:$0xf] }
 0x2f7   :  { %1728 = vmatpush.bf16.msrb.mxu2 %v4539_v52 }
 0x2f8   :  { %v7153_v36 = vsel %vm1537_vm5, %v1562_v16, %v1563_v15  ;;  %v4950_v15 = vld [vmem:[#allocation11 + $0x2a0] sm:$0xf] }
 0x2fb   :  { %1729 = vmatpush.bf16.msrb.mxu2 %v4531_v58 }
 0x34c   :  { %v1218_v47 = vpop.f32.mrf.mxu0  ;;  %v1238_v48 = vpop.f32.mrf.mxu1 }
 0x34d   :  { %v1239_v44 = vadd.f32 %v1238_v48, %v1218_v47  ;;  %v5831_v47 = vld [vmem:[%s8151_s7 + $0x58] sm:$0xff]  ;;  %v5832_v48 = vld [vmem:[%s8151_s7 + $0x50] sm:$0xff] }
 0x34f   :  { %v1248_v13 = vmul.f32 %v1247_v54, %v1239_v44  ;;  %v5833_v44 = vld [vmem:[%s8151_s7 + $0x48] sm:$0xff] }
 0x351   :  { %4512 = vmatmul.msk.f32.vlgmr.msra.gmra.mxu0 %vm247_vm10, %v1248_v13  ;;  %4513 = vmatmul.msk.f32.vlgmr.msra.gmra.mxu1 %vm247_vm10, %v1248_v13  ;;  %v1290_v38 = vmul.f32 %v1248_v13, %v1248_v13  ;;  %v8210_v13 = vld [vmem:[#allocation24_spill] sm:$0xff] }
 0x352   :  { %1877 = vmatpush.msra.mxu0 %v5827_v53  ;;  %1836 = vmatpush.msra.mxu1 %v5827_v53  ;;  %v1566_v14 = vsel %vm247_vm10, %v5565_v42, %v8210_v13  ;;  %v8212_v53 = vld [vmem:[#allocation25_spill] sm:$0xff]  ;;  %v4966_v13 = vld [vmem:[#allocation11 + $0x2c0] sm:$0xf] }
 0x353   :  { %v1568_v52 = vsel %vm253_vm11, %v1566_v14, %v1558_v2  ;;  %v5858_v42 = vld [vmem:[%s8151_s7 + $0x88] sm:$0xff]  ;;  %v5656_v14 = vld [vmem:[#allocation11 + $0x2cc] sm:$0xf0]  ;;  %vm1480_vm11 = vcmask 1041408  }
 0x354   :  { %v1266_v10 = vpop.f32.mrf.mxu0  ;;  %v1286_v12 = vpop.f32.mrf.mxu1  ;;  %1878 = vmatpush.msra.mxu0 %v5828_v59  ;;  %1837 = vmatpush.msra.mxu1 %v5828_v59  ;;  %v7160_v18 = vsel %vm397_vm12, %v1568_v52, %v8212_v53  ;;  %v5840_v59 = vld [vmem:[%s8151_s7 + $0x10] sm:$0xff]  ;;  %v4967_v2 = vor.u32 %v5656_v14, %v4966_v13  ;;  %v794_v53 = vperm.slane %v6890_v63, 1 }
 0x355   :  { %v1287_v17 = vadd.f32 %v1286_v12, %v1266_v10  ;;  %v5839_v12 = vld [vmem:[%s8151_s7 + $0x18] sm:$0xff]  ;;  %v5648_v52 = vld [vmem:[#allocation11 + $0x28c] sm:$0xf0] }
 0x356   :  { %1879 = vmatpush.msra.mxu0 %v5829_v23  ;;  %1838 = vmatpush.msra.mxu1 %v5829_v23  ;;  %v5842_v23 = vld [vmem:[%s8151_s7] sm:$0xff] }
 0x357   :  { %v1289_v25 = vmul.f32 %v1287_v17, %v1247_v54  ;;  %v5841_v17 = vld [vmem:[%s8151_s7 + $0x8] sm:$0xff] }
 0x358   :  { %1880 = vmatpush.msra.mxu0 %v5830_v20  ;;  %1839 = vmatpush.msra.mxu1 %v5830_v20  ;;  %v5846_v20 = vld [vmem:[%s8151_s7 + $0xe8] sm:$0xff] }
 0x359   :  { %v1291_v45 = vsub.f32 %v1289_v25, %v1290_v38  ;;  %1692 = vmatmul.bf16.vlgmr.msrb.gmra.mxu0 %v7120_v41  ;;  %4604 = vmatmul.msk.bf16.vlgmr.msrb.gmra.mxu1 %vm247_vm10, %v7113_v30  ;;  %v5843_v25 = vld [vmem:[%s8151_s7 + $0xf8] sm:$0xff]  ;;  %v5844_v38 = vld [vmem:[%s8151_s7 + $0xf0] sm:$0xff] }
 0x35a   :  { %1881 = vmatpush.msra.mxu0 %v5831_v47  ;;  %1840 = vmatpush.msra.mxu1 %v5831_v47  ;;  %v5854_v47 = vld [vmem:[%s8151_s7 + $0xa8] sm:$0xff] }
 0x35b   :  { %v1292_v49 = vmax.f32 %v1291_v45, 0.0  ;;  %v5847_v45 = vld [vmem:[%s8151_s7 + $0xe0] sm:$0xff] }
 0x35c   :  { %1882 = vmatpush.msra.mxu0 %v5832_v48  ;;  %1841 = vmatpush.msra.mxu1 %v5832_v48  ;;  %v5856_v48 = vld [vmem:[%s8151_s7 + $0x98] sm:$0xff] }
 0x35d   :  { %v1336_v54 = vadd.f32 1e-05, %v1292_v49  ;;  %v5855_v49 = vld [vmem:[%s8151_s7 + $0xa0] sm:$0xff] }
 0x35e   :  { %1883 = vmatpush.msra.mxu0 %v5833_v44  ;;  %1842 = vmatpush.msra.mxu1 %v5833_v44  ;;  %v5660_v44 = vld [vmem:[#allocation11 + $0x2ec] sm:$0xf0] }
 0x35f   :  { %5818 = vrsqrt.f32 %v1336_v54  ;;  %vm1343_vm7 = vweird.f32 %v1336_v54 }
 0x360   :  { %1884 = vmatpush.msra.mxu0 %v5834_v9  ;;  %1843 = vmatpush.msra.mxu1 %v5834_v9  ;;  %v4983_v9 = vor.u32 %v5660_v44, %v4982_v60 }
 0x362   :  { %1885 = vmatpush.msra.mxu0 %v5835_v32  ;;  %1844 = vmatpush.msra.mxu1 %v5835_v32  ;;  %v5652_v32 = vld [vmem:[#allocation11 + $0x2ac] sm:$0xf0] }
 0x364   :  { %1886 = vmatpush.msra.mxu0 %v5836_v0  ;;  %1845 = vmatpush.msra.mxu1 %v5836_v0  ;;  %v4951_v0 = vor.u32 %v5652_v32, %v4950_v15 }
 0x365   :  { %v5819_v1 = vpop.eup %5818 }
 0x366   :  { %v1338_v24 = vmul.f32 %v5819_v1, %v1336_v54  ;;  %1887 = vmatpush.msra.mxu0 %v5837_v57  ;;  %1846 = vmatpush.msra.mxu1 %v5837_v57  ;;  %vm1344_vm6 = vweird.f32 %v5819_v1  ;;  %v5857_v54 = vld [vmem:[%s8151_s7 + $0x90] sm:$0xff] }
 0x367   :  { %vm1345_vm8 = vmor %vm1343_vm7, %vm1344_vm6 }
 0x368   :  { %v1339_v7 = vmul.f32 %v5819_v1, %v1338_v24  ;;  %1888 = vmatpush.msra.mxu0 %v5838_v11  ;;  %1847 = vmatpush.msra.mxu1 %v5838_v11  ;;  %v750_v24 = vperm.slane %v6890_v63, 0 }
 0x369   :  { %1697 = vmatmul.bf16.gmra.mxu0 %v7160_v18  ;;  %4605 = vmatmul.msk.bf16.gmra.mxu1 %vm247_vm10, %v7153_v36 }
 0x36a   :  { %v1340_v10 = vmul.f32 0.5, %v1339_v7  ;;  %1889 = vmatpush.msra.mxu0 %v5839_v12  ;;  %1848 = vmatpush.msra.mxu1 %v5839_v12  ;;  %v756_v7 = vperm.slane %v6894_v29, 0  ;;  %v800_v12 = vperm.slane %v6894_v29, 1 }
 0x36c   :  { %v1341_v58 = vsub.f32 1.5, %v1340_v10  ;;  %1890 = vmatpush.msra.mxu0 %v5840_v59  ;;  %1849 = vmatpush.msra.mxu1 %v5840_v59  ;;  %v4918_v59 = vld [vmem:[#allocation11 + $0x260] sm:$0xf] }
 0x36e   :  { %v1342_v39 = vmul.f32 %v5819_v1, %v1341_v58  ;;  %1891 = vmatpush.msra.mxu0 %v5841_v17  ;;  %1850 = vmatpush.msra.mxu1 %v5841_v17  ;;  %v8213_v17 = vld [vmem:[#allocation28_spill] sm:$0xff] }
 0x370   :  { %v1346_v19 = vsel %vm1345_vm8, %v5819_v1, %v1342_v39  ;;  %1892 = vmatpush.msra.mxu0 %v5842_v23  ;;  %1851 = vmatpush.msra.mxu1 %v5842_v23  ;;  %v5644_v39 = vld [vmem:[#allocation11 + $0x26c] sm:$0xf0]  ;;  %v8214_v23 = vld [vmem:[#allocation30_spill] sm:$0xff] }
 0x371   :  { %4514 = vmatmul.msk.f32.vlgmr.msra.gmra.mxu2 %vm247_vm10, %v1346_v19  ;;  %4515 = vmatmul.msk.f32.vlgmr.msra.gmra.mxu3 %vm247_vm10, %v1346_v19  ;;  %v752_v19 = vsub.f32 %v8213_v17, %v750_v24  ;;  %v4919_v63 = vor.u32 %v5644_v39, %v4918_v59  ;;  %v5632_v59 = vld [vmem:[#allocation11 + $0x20c] sm:$0xf0] }
 0x372   :  { %1897 = vmatpush.msra.mxu2 %v5843_v25  ;;  %1856 = vmatpush.msra.mxu3 %v5843_v25  ;;  %v754_v25 = vsub.f32 %v8214_v23, %v750_v24 }
 0x373   :  { %1936 = vmatpush.msrb.mxu1 %v7191_v8  ;;  %3296 = vmatpush.bf16.msrb.mxu0 %v4983_v9 }
 0x374   :  { %1898 = vmatpush.msra.mxu2 %v5844_v38  ;;  %1857 = vmatpush.msra.mxu3 %v5844_v38 }
 0x375   :  { %1937 = vmatpush.msrb.mxu1 %v6727_v21  ;;  %v5849_v21 = vld [vmem:[%s8151_s7 + $0xd0] sm:$0xff] }
 0x376   :  { %1899 = vmatpush.msra.mxu2 %v5846_v20  ;;  %1858 = vmatpush.msra.mxu3 %v5846_v20  ;;  %v8215_v20 = vld [vmem:[#allocation32_spill] sm:$0xff] }
 0x377   :  { %1938 = vmatpush.msrb.mxu1 %v6739_v3  ;;  %v5852_v3 = vld [vmem:[%s8151_s7 + $0xb8] sm:$0xff]  ;;  %3297 = vmatpush.bf16.msrb.mxu0 %v4967_v2 }
 0x378   :  { %1900 = vmatpush.msra.mxu2 %v5847_v45  ;;  %1859 = vmatpush.msra.mxu3 %v5847_v45  ;;  %v796_v45 = vsub.f32 %v8215_v20, %v794_v53 }
 0x379   :  { %1730 = vmatmul.bf16.vlgmr.msrb.gmra.mxu2 %v7120_v41  ;;  %4606 = vmatmul.msk.bf16.vlgmr.msrb.gmra.mxu3 %vm247_vm10, %v7113_v30  ;;  %v5850_v30 = vld [vmem:[%s8151_s7 + $0xc8] sm:$0xff]  ;;  %v5851_v41 = vld [vmem:[%s8151_s7 + $0xc0] sm:$0xff] }
 0x37a   :  { %1901 = vmatpush.msra.mxu2 %v5848_v46  ;;  %1860 = vmatpush.msra.mxu3 %v5848_v46  ;;  %v8216_v46 = vld [vmem:[#allocation34_spill] sm:$0xff] }
 0x37b   :  { %1939 = vmatpush.msrb.mxu1 %v6751_v5  ;;  %v5853_v5 = vld [vmem:[%s8151_s7 + $0xb0] sm:$0xff]  ;;  %3298 = vmatpush.bf16.msrb.mxu0 %v4951_v0  ;;  %v4886_v0 = vld [vmem:[#allocation11 + $0x220] sm:$0xf] }
 0x37c   :  { %1902 = vmatpush.msra.mxu2 %v5849_v21  ;;  %1861 = vmatpush.msra.mxu3 %v5849_v21  ;;  %v798_v21 = vsub.f32 %v8216_v46, %v794_v53 }
 0x37e   :  { %1903 = vmatpush.msra.mxu2 %v5850_v30  ;;  %1862 = vmatpush.msra.mxu3 %v5850_v30  ;;  %v7275_v30 = vld [vmem:[#allocation9] ss:$4 sm:$0x3] }
 0x37f   :  { %v772_v9 = vperm.slane %v7275_v30, 0 }
 0x380   :  { %1904 = vmatpush.msra.mxu2 %v5851_v41  ;;  %1863 = vmatpush.msra.mxu3 %v5851_v41  ;;  %v758_v41 = vmul.f32 %v756_v7, %v752_v19 }
 0x382   :  { %1905 = vmatpush.msra.mxu2 %v5852_v3  ;;  %1864 = vmatpush.msra.mxu3 %v5852_v3  ;;  %v760_v3 = vmul.f32 %v756_v7, %v754_v25 }
 0x384   :  { %1906 = vmatpush.msra.mxu2 %v5853_v5  ;;  %1865 = vmatpush.msra.mxu3 %v5853_v5 }
 0x386   :  { %1907 = vmatpush.msra.mxu2 %v5854_v47  ;;  %1866 = vmatpush.msra.mxu3 %v5854_v47  ;;  %v802_v47 = vmul.f32 %v800_v12, %v796_v45 }
 0x388   :  { %1908 = vmatpush.msra.mxu2 %v5855_v49  ;;  %1867 = vmatpush.msra.mxu3 %v5855_v49  ;;  %v804_v49 = vmul.f32 %v800_v12, %v798_v21 }
 0x389   :  { %1735 = vmatmul.bf16.gmra.mxu2 %v7160_v18  ;;  %4607 = vmatmul.msk.bf16.gmra.mxu3 %vm247_vm10, %v7153_v36  ;;  %v7265_v18 = vld [vmem:[#allocation8] ss:$4 sm:$0x3] }
 0x38a   :  { %1909 = vmatpush.msra.mxu2 %v5856_v48  ;;  %1868 = vmatpush.msra.mxu3 %v5856_v48  ;;  %v763_v29 = vperm.slane %v7265_v18, 0  ;;  %v4902_v48 = vld [vmem:[#allocation11 + $0x240] sm:$0xf] }
 0x38c   :  { %1910 = vmatpush.msra.mxu2 %v5857_v54  ;;  %1869 = vmatpush.msra.mxu3 %v5857_v54  ;;  %v5640_v54 = vld [vmem:[#allocation11 + $0x24c] sm:$0xf0]  ;;  %v767_v60 = vmul.f32 %v763_v29, %v758_v41  ;;  %v769_v44 = vmul.f32 %v763_v29, %v760_v3  ;;  %v806_v15 = vmul.f32 %v802_v47, %v763_v29 }
 0x38d   :  { %v808_v32 = vmul.f32 %v804_v49, %v763_v29 }
 0x38e   :  { %1911 = vmatpush.msra.mxu2 %v5858_v42  ;;  %1870 = vmatpush.msra.mxu3 %v5858_v42 }
 0x390   :  { %1912 = vmatpush.msra.mxu2 %v5859_v56  ;;  %1871 = vmatpush.msra.mxu3 %v5859_v56  ;;  %v4903_v56 = vor.u32 %v5640_v54, %v4902_v48  ;;  %v1391_v48 = vld [vmem:[#allocation8 + $0x1] ss:$4 sm:$0x3] }
 0x392   :  { %1956 = vmatpush.msrb.mxu3 %v7248_v40 }
 0x394   :  { %1957 = vmatpush.msrb.mxu3 %v6732_v61 }
 0x396   :  { %1958 = vmatpush.msrb.mxu3 %v6744_v4  ;;  %v7258_v4 = vld [vmem:[#allocation6 + $0x2] ss:$4 sm:$0x3] }
 0x397   :  { %v7262_v36 = vperm.slane %v7258_v4, 0 }
 0x398   :  { %1959 = vmatpush.msrb.mxu3 %v6756_v6  ;;  %v4934_v6 = vld [vmem:[#allocation11 + $0x280] sm:$0xf] }
 0x399   :  { %v4935_v57 = vor.u32 %v5648_v52, %v4934_v6 }
 0x39b   :  { %3299 = vmatpush.bf16.msrb.mxu0 %v4935_v57  ;;  %v778_v57 = vadd.f32 %v772_v9, %v769_v44 }
 0x39f   :  { %3300 = vmatpush.bf16.msrb.mxu0 %v4919_v63 }
 0x3a3   :  { %3301 = vmatpush.bf16.msrb.mxu0 %v4903_v56  ;;  %v7313_v56 = vld [vmem:[#allocation9 + $0x1] ss:$4 sm:$0x3] }
 0x3ce   :  { %v7254_v16 = vpop.f32.mrf.mxu0  ;;  %v7256_v62 = vpop.f32.mrf.mxu1 }
 0x3cf   :  { %v1394_v12 = vperm.slane %v7254_v16, 0  ;;  %v1450_v39 = vperm.slane %v7254_v16, 1  ;;  %v7293_v25 = vperm.slane %v7256_v62, 0  ;;  %v7301_v16 = vperm.slane %v7256_v62, 1 }
 0x3d1   :  { %v1396_v41 = vsub.f32 %v6906_v26, %v1394_v12  ;;  %v1398_v29 = vsub.f32 %v6902_v31, %v1394_v12  ;;  %v1452_v47 = vsub.f32 %v6898_v35, %v1450_v39  ;;  %v1454_v54 = vsub.f32 %v6928_v27, %v1450_v39 }
 0x3d2   :  { %v1397_v26 = vsub.f32 %v6908_v55, %v7293_v25  ;;  %v1399_v31 = vsub.f32 %v6904_v50, %v7293_v25  ;;  %v1453_v44 = vsub.f32 %v6900_v37, %v7301_v16  ;;  %v1457_v27 = vsub.f32 %v6946_v51, %v7301_v16 }
 0x3d6   :  { %v1693_v61 = vpop.f32.mrf.mxu0  ;;  %v1712_v1 = vpop.f32.mrf.mxu1 }
 0x3d7   :  { %v1694_v38 = vadd.f32 %v1693_v61, %v7262_v36  ;;  %v5636_v61 = vld [vmem:[#allocation11 + $0x22c] sm:$0xf0] }
 0x3d8   :  { %v4887_v24 = vor.u32 %v5636_v61, %v4886_v0 }
 0x3d9   :  { %v1713_v42 = vadd.f32 %v1712_v1, %v1694_v38  ;;  %v776_v1 = vadd.f32 %v772_v9, %v767_v60 }
 0x3da   :  { %3302 = vmatpush.bf16.msrb.mxu0 %v4887_v24  ;;  %v5692_v24 = vld [vmem:[#allocation11 + $0x3ec] sm:$0xf0] }
 0x3db   :  { %v7281_v6 = vmax.f32 %v1713_v42, 0.0  ;;  %v7295_v38 = vmax.f32 %v776_v1, %v778_v57  ;;  %v1456_v42 = vsub.f32 %v6944_v22, %v1450_v39 }
 0x3dd   :  { %v1798_v17 = vmul.f32 %v7281_v6, %v7281_v6 }
 0x3de   :  { %v1695_v11 = vpop.f32.mrf.mxu0  ;;  %v1714_v10 = vpop.f32.mrf.mxu1 }
 0x3df   :  { %v1696_v58 = vadd.f32 %v1695_v11, %v7262_v36  ;;  %v810_v11 = vadd.f32 %v806_v15, %v772_v9  ;;  %v1422_v15 = vperm.slane %v7313_v56, 0 }
 0x3e1   :  { %v1715_v5 = vadd.f32 %v1714_v10, %v1696_v58  ;;  %v812_v10 = vadd.f32 %v808_v32, %v772_v9  ;;  %v4870_v58 = vld [vmem:[#allocation11 + $0x200] sm:$0xf]  ;;  %v1411_v9 = vperm.slane %v1391_v48, 0 }
 0x3e2   :  { %v4871_v23 = vor.u32 %v5632_v59, %v4870_v58 }
 0x3e3   :  { %v7279_v13 = vmax.f32 %v1715_v5, 0.0  ;;  %v7297_v21 = vmax.f32 %v810_v11, %v812_v10  ;;  %v1400_v5 = vsub.f32 %v6898_v35, %v1394_v12 }
 0x3e4   :  { %3303 = vmatpush.bf16.msrb.mxu0 %v4871_v23 }
 0x3e5   :  { %v1768_v53 = vadd.f32 %v7279_v13, %v7281_v6  ;;  %v1800_v7 = vmul.f32 %v7279_v13, %v7279_v13 }
 0x3e6   :  { %v1698_v14 = vpop.f32.mrf.mxu0  ;;  %v1717_v2 = vpop.f32.mrf.mxu1 }
 0x3e7   :  { %v1699_v52 = vadd.f32 %v1698_v14, %v7262_v36  ;;  %v1769_v63 = vrot.slane %v1768_v53, 4  ;;  %v1802_v20 = vadd.f32 %v1800_v7, %v1798_v17 }
 0x3e9   :  { %v1718_v19 = vadd.f32 %v1717_v2, %v1699_v52  ;;  %v1770_v35 = vadd.f32 %v1769_v63, %v1768_v53  ;;  %v1803_v60 = vrot.slane %v1802_v20, 4  ;;  %v5110_v52 = vld [vmem:[#allocation11 + $0x3e0] sm:$0xf]  ;;  %v7332_v53 = vperm.slane %v1391_v48, 1 }
 0x3ea   :  { %v5111_v7 = vor.u32 %v5692_v24, %v5110_v52 }
 0x3eb   :  { %v7307_v49 = vmax.f32 %v1718_v19, 0.0  ;;  %v1771_v1 = vrot.slane %v1770_v35, 2  ;;  %v1804_v57 = vadd.f32 %v1803_v60, %v1802_v20 }
 0x3ec   :  { %3309 = vmatpush.bf16.msrb.mxu2 %v5111_v7 }
 0x3ed   :  { %v1816_v14 = vmul.f32 %v7307_v49, %v7307_v49  ;;  %v1772_v24 = vadd.f32 %v1771_v1, %v1770_v35 }
 0x3ee   :  { %v1700_v45 = vpop.f32.mrf.mxu0  ;;  %v1719_v46 = vpop.f32.mrf.mxu1 }
 0x3ef   :  { %v1701_v3 = vadd.f32 %v1700_v45, %v7262_v36  ;;  %v1401_v36 = vsub.f32 %v6900_v37, %v7293_v25 }
 0x3f1   :  { %v1720_v62 = vadd.f32 %v1719_v46, %v1701_v3 }
 0x3f3   :  { %v7323_v22 = vmax.f32 %v1720_v62, 0.0 }
 0x3f4   :  { %v1367_v2 = vpop.f32.mrf.mxu2  ;;  %v1387_v32 = vpop.f32.mrf.mxu3 }
 0x3f5   :  { %v1782_v0 = vadd.f32 %v7323_v22, %v7307_v49  ;;  %v1818_v37 = vmul.f32 %v7323_v22, %v7323_v22  ;;  %v1402_v61 = vperm.slane %v1367_v2, 0  ;;  %v1458_v51 = vperm.slane %v1367_v2, 1 }
 0x3f6   :  { %v1403_v20 = vperm.slane %v1387_v32, 0 }
 0x3f7   :  { %v1783_v11 = vrot.slane %v1782_v0, 4  ;;  %v1820_v10 = vadd.f32 %v1818_v37, %v1816_v14  ;;  %v1404_v12 = vmul.f32 %v1402_v61, %v1396_v41  ;;  %v1406_v58 = vmul.f32 %v1402_v61, %v1398_v29 }
 0x3f8   :  { %v1408_v59 = vmul.f32 %v1402_v61, %v1400_v5  ;;  %v1460_v39 = vmul.f32 %v1458_v51, %v1452_v47  ;;  %v1462_v17 = vmul.f32 %v1458_v51, %v1454_v54  ;;  %v1464_v19 = vmul.f32 %v1458_v51, %v1456_v42 }
 0x3f9   :  { %v1784_v23 = vadd.f32 %v1783_v11, %v1782_v0  ;;  %v1821_v63 = vrot.slane %v1820_v10, 4  ;;  %v1415_v45 = vmul.f32 %v1411_v9, %v1404_v12  ;;  %v1417_v46 = vmul.f32 %v1411_v9, %v1406_v58 }
 0x3fa   :  { %v1419_v3 = vmul.f32 %v1411_v9, %v1408_v59  ;;  %v1466_v62 = vmul.f32 %v1460_v39, %v1411_v9  ;;  %v1470_v2 = vmul.f32 %v1464_v19, %v1411_v9  ;;  %v1468_v52 = vmul.f32 %v1462_v17, %v1411_v9 }
 0x3fb   :  { %v1785_v48 = vrot.slane %v1784_v23, 2  ;;  %v1426_v60 = vadd.f32 %v1422_v15, %v1415_v45  ;;  %v1459_v5 = vperm.slane %v1387_v32, 1  ;;  %v1822_v42 = vadd.f32 %v1821_v63, %v1820_v10  ;;  %v7347_v45 = vld [vmem:[#allocation11 + $0xe4] sm:$0xf] }
 0x3fc   :  { %v1430_v14 = vadd.f32 %v1422_v15, %v1419_v3  ;;  %v1472_v41 = vadd.f32 %v1466_v62, %v1422_v15  ;;  %v1476_v29 = vadd.f32 %v1470_v2, %v1422_v15  ;;  %v1731_v47 = vpop.f32.mrf.mxu2  ;;  %v1750_v54 = vpop.f32.mrf.mxu3  ;;  %v1428_v37 = vadd.f32 %v1422_v15, %v1417_v46 }
 0x3fd   :  { %v7335_v0 = vperm.slane %v7258_v4, 1  ;;  %v1805_v61 = vrot.slane %v1804_v57, 2  ;;  %v1409_v9 = vmul.f32 %v1403_v20, %v1401_v36  ;;  %v1786_v35 = vadd.f32 %v1785_v48, %v1784_v23  ;;  %v7349_v36 = vld [vmem:[#allocation11 + $0xf0] sm:$0xf0] }
 0x3fe   :  { %v1432_v51 = vsel %vm156_vm2, %v1430_v14, -inf  ;;  %v1479_v7 = vsel %vm1478_vm9, %v1472_v41, -inf  ;;  %v1481_v11 = vsel %vm1480_vm11, %v1476_v29, -inf  ;;  %v1474_v12 = vadd.f32 %v1468_v52, %v1422_v15 }
 0x3ff   :  { %v1433_v1 = vmax.f32 %v1426_v60, %v1432_v51  ;;  %v1482_v58 = vmax.f32 %v1479_v7, %v1481_v11  ;;  %v1405_v32 = vmul.f32 %v1403_v20, %v1397_v26  ;;  %v1461_v10 = vmul.f32 %v1459_v5, %v1453_v44 }
 0x400   :  { %v1465_v59 = vmul.f32 %v1459_v5, %v1457_v27  ;;  %v1773_v4 = vrot.slane %v1772_v24, 1  ;;  %v1420_v19 = vmul.f32 %v7332_v53, %v1409_v9  ;;  %v7345_v63 = vperm.slane %v7313_v56, 1 }
 0x401   :  { %v1434_v39 = vmax.f32 %v1433_v1, %v1428_v37  ;;  %v1483_v17 = vmax.f32 %v1482_v58, %v1474_v12  ;;  %v1823_v15 = vrot.slane %v1822_v42, 2  ;;  %v1467_v23 = vmul.f32 %v1461_v10, %v7332_v53  ;;  %v5094_v58 = vld [vmem:[#allocation11 + $0x3c0] sm:$0xf] }
 0x402   :  { %v1471_v55 = vmul.f32 %v1465_v59, %v7332_v53  ;;  %v1806_v26 = vadd.f32 %v1805_v61, %v1804_v57  ;;  %v1732_v46 = vadd.f32 %v1731_v47, %v7335_v0  ;;  %v1787_v3 = vrot.slane %v1786_v35, 1 }
 0x403   :  { %v1435_v44 = vrot.slane %v1434_v39, 4  ;;  %v1484_v27 = vrot.slane %v1483_v17, 4  ;;  %v1455_v62 = vsub.f32 %v6930_v28, %v7301_v16  ;;  %v1416_v56 = vmul.f32 %v7332_v53, %v1405_v32  ;;  %v5688_v32 = vld [vmem:[#allocation11 + $0x3cc] sm:$0xf0] }
 0x404   :  { %v1733_v2 = vpop.f32.mrf.mxu2  ;;  %v1752_v48 = vpop.f32.mrf.mxu3  ;;  %v1774_v60 = vadd.f32 %v1773_v4, %v1772_v24  ;;  %v4731_v52 = vor.u32 %v7347_v45, %v7349_v36  ;;  %v1431_v57 = vadd.f32 %v7345_v63, %v1420_v19  ;;  %v1473_v29 = vadd.f32 %v1467_v23, %v7345_v63 }
 0x405   :  { %v1436_v14 = vmax.f32 %v1434_v39, %v1435_v44  ;;  %v1485_v41 = vmax.f32 %v1483_v17, %v1484_v27  ;;  %v1477_v47 = vadd.f32 %v1471_v55, %v7345_v63  ;;  %v1734_v37 = vadd.f32 %v1733_v2, %v7335_v0  ;;  %v5590_v39 = vld [vmem:[#allocation11 + $0xc4] sm:$0xf]  ;;  %v4712_v17 = vld [vmem:[#allocation11 + $0xd0] sm:$0xf0]  ;;  %v5078_v27 = vld [vmem:[#allocation11 + $0x3a0] sm:$0xf] }
 0x406   :  { %v1788_v61 = vadd.f32 %v1787_v3, %v1786_v35  ;;  %v1807_v28 = vrot.slane %v1806_v26, 1  ;;  %v1407_v16 = vmul.f32 %v1403_v20, %v1399_v31  ;;  %v1463_v24 = vmul.f32 %v1459_v5, %v1455_v62 }
 0x407   :  { %v1751_v51 = vadd.f32 %v1750_v54, %v1732_v46  ;;  %v1824_v7 = vadd.f32 %v1823_v15, %v1822_v42  ;;  %v1753_v11 = vadd.f32 %v1752_v48, %v1734_v37  ;;  %v1437_v1 = vrot.slane %v1436_v14, 2  ;;  %v5684_v46 = vld [vmem:[#allocation11 + $0x3ac] sm:$0xf0] }
 0x408   :  { %v1796_v9 = vsel %vm156_vm2, %v1774_v60, %v1788_v61  ;;  %v1486_v12 = vrot.slane %v1485_v41, 2  ;;  %v1427_v10 = vadd.f32 %v7345_v63, %v1416_v56  ;;  %v1441_v59 = vsel %vm156_vm2, %v1431_v57, -inf  ;;  %v5862_v57 = vld [vmem:[%s8152_s8 + $0x10] sm:$0xff] }
 0x409   :  { %v1490_v35 = vsel %vm1478_vm9, %v1473_v29, -inf  ;;  %1852 = vmatmul.f32.vlgmr.msra.gmra.mxu1 %v1796_v9  ;;  %v1825_v4 = vrot.slane %v1824_v7, 1  ;;  %v1491_v50 = vsel %vm1480_vm11, %v1477_v47, -inf  ;;  %v7371_v25 = vmax.f32 %v1753_v11, 0.0  ;;  %v5863_v9 = vld [vmem:[%s8152_s8] sm:$0xff] }
 0x40a   :  { %v1438_v31 = vmax.f32 %v1436_v14, %v1437_v1  ;;  %v1487_v20 = vmax.f32 %v1485_v41, %v1486_v12  ;;  %1990 = vmatpush.msra.mxu1 %v7191_v8  ;;  %v7374_v5 = vmax.f32 %v1751_v51, 0.0  ;;  %v1808_v54 = vadd.f32 %v1807_v28, %v1806_v26  ;;  %v5861_v8 = vld [vmem:[%s8152_s8 + $0x20] sm:$0xff]  ;;  %v5680_v41 = vld [vmem:[#allocation11 + $0x38c] sm:$0xf0] }
 0x40b   :  { %v1826_v42 = vadd.f32 %v1825_v4, %v1824_v7  ;;  %v5095_v19 = vor.u32 %v5688_v32, %v5094_v58  ;;  %v1418_v45 = vmul.f32 %v7332_v53, %v1407_v16  ;;  %v1469_v36 = vmul.f32 %v1463_v24, %v7332_v53  ;;  %v5062_v14 = vld [vmem:[#allocation11 + $0x380] sm:$0xf]  ;;  %v5586_v51 = vld [vmem:[#allocation11 + $0xa4] sm:$0xf]  ;;  %v4696_v7 = vld [vmem:[#allocation11 + $0xb0] sm:$0xf0] }
 0x40c   :  { %v1736_v15 = vpop.f32.mrf.mxu2  ;;  %v1755_v23 = vpop.f32.mrf.mxu3  ;;  %v1439_v55 = vrot.slane %v1438_v31, 1  ;;  %v1488_v44 = vrot.slane %v1487_v20, 1  ;;  %1991 = vmatpush.msra.mxu1 %v5861_v8  ;;  %v1442_v26 = vmax.f32 %v1427_v10, %v1441_v59  ;;  %v1492_v3 = vmax.f32 %v1490_v35, %v1491_v50  ;;  %v5676_v35 = vld [vmem:[#allocation11 + $0x36c] sm:$0xf0] }
 0x40d   :  { %v1801_v62 = vmul.f32 %v7371_v25, %v7371_v25  ;;  %v1834_v56 = vsel %vm156_vm2, %v1808_v54, %v1826_v42  ;;  %3310 = vmatpush.bf16.msrb.mxu2 %v5095_v19  ;;  %v781_v53 = vrot.slane %v7295_v38, 4  ;;  %v1775_v2 = vadd.f32 %v7371_v25, %v7374_v5 }
 0x40e   :  { %1893 = vmatmul.f32.vlgmr.msra.gmra.mxu0 %v1834_v56  ;;  %v1440_v48 = vmax.f32 %v1438_v31, %v1439_v55  ;;  %v1489_v60 = vmax.f32 %v1487_v20, %v1488_v44  ;;  %1992 = vmatpush.msra.mxu1 %v5862_v57  ;;  %v1799_v29 = vmul.f32 %v7374_v5, %v7374_v5  ;;  %v815_v28 = vrot.slane %v7297_v21, 4  ;;  %v8217_v55 = vld [vmem:[#allocation29_spill] sm:$0xff] }
 0x40f   :  { %3348 = vmatpush.bf16.msra.mxu0 %v4731_v52  ;;  %v4715_v47 = vor.u32 %v5590_v39, %v4712_v17  ;;  %v1737_v37 = vadd.f32 %v1736_v15, %v7335_v0  ;;  %v5079_v61 = vor.u32 %v5684_v46, %v5078_v27  ;;  %v1429_v16 = vadd.f32 %v7345_v63, %v1418_v45  ;;  %v5582_v39 = vld [vmem:[#allocation11 + $0x84] sm:$0xf]  ;;  %v4680_v17 = vld [vmem:[#allocation11 + $0x90] sm:$0xf0]  ;;  %v5672_v46 = vld [vmem:[#allocation11 + $0x34c] sm:$0xf0] }
 0x410   :  { %v1475_v24 = vadd.f32 %v1469_v36, %v7345_v63  ;;  %v1500_v11 = vsel %vm156_vm2, %v1440_v48, %v1489_v60  ;;  %1993 = vmatpush.msra.mxu1 %v5863_v9  ;;  %v751_v52 = vperm.slane %v6892_v33, 0  ;;  %v1809_v1 = vadd.f32 %v1801_v62, %v1799_v29  ;;  %v5046_v63 = vld [vmem:[#allocation11 + $0x360] sm:$0xf]  ;;  %v8219_v56 = vld [vmem:[#allocation33_spill] sm:$0xff] }
 0x411   :  { %3311 = vmatpush.bf16.msrb.mxu2 %v5079_v61  ;;  %v5063_v12 = vor.u32 %v5680_v41, %v5062_v14  ;;  %v1443_v58 = vmax.f32 %v1442_v26, %v1429_v16  ;;  %v1776_v10 = vrot.slane %v1775_v2, 4  ;;  %v7401_v59 = vpack.c.bf16 %v1500_v11, %v1500_v11  ;;  %v5578_v14 = vld [vmem:[#allocation11 + $0x64] sm:$0xf] }
 0x412   :  { %v1493_v32 = vmax.f32 %v1492_v3, %v1475_v24  ;;  %v1756_v4 = vadd.f32 %v1755_v23, %v1737_v37  ;;  %v4699_v50 = vor.u32 %v5586_v51, %v4696_v7  ;;  %v795_v31 = vperm.slane %v6892_v33, 1  ;;  %v8220_v41 = vld [vmem:[#allocation35_spill] sm:$0xff]  ;;  %v5668_v7 = vld [vmem:[#allocation11 + $0x32c] sm:$0xf0] }
 0x413   :  { %3349 = vmatpush.bf16.msra.mxu0 %v4715_v47  ;;  %v782_v20 = vmax.f32 %v7295_v38, %v781_v53  ;;  %v816_v54 = vmax.f32 %v7297_v21, %v815_v28  ;;  %v7407_v42 = vperm.slane %v7265_v18, 1  ;;  %v7410_v45 = vperm.slane %v7275_v30, 1  ;;  %v5030_v21 = vld [vmem:[#allocation11 + $0x340] sm:$0xf] }
 0x414   :  { %v1738_v19 = vpop.f32.mrf.mxu2  ;;  %v1810_v36 = vrot.slane %v1809_v1, 4  ;;  %v5047_v23 = vor.u32 %v5676_v35, %v5046_v63  ;;  %v753_v33 = vsub.f32 %v8217_v55, %v751_v52  ;;  %v1444_v44 = vrot.slane %v1443_v58, 4  ;;  %v1757_v18 = vpop.f32.mrf.mxu3  ;;  %v5014_v51 = vld [vmem:[#allocation11 + $0x320] sm:$0xf]  ;;  %v5664_v55 = vld [vmem:[#allocation11 + $0x30c] sm:$0xf0] }
 0x415   :  { %v1739_v15 = vadd.f32 %v1738_v19, %v7335_v0  ;;  %3312 = vmatpush.bf16.msrb.mxu2 %v5063_v12  ;;  %v1494_v38 = vrot.slane %v1493_v32, 4  ;;  %v1777_v27 = vadd.f32 %v1776_v10, %v1775_v2  ;;  %v757_v8 = vperm.slane %v6896_v43, 0  ;;  %v8218_v0 = vld [vmem:[#allocation31_spill] sm:$0xff]  ;;  %v4664_v2 = vld [vmem:[#allocation11 + $0x70] sm:$0xf0] }
 0x416   :  { %3304 = vmatmul.bf16.vlgmr.msrb.gmra.mxu0 %v7401_v59  ;;  %v7416_v26 = vmax.f32 %v1756_v4, 0.0  ;;  %v4683_v30 = vor.u32 %v5582_v39, %v4680_v17  ;;  %v755_v62 = vsub.f32 %v8218_v0, %v751_v52  ;;  %v797_v53 = vsub.f32 %v8219_v56, %v795_v31  ;;  %v5574_v12 = vld [vmem:[#allocation11 + $0x44] sm:$0xf]  ;;  %v4648_v10 = vld [vmem:[#allocation11 + $0x50] sm:$0xf0] }
 0x417   :  { %3350 = vmatpush.bf16.msra.mxu0 %v4699_v50  ;;  %v1758_v3 = vadd.f32 %v1757_v18, %v1739_v15  ;;  %v783_v48 = vrot.slane %v782_v20, 2  ;;  %v817_v60 = vrot.slane %v816_v54, 2  ;;  %v799_v57 = vsub.f32 %v8220_v41, %v795_v31  ;;  %v5570_v15 = vld [vmem:[#allocation11 + $0x24] sm:$0xf]  ;;  %v4632_v18 = vld [vmem:[#allocation11 + $0x30] sm:$0xf0] }
 0x418   :  { %v1811_v29 = vadd.f32 %v1810_v36, %v1809_v1  ;;  %v5031_v37 = vor.u32 %v5672_v46, %v5030_v21  ;;  %v801_v61 = vperm.slane %v6896_v43, 1  ;;  %v1445_v28 = vmax.f32 %v1443_v58, %v1444_v44  ;;  %v4616_v41 = vld [vmem:[#allocation11 + $0x10] sm:$0xf0] }
 0x419   :  { %v7421_v47 = vmax.f32 %v1758_v3, 0.0  ;;  %3313 = vmatpush.bf16.msrb.mxu2 %v5047_v23  ;;  %v1495_v16 = vmax.f32 %v1493_v32, %v1494_v38  ;;  %v1778_v24 = vrot.slane %v1777_v27, 2  ;;  %v1817_v11 = vmul.f32 %v7416_v26, %v7416_v26  ;;  %v4998_v23 = vld [vmem:[#allocation11 + $0x300] sm:$0xf] }
 0x41a   :  { %v4667_v1 = vor.u32 %v5578_v14, %v4664_v2  ;;  %v759_v63 = vmul.f32 %v757_v8, %v753_v33  ;;  %v761_v43 = vmul.f32 %v757_v8, %v755_v62  ;;  %v784_v58 = vmax.f32 %v782_v20, %v783_v48  ;;  %v5566_v2 = vld [vmem:[#allocation11 + $0x4] sm:$0xf] }
 0x41b   :  { %3351 = vmatpush.bf16.msra.mxu0 %v4683_v30  ;;  %v1789_v9 = vadd.f32 %v7421_v47, %v7416_v26  ;;  %v1819_v52 = vmul.f32 %v7421_v47, %v7421_v47  ;;  %v818_v32 = vmax.f32 %v816_v54, %v817_v60  ;;  %v1812_v35 = vrot.slane %v1811_v29, 2 }
 0x41c   :  { %v5015_v31 = vor.u32 %v5668_v7, %v5014_v51  ;;  %v803_v39 = vmul.f32 %v801_v61, %v797_v53  ;;  %v805_v17 = vmul.f32 %v801_v61, %v799_v57  ;;  %v1779_v19 = vadd.f32 %v1778_v24, %v1777_v27 }
 0x41d   :  { %v1790_v4 = vrot.slane %v1789_v9, 4  ;;  %v1827_v50 = vadd.f32 %v1819_v52, %v1817_v11  ;;  %3314 = vmatpush.bf16.msrb.mxu2 %v5031_v37  ;;  %v4651_v36 = vor.u32 %v5574_v12, %v4648_v10  ;;  %v1446_v33 = vrot.slane %v1445_v28, 2  ;;  %v5626_v10 = vld [vmem:[#allocation11 + $0x1e4] sm:$0xf] }
 0x41e   :  { %v1496_v21 = vrot.slane %v1495_v16, 2  ;;  %v768_v20 = vmul.f32 %v7407_v42, %v759_v63  ;;  %v770_v54 = vmul.f32 %v7407_v42, %v761_v43  ;;  %v785_v46 = vrot.slane %v784_v58, 1  ;;  %v4856_v63 = vld [vmem:[#allocation11 + $0x1f0] sm:$0xf0] }
 0x41f   :  { %v1791_v44 = vadd.f32 %v1790_v4, %v1789_v9  ;;  %v1828_v38 = vrot.slane %v1827_v50, 4  ;;  %3352 = vmatpush.bf16.msra.mxu0 %v4667_v1  ;;  %v819_v8 = vrot.slane %v818_v32, 1  ;;  %v4999_v27 = vor.u32 %v5664_v55, %v4998_v23 }
 0x420   :  { %v1813_v0 = vadd.f32 %v1812_v35, %v1811_v29  ;;  %v807_v62 = vmul.f32 %v803_v39, %v7407_v42  ;;  %v809_v56 = vmul.f32 %v805_v17, %v7407_v42  ;;  %v4635_v53 = vor.u32 %v5570_v15, %v4632_v18  ;;  %v5618_v18 = vld [vmem:[#allocation11 + $0x1a4] sm:$0xf] }
 0x421   :  { %v1792_v30 = vrot.slane %v1791_v44, 2  ;;  %v1829_v3 = vadd.f32 %v1828_v38, %v1827_v50  ;;  %3315 = vmatpush.bf16.msrb.mxu2 %v5015_v31  ;;  %v1780_v48 = vrot.slane %v1779_v19, 1  ;;  %v1447_v57 = vmax.f32 %v1445_v28, %v1446_v33  ;;  %v5864_v38 = vld [vmem:[%s8152_s8 + $0x28] sm:$0xff]  ;;  %v4824_v33 = vld [vmem:[#allocation11 + $0x1b0] sm:$0xf0] }
 0x422   :  { %v1497_v37 = vmax.f32 %v1495_v16, %v1496_v21  ;;  %v777_v61 = vadd.f32 %v7410_v45, %v768_v20  ;;  %v786_v24 = vmax.f32 %v784_v58, %v785_v46  ;;  %v820_v51 = vmax.f32 %v818_v32, %v819_v8  ;;  %v5866_v8 = vld [vmem:[%s8152_s8 + $0x8] sm:$0xff] }
 0x423   :  { %v1793_v60 = vadd.f32 %v1792_v30, %v1791_v44  ;;  %v1830_v14 = vrot.slane %v1829_v3, 2  ;;  %3353 = vmatpush.bf16.msra.mxu0 %v4651_v36  ;;  %v779_v7 = vadd.f32 %v7410_v45, %v770_v54  ;;  %v1814_v11 = vrot.slane %v1813_v0, 1  ;;  %v4840_v36 = vld [vmem:[#allocation11 + $0x1d0] sm:$0xf0] }
 0x424   :  { %v811_v42 = vadd.f32 %v807_v62, %v7410_v45  ;;  %v813_v52 = vadd.f32 %v809_v56, %v7410_v45  ;;  %v4619_v1 = vor.u32 %v5566_v2, %v4616_v41  ;;  %v1781_v12 = vadd.f32 %v1780_v48, %v1779_v19  ;;  %v5622_v45 = vld [vmem:[#allocation11 + $0x1c4] sm:$0xf]  ;;  %v4792_v48 = vld [vmem:[#allocation11 + $0x170] sm:$0xf0] }
 0x425   :  { %v1794_v29 = vrot.slane %v1793_v60, 1  ;;  %3316 = vmatpush.bf16.msrb.mxu2 %v4999_v27  ;;  %v1831_v9 = vadd.f32 %v1830_v14, %v1829_v3  ;;  %v1448_v43 = vrot.slane %v1447_v57, 1  ;;  %v1498_v58 = vrot.slane %v1497_v37, 1  ;;  %v5614_v3 = vld [vmem:[#allocation11 + $0x184] sm:$0xf] }
 0x426   :  { %v828_v32 = vsel %vm156_vm2, %v786_v24, %v820_v51  ;;  %v1815_v4 = vadd.f32 %v1814_v11, %v1813_v0  ;;  %v4859_v31 = vor.u32 %v5626_v10, %v4856_v63  ;;  %v787_v39 = vmax.f32 %v777_v61, %v779_v7  ;;  %v4808_v27 = vld [vmem:[#allocation11 + $0x190] sm:$0xf0]  ;;  %v5606_v41 = vld [vmem:[#allocation11 + $0x144] sm:$0xf] }
 0x427   :  { %3354 = vmatpush.bf16.msra.mxu0 %v4635_v53  ;;  %v1795_v28 = vadd.f32 %v1794_v29, %v1793_v60  ;;  %v1832_v16 = vrot.slane %v1831_v9, 1  ;;  %v821_v17 = vmax.f32 %v811_v42, %v813_v52  ;;  %v1449_v15 = vmax.f32 %v1447_v57, %v1448_v43  ;;  %v5610_v53 = vld [vmem:[#allocation11 + $0x164] sm:$0xf]  ;;  %v4776_v57 = vld [vmem:[#allocation11 + $0x150] sm:$0xf0] }
 0x428   :  { %v1499_v23 = vmax.f32 %v1497_v37, %v1498_v58  ;;  %v7442_v55 = vpack.c.bf16 %v828_v32, %v828_v32  ;;  %v4843_v44 = vor.u32 %v5622_v45, %v4840_v36  ;;  %v788_v21 = vrot.slane %v787_v39, 4  ;;  %v5602_v51 = vld [vmem:[#allocation11 + $0x124] sm:$0xf]  ;;  %v4760_v7 = vld [vmem:[#allocation11 + $0x130] sm:$0xf0] }
 0x429   :  { %v1797_v35 = vsel %vm156_vm2, %v1781_v12, %v1795_v28  ;;  %v1833_v50 = vadd.f32 %v1832_v16, %v1831_v9  ;;  %v822_v20 = vrot.slane %v821_v17, 4  ;;  %v4827_v46 = vor.u32 %v5618_v18, %v4824_v33  ;;  %v5598_v42 = vld [vmem:[#allocation11 + $0x104] sm:$0xf]  ;;  %v4744_v52 = vld [vmem:[#allocation11 + $0x110] sm:$0xf0] }
 0x42a   :  { %1872 = vmatmul.f32.vlgmr.msra.gmra.mxu3 %v1797_v35  ;;  %v1501_v54 = vsel %vm156_vm2, %v1449_v15, %v1499_v23  ;;  %v789_v0 = vmax.f32 %v787_v39, %v788_v21  ;;  %v4811_v56 = vor.u32 %v5614_v3, %v4808_v27  ;;  %v4795_v2 = vor.u32 %v5610_v53, %v4792_v48  ;;  %v4726_v35 = vld [vmem:[#allocation11 + $0xe0] sm:$0xf]  ;;  %v5592_v18 = vld [vmem:[#allocation11 + $0xcc] sm:$0xf0] }
 0x42b   :  { %3355 = vmatpush.bf16.msra.mxu0 %v4619_v1  ;;  %v1835_v19 = vsel %vm156_vm2, %v1815_v4, %v1833_v50  ;;  %2010 = vmatpush.msra.mxu3 %v7248_v40  ;;  %v5865_v40 = vld [vmem:[%s8152_s8 + $0x18] sm:$0xff]  ;;  %v7455_v30 = vpack.c.bf16 %v1501_v54, %v1501_v54  ;;  %v823_v62 = vmax.f32 %v821_v17, %v822_v20  ;;  %v5596_v4 = vld [vmem:[#allocation11 + $0xec] sm:$0xf0]  ;;  %v4854_v50 = vld [vmem:[#allocation11 + $0x1e0] sm:$0xf] }
 0x42c   :  { %1913 = vmatmul.f32.vlgmr.msra.gmra.mxu2 %v1835_v19  ;;  %v790_v60 = vrot.slane %v789_v0, 2  ;;  %v4779_v24 = vor.u32 %v5606_v41, %v4776_v57  ;;  %v4763_v9 = vor.u32 %v5602_v51, %v4760_v7  ;;  %v4747_v10 = vor.u32 %v5598_v42, %v4744_v52  ;;  %v4710_v23 = vld [vmem:[#allocation11 + $0xc0] sm:$0xf]  ;;  %v5624_v21 = vld [vmem:[#allocation11 + $0x1cc] sm:$0xf0] }
 0x42d   :  { %3361 = vmatpush.bf16.msra.mxu2 %v4859_v31  ;;  %2011 = vmatpush.msra.mxu3 %v5864_v38  ;;  %v824_v14 = vrot.slane %v823_v62, 2  ;;  %v5628_v31 = vld [vmem:[#allocation11 + $0x1ec] sm:$0xf0]  ;;  %v4727_v19 = vor.u32 %v5596_v4, %v4726_v35  ;;  %v4838_v33 = vld [vmem:[#allocation11 + $0x1c0] sm:$0xf] }
 0x42e   :  { %3356 = vmatmul.bf16.vlgmr.msra.gmra.mxu0 %v7442_v55  ;;  %v791_v37 = vmax.f32 %v789_v0, %v790_v60  ;;  %v4855_v15 = vor.u32 %v5628_v31, %v4854_v50  ;;  %v4694_v3 = vld [vmem:[#allocation11 + $0xa0] sm:$0xf]  ;;  %v5588_v0 = vld [vmem:[#allocation11 + $0xac] sm:$0xf0]  ;;  %v5722_v57 = vld [vmem:[#allocation11 + $0x4e4] sm:$0xf] }
 0x42f   :  { %2012 = vmatpush.msra.mxu3 %v5865_v40  ;;  %v825_v61 = vmax.f32 %v823_v62, %v824_v14  ;;  %v4822_v62 = vld [vmem:[#allocation11 + $0x1a0] sm:$0xf]  ;;  %v5718_v7 = vld [vmem:[#allocation11 + $0x4c4] sm:$0xf]  ;;  %v5580_v52 = vld [vmem:[#allocation11 + $0x6c] sm:$0xf0] }
 0x430   :  { %v792_v29 = vrot.slane %v791_v37, 1  ;;  %v4678_v48 = vld [vmem:[#allocation11 + $0x80] sm:$0xf]  ;;  %v5576_v50 = vld [vmem:[#allocation11 + $0x4c] sm:$0xf0] }
 0x431   :  { %3362 = vmatpush.bf16.msra.mxu2 %v4843_v44  ;;  %2013 = vmatpush.msra.mxu3 %v5866_v8  ;;  %v826_v11 = vrot.slane %v825_v61, 1  ;;  %v4839_v8 = vor.u32 %v5624_v21, %v4838_v33  ;;  %v4806_v41 = vld [vmem:[#allocation11 + $0x180] sm:$0xf] }
 0x432   :  { %v793_v1 = vmax.f32 %v791_v37, %v792_v29  ;;  %v5224_v29 = vld [vmem:[#allocation11 + $0x4d0] sm:$0xf0]  ;;  %v4662_v42 = vld [vmem:[#allocation11 + $0x60] sm:$0xf] }
 0x433   :  { %v827_v12 = vmax.f32 %v825_v61, %v826_v11  ;;  %v5616_v61 = vld [vmem:[#allocation11 + $0x18c] sm:$0xf0]  ;;  %v4646_v35 = vld [vmem:[#allocation11 + $0x40] sm:$0xf] }
 0x434   :  { %3317 = vmatmul.bf16.vlgmr.msrb.gmra.mxu2 %v7455_v30  ;;  %v4774_v31 = vld [vmem:[#allocation11 + $0x140] sm:$0xf] }
 0x435   :  { %3363 = vmatpush.bf16.msra.mxu2 %v4827_v46  ;;  %v829_v63 = vsel %vm156_vm2, %v793_v1, %v827_v12  ;;  %v4711_v46 = vor.u32 %v5592_v18, %v4710_v23  ;;  %v4790_v1 = vld [vmem:[#allocation11 + $0x160] sm:$0xf]  ;;  %v5612_v12 = vld [vmem:[#allocation11 + $0x16c] sm:$0xf0] }
 0x436   :  { %v7459_v28 = vpack.c.bf16 %v829_v63, %v829_v63  ;;  %v5572_v23 = vld [vmem:[#allocation11 + $0x2c] sm:$0xf0]  ;;  %v7475_v33 = vld [vmem:[%s8156_s12] sm:$0xf] }
 0x439   :  { %3364 = vmatpush.bf16.msra.mxu2 %v4811_v56  ;;  %v5620_v56 = vld [vmem:[#allocation11 + $0x1ac] sm:$0xf0] }
 0x43a   :  { %v4823_v14 = vor.u32 %v5620_v56, %v4822_v62  ;;  %v5724_v62 = vld [vmem:[#allocation11 + $0x4ec] sm:$0xf0]  ;;  %v2303_v56 = vperm.slane %v7475_v33, 1 }
 0x43d   :  { %3365 = vmatpush.bf16.msra.mxu2 %v4795_v2  ;;  %v5584_v2 = vld [vmem:[#allocation11 + $0x8c] sm:$0xf0] }
 0x43e   :  { %v4679_v11 = vor.u32 %v5584_v2, %v4678_v48 }
 0x441   :  { %3366 = vmatpush.bf16.msra.mxu2 %v4779_v24  ;;  %v5240_v24 = vld [vmem:[#allocation11 + $0x4f0] sm:$0xf0] }
 0x442   :  { %v5243_v51 = vor.u32 %v5722_v57, %v5240_v24  ;;  %v5720_v57 = vld [vmem:[#allocation11 + $0x4cc] sm:$0xf0] }
 0x444   :  { %3400 = vmatpush.bf16.msrb.mxu0 %v5243_v51 }
 0x445   :  { %3367 = vmatpush.bf16.msra.mxu2 %v4763_v9  ;;  %v4807_v9 = vor.u32 %v5616_v61, %v4806_v41  ;;  %v5222_v41 = vld [vmem:[#allocation11 + $0x4c0] sm:$0xf] }
 0x446   :  { %v5223_v24 = vor.u32 %v5720_v57, %v5222_v41  ;;  %v5702_v57 = vld [vmem:[#allocation11 + $0x444] sm:$0xf] }
 0x449   :  { %3368 = vmatpush.bf16.msra.mxu2 %v4747_v10  ;;  %v5227_v10 = vor.u32 %v5718_v7, %v5224_v29  ;;  %v5366_v7 = vld [vmem:[#allocation11 + $0x5e0] sm:$0xf]  ;;  %v5756_v29 = vld [vmem:[#allocation11 + $0x5ec] sm:$0xf0] }
 0x44b   :  { %3401 = vmatpush.bf16.msrb.mxu0 %v5227_v10  ;;  %v5714_v10 = vld [vmem:[#allocation11 + $0x4a4] sm:$0xf] }
 0x44c   :  { %3369 = vmatmul.bf16.vlgmr.msra.gmra.mxu2 %v7459_v28 }
 0x486   :  { %v1853_v39 = vpop.f32.mrf.mxu1 }
 0x48b   :  { %v1894_v16 = vpop.f32.mrf.mxu0 }
 0x493   :  { %v7462_v43 = vpop.f32.mrf.mxu0 }
 0x49b   :  { %v3307_v58 = vpop.f32.mrf.mxu0 }
 0x49c   :  { %v4791_v58 = vor.u32 %v5612_v12, %v4790_v1 }
 0x4ab   :  { %v7464_v32 = vpop.f32.mrf.mxu0 }
 0x4ac   :  { %v3358_v2 = vadd.f32 %v7464_v32, %v2303_v56  ;;  %v5368_v32 = vld [vmem:[#allocation11 + $0x5f0] sm:$0xf0]  ;;  %v5744_v56 = vld [vmem:[#allocation11 + $0x58c] sm:$0xf0] }
 0x4ad   :  { %v1873_v17 = vpop.f32.mrf.mxu3 }
 0x4ae   :  { %v1874_v45 = vadd.f32 %v1873_v17, %v1853_v39  ;;  %v5608_v39 = vld [vmem:[#allocation11 + $0x14c] sm:$0xf0] }
 0x4af   :  { %v1914_v36 = vpop.f32.mrf.mxu2 }
 0x4b0   :  { %v1876_v44 = vmul.f32 %v1874_v45, %v6780_v34  ;;  %v1915_v38 = vadd.f32 %v1914_v36, %v1894_v16  ;;  %v4663_v16 = vor.u32 %v5580_v52, %v4662_v42  ;;  %v4647_v36 = vor.u32 %v5576_v50, %v4646_v35  ;;  %v5206_v42 = vld [vmem:[#allocation11 + $0x4a0] sm:$0xf]  ;;  %v5716_v52 = vld [vmem:[#allocation11 + $0x4ac] sm:$0xf0]  ;;  %v5352_v50 = vld [vmem:[#allocation11 + $0x5d0] sm:$0xf0] }
 0x4b1   :  { %v5207_v12 = vor.u32 %v5716_v52, %v5206_v42  ;;  %v5752_v35 = vld [vmem:[#allocation11 + $0x5cc] sm:$0xf0] }
 0x4b2   :  { %v1917_v20 = vmul.f32 %v1915_v38, %v6780_v34  ;;  %v1918_v54 = vmul.f32 %v1876_v44, %v1876_v44  ;;  %4608 = vmatmul.msk.f32.vlgmr.msrb.gmra.mxu1 %vm247_vm10, %v1876_v44  ;;  %4609 = vmatmul.msk.f32.vlgmr.msrb.gmra.mxu3 %vm247_vm10, %v1876_v44  ;;  %v4695_v34 = vor.u32 %v5588_v0, %v4694_v3  ;;  %v4758_v44 = vld [vmem:[#allocation11 + $0x120] sm:$0xf]  ;;  %v5604_v38 = vld [vmem:[#allocation11 + $0x12c] sm:$0xf0] }
 0x4b3   :  { %v3359_v40 = vpop.f32.mrf.mxu0  ;;  %3270 = vmatpush.bf16.msrb.mxu1 %v4727_v19  ;;  %3283 = vmatpush.bf16.msrb.mxu3 %v4855_v15  ;;  %v4775_v19 = vor.u32 %v5608_v39, %v4774_v31  ;;  %v4630_v15 = vld [vmem:[#allocation11 + $0x20] sm:$0xf]  ;;  %v5600_v3 = vld [vmem:[#allocation11 + $0x10c] sm:$0xf0] }
 0x4b4   :  { %v1919_v27 = vsub.f32 %v1917_v20, %v1918_v54  ;;  %v4631_v20 = vor.u32 %v5572_v23, %v4630_v15  ;;  %v4759_v54 = vor.u32 %v5604_v38, %v4758_v44  ;;  %v4614_v40 = vld [vmem:[#allocation11] sm:$0xf]  ;;  %v5192_v15 = vld [vmem:[#allocation11 + $0x490] sm:$0xf0]  ;;  %v5748_v44 = vld [vmem:[#allocation11 + $0x5ac] sm:$0xf0] }
 0x4b5   :  { %v5238_v0 = vld [vmem:[#allocation11 + $0x4e0] sm:$0xf]  ;;  %v5700_v42 = vld [vmem:[#allocation11 + $0x42c] sm:$0xf0] }
 0x4b6   :  { %v1920_v53 = vmax.f32 %v1919_v27, 0.0  ;;  %v5334_v23 = vld [vmem:[#allocation11 + $0x5a0] sm:$0xf] }
 0x4b7   :  { %v7470_v60 = vpop.f32.mrf.mxu2  ;;  %3271 = vmatpush.bf16.msrb.mxu1 %v4711_v46  ;;  %3284 = vmatpush.bf16.msrb.mxu3 %v4839_v8  ;;  %v5568_v46 = vld [vmem:[#allocation11 + $0xc] sm:$0xf0]  ;;  %v4742_v8 = vld [vmem:[#allocation11 + $0x100] sm:$0xf] }
 0x4b8   :  { %v1964_v37 = vadd.f32 1e-05, %v1920_v53  ;;  %v4615_v48 = vor.u32 %v5568_v46, %v4614_v40  ;;  %v5708_v46 = vld [vmem:[#allocation11 + $0x46c] sm:$0xf0] }
 0x4ba   :  { %5820 = vrsqrt.f32 %v1964_v37  ;;  %vm1971_vm13 = vweird.f32 %v1964_v37 }
 0x4bb   :  { %3272 = vmatpush.bf16.msrb.mxu1 %v4695_v34  ;;  %3285 = vmatpush.bf16.msrb.mxu3 %v4823_v14  ;;  %v4743_v34 = vor.u32 %v5600_v3, %v4742_v8  ;;  %v5239_v14 = vor.u32 %v5724_v62, %v5238_v0  ;;  %v5706_v8 = vld [vmem:[#allocation11 + $0x464] sm:$0xf]  ;;  %v5176_v3 = vld [vmem:[#allocation11 + $0x470] sm:$0xf0]  ;;  %v5318_v62 = vld [vmem:[#allocation11 + $0x580] sm:$0xf] }
 0x4bc   :  { %v5179_v0 = vor.u32 %v5706_v8, %v5176_v3 }
 0x4bf   :  { %v3320_v63 = vpop.f32.mrf.mxu2  ;;  %3273 = vmatpush.bf16.msrb.mxu1 %v4679_v11  ;;  %3286 = vmatpush.bf16.msrb.mxu3 %v4807_v9  ;;  %v5754_v11 = vld [vmem:[#allocation11 + $0x5e4] sm:$0xf]  ;;  %v5367_v9 = vor.u32 %v5756_v29, %v5366_v7  ;;  %v5740_v7 = vld [vmem:[#allocation11 + $0x56c] sm:$0xf0] }
 0x4c0   :  { %v5821_v4 = vpop.eup %5820  ;;  %v5371_v1 = vor.u32 %v5754_v11, %v5368_v32  ;;  %v5208_v63 = vld [vmem:[#allocation11 + $0x4b0] sm:$0xf0]  ;;  %v5738_v29 = vld [vmem:[#allocation11 + $0x564] sm:$0xf]  ;;  %v5142_v32 = vld [vmem:[#allocation11 + $0x420] sm:$0xf] }
 0x4c1   :  { %v1966_v17 = vmul.f32 %v5821_v4, %v1964_v37  ;;  %vm1972_vm12 = vweird.f32 %v5821_v4  ;;  %v5304_v11 = vld [vmem:[#allocation11 + $0x570] sm:$0xf0] }
 0x4c2   :  { %vm1973_vm14 = vmor %vm1971_vm13, %vm1972_vm12  ;;  %3413 = vmatpush.bf16.msrb.mxu2 %v5371_v1  ;;  %v5698_v1 = vld [vmem:[#allocation11 + $0x424] sm:$0xf] }
 0x4c3   :  { %v1967_v45 = vmul.f32 %v5821_v4, %v1966_v17  ;;  %3274 = vmatpush.bf16.msrb.mxu1 %v4663_v16  ;;  %3287 = vmatpush.bf16.msrb.mxu3 %v4791_v58  ;;  %v5350_v16 = vld [vmem:[#allocation11 + $0x5c0] sm:$0xf]  ;;  %v5211_v58 = vor.u32 %v5714_v10, %v5208_v63  ;;  %v5307_v10 = vor.u32 %v5738_v29, %v5304_v11 }
 0x4c4   :  { %v5351_v31 = vor.u32 %v5752_v35, %v5350_v16  ;;  %v5190_v17 = vld [vmem:[#allocation11 + $0x480] sm:$0xf]  ;;  %v5736_v16 = vld [vmem:[#allocation11 + $0x54c] sm:$0xf0]  ;;  %v5734_v35 = vld [vmem:[#allocation11 + $0x544] sm:$0xf] }
 0x4c5   :  { %v1968_v18 = vmul.f32 0.5, %v1967_v45  ;;  %3402 = vmatpush.bf16.msrb.mxu0 %v5211_v58  ;;  %v5712_v45 = vld [vmem:[#allocation11 + $0x48c] sm:$0xf0]  ;;  %v5286_v63 = vld [vmem:[#allocation11 + $0x540] sm:$0xf]  ;;  %v5143_v58 = vor.u32 %v5700_v42, %v5142_v32 }
 0x4c6   :  { %v5693_v32 = vld [vmem:[#allocation11 + $0x3f4] sm:$0xf0]  ;;  %v5650_v42 = vld [vmem:[#allocation11 + $0x2a4] sm:$0xf] }
 0x4c7   :  { %3275 = vmatpush.bf16.msrb.mxu1 %v4647_v36  ;;  %3288 = vmatpush.bf16.msrb.mxu3 %v4775_v19  ;;  %v1969_v21 = vsub.f32 1.5, %v1968_v18  ;;  %v5710_v36 = vld [vmem:[#allocation11 + $0x484] sm:$0xf]  ;;  %v5191_v19 = vor.u32 %v5712_v45, %v5190_v17  ;;  %v5335_v18 = vor.u32 %v5748_v44, %v5334_v23  ;;  %v5128_v45 = vld [vmem:[#allocation11 + $0x410] sm:$0xf0] }
 0x4c8   :  { %v5195_v38 = vor.u32 %v5710_v36, %v5192_v15  ;;  %v5694_v17 = vld [vmem:[#allocation11 + $0x404] sm:$0xf]  ;;  %v5287_v36 = vor.u32 %v5736_v16, %v5286_v63  ;;  %v4984_v15 = vld [vmem:[#allocation11 + $0x2f0] sm:$0xf0]  ;;  %v4990_v23 = vld [vmem:[#allocation11 + $0x2e8] sm:$0xf] }
 0x4c9   :  { %v1970_v27 = vmul.f32 %v5821_v4, %v1969_v21  ;;  %v5746_v21 = vld [vmem:[#allocation11 + $0x5a4] sm:$0xf]  ;;  %v5653_v63 = vld [vmem:[#allocation11 + $0x2b4] sm:$0xf0] }
 0x4ca   :  { %3403 = vmatpush.bf16.msrb.mxu0 %v5195_v38  ;;  %v5661_v38 = vld [vmem:[#allocation11 + $0x2f4] sm:$0xf0] }
 0x4cb   :  { %v1974_v53 = vsel %vm1973_vm14, %v5821_v4, %v1970_v27  ;;  %3276 = vmatpush.bf16.msrb.mxu1 %v4631_v20  ;;  %3289 = vmatpush.bf16.msrb.mxu3 %v4759_v54  ;;  %v5750_v4 = vld [vmem:[#allocation11 + $0x5c4] sm:$0xf]  ;;  %v5336_v20 = vld [vmem:[#allocation11 + $0x5b0] sm:$0xf0]  ;;  %v5174_v54 = vld [vmem:[#allocation11 + $0x460] sm:$0xf]  ;;  %v4991_v3 = vor.u32 %v5661_v38, %v4990_v23 }
 0x4cc   :  { %4610 = vmatmul.msk.f32.vlgmr.msra.gmra.mxu1 %vm247_vm10, %v1974_v53  ;;  %4611 = vmatmul.msk.f32.vlgmr.msra.gmra.mxu3 %vm247_vm10, %v1974_v53  ;;  %v5355_v39 = vor.u32 %v5750_v4, %v5352_v50  ;;  %v5339_v40 = vor.u32 %v5746_v21, %v5336_v20  ;;  %v5175_v27 = vor.u32 %v5708_v46, %v5174_v54  ;;  %v5742_v53 = vld [vmem:[#allocation11 + $0x584] sm:$0xf]  ;;  %v5288_v4 = vld [vmem:[#allocation11 + $0x550] sm:$0xf0]  ;;  %v5126_v50 = vld [vmem:[#allocation11 + $0x400] sm:$0xf] }
 0x4cd   :  { %v5291_v44 = vor.u32 %v5734_v35, %v5288_v4  ;;  %v5732_v21 = vld [vmem:[#allocation11 + $0x52c] sm:$0xf0]  ;;  %v5730_v54 = vld [vmem:[#allocation11 + $0x524] sm:$0xf]  ;;  %v5131_v46 = vor.u32 %v5694_v17, %v5128_v45  ;;  %v5096_v35 = vld [vmem:[#allocation11 + $0x3d0] sm:$0xf0] }
 0x4ce   :  { %3414 = vmatpush.bf16.msrb.mxu2 %v5355_v39  ;;  %3404 = vmatpush.bf16.msrb.mxu0 %v5179_v0  ;;  %v5696_v39 = vld [vmem:[#allocation11 + $0x40c] sm:$0xf0]  ;;  %v5102_v4 = vld [vmem:[#allocation11 + $0x3c8] sm:$0xf]  ;;  %v5646_v45 = vld [vmem:[#allocation11 + $0x284] sm:$0xf] }
 0x4cf   :  { %v3370_v37 = vpop.f32.mrf.mxu2  ;;  %3277 = vmatpush.bf16.msrb.mxu1 %v4615_v48  ;;  %3290 = vmatpush.bf16.msrb.mxu3 %v4743_v34  ;;  %v5319_v48 = vor.u32 %v5744_v56, %v5318_v62  ;;  %v5320_v34 = vld [vmem:[#allocation11 + $0x590] sm:$0xf0]  ;;  %v5127_v20 = vor.u32 %v5696_v39, %v5126_v50  ;;  %v5654_v62 = vld [vmem:[#allocation11 + $0x2c4] sm:$0xf]  ;;  %v5649_v23 = vld [vmem:[#allocation11 + $0x294] sm:$0xf0] }
 0x4d0   :  { %v7481_v61 = vadd.f32 %v3370_v37, %v3358_v2  ;;  %v5704_v2 = vld [vmem:[#allocation11 + $0x44c] sm:$0xf0]  ;;  %v5323_v41 = vor.u32 %v5742_v53, %v5320_v34  ;;  %v5160_v37 = vld [vmem:[#allocation11 + $0x450] sm:$0xf0]  ;;  %v4974_v53 = vld [vmem:[#allocation11 + $0x2c8] sm:$0xf] }
 0x4d1   :  { %v4968_v56 = vld [vmem:[#allocation11 + $0x2d0] sm:$0xf0]  ;;  %v5657_v34 = vld [vmem:[#allocation11 + $0x2d4] sm:$0xf0]  ;;  %v5682_v38 = vld [vmem:[#allocation11 + $0x3a4] sm:$0xf] }
 0x4d2   :  { %3415 = vmatpush.bf16.msrb.mxu2 %v5339_v40  ;;  %v5272_v40 = vld [vmem:[#allocation11 + $0x530] sm:$0xf0] }
 0x4d3   :  { %3322 = vmatpush.bf16.msra.mxu1 %v5239_v14  ;;  %3335 = vmatpush.bf16.msra.mxu3 %v5367_v9  ;;  %v5158_v14 = vld [vmem:[#allocation11 + $0x440] sm:$0xf]  ;;  %v5163_v9 = vor.u32 %v5702_v57, %v5160_v37  ;;  %v5275_v0 = vor.u32 %v5730_v54, %v5272_v40  ;;  %v5726_v57 = vld [vmem:[#allocation11 + $0x504] sm:$0xf]  ;;  %v5256_v37 = vld [vmem:[#allocation11 + $0x510] sm:$0xf0] }
 0x4d4   :  { %3278 = vmatmul.bf16.vlgmr.msrb.gmra.mxu1 %v7442_v55  ;;  %3291 = vmatmul.bf16.vlgmr.msrb.gmra.mxu3 %v7459_v28  ;;  %v5259_v11 = vor.u32 %v5726_v57, %v5256_v37  ;;  %v5638_v57 = vld [vmem:[#allocation11 + $0x244] sm:$0xf] }
 0x4d5   :  { %3405 = vmatpush.bf16.msrb.mxu0 %v5163_v9 }
 0x4d6   :  { %3416 = vmatpush.bf16.msrb.mxu2 %v5323_v41  ;;  %v5728_v41 = vld [vmem:[#allocation11 + $0x50c] sm:$0xf0] }
 0x4d7   :  { %3323 = vmatpush.bf16.msra.mxu1 %v5223_v24  ;;  %v3372_v51 = vpop.f32.mrf.mxu2  ;;  %3336 = vmatpush.bf16.msra.mxu3 %v5351_v31  ;;  %v5302_v24 = vld [vmem:[#allocation11 + $0x560] sm:$0xf] }
 0x4d8   :  { %v5159_v51 = vor.u32 %v5704_v2, %v5158_v14  ;;  %v5303_v52 = vor.u32 %v5740_v7, %v5302_v24  ;;  %v5254_v14 = vld [vmem:[#allocation11 + $0x500] sm:$0xf]  ;;  %v4975_v2 = vor.u32 %v5657_v34, %v4974_v53  ;;  %v5690_v24 = vld [vmem:[#allocation11 + $0x3e4] sm:$0xf]  ;;  %v5118_v7 = vld [vmem:[#allocation11 + $0x3e8] sm:$0xf] }
 0x4d9   :  { %v5255_v29 = vor.u32 %v5728_v41, %v5254_v14  ;;  %v5645_v53 = vld [vmem:[#allocation11 + $0x274] sm:$0xf0]  ;;  %v5064_v34 = vld [vmem:[#allocation11 + $0x390] sm:$0xf0] }
 0x4da   :  { %3417 = vmatpush.bf16.msrb.mxu2 %v5307_v10  ;;  %v4958_v10 = vld [vmem:[#allocation11 + $0x2a8] sm:$0xf]  ;;  %v5681_v41 = vld [vmem:[#allocation11 + $0x394] sm:$0xf0] }
 0x4db   :  { %3324 = vmatpush.bf16.msra.mxu1 %v5207_v12  ;;  %3337 = vmatpush.bf16.msra.mxu3 %v5335_v18  ;;  %v5144_v12 = vld [vmem:[#allocation11 + $0x430] sm:$0xf0]  ;;  %v5270_v18 = vld [vmem:[#allocation11 + $0x520] sm:$0xf]  ;;  %v4959_v16 = vor.u32 %v5653_v63, %v4958_v10  ;;  %v5677_v10 = vld [vmem:[#allocation11 + $0x374] sm:$0xf0] }
 0x4dc   :  { %v5147_v31 = vor.u32 %v5698_v1, %v5144_v12  ;;  %v5119_v1 = vor.u32 %v5693_v32, %v5118_v7  ;;  %v4904_v7 = vld [vmem:[#allocation11 + $0x250] sm:$0xf0]  ;;  %v5634_v63 = vld [vmem:[#allocation11 + $0x224] sm:$0xf] }
 0x4de   :  { %3406 = vmatpush.bf16.msrb.mxu0 %v5147_v31  ;;  %3418 = vmatpush.bf16.msrb.mxu2 %v5291_v44  ;;  %v5689_v31 = vld [vmem:[#allocation11 + $0x3d4] sm:$0xf0] }
 0x4df   :  { %3325 = vmatpush.bf16.msra.mxu1 %v5191_v19  ;;  %3338 = vmatpush.bf16.msra.mxu3 %v5319_v48  ;;  %v5658_v19 = vld [vmem:[#allocation11 + $0x2e4] sm:$0xf]  ;;  %v4971_v48 = vor.u32 %v5654_v62, %v4968_v56  ;;  %v5103_v17 = vor.u32 %v5689_v31, %v5102_v4  ;;  %v7489_v62 = vld [vmem:[#allocation8 + $0x2] ss:$4 sm:$0x3] }
 0x4e0   :  { %v4987_v8 = vor.u32 %v5658_v19, %v4984_v15  ;;  %v4942_v19 = vld [vmem:[#allocation11 + $0x288] sm:$0xf] }
 0x4e1   :  { %v4943_v44 = vor.u32 %v5649_v23, %v4942_v19  ;;  %v4894_v4 = vld [vmem:[#allocation11 + $0x228] sm:$0xf] }
 0x4e2   :  { %3407 = vmatpush.bf16.msrb.mxu0 %v5131_v46  ;;  %3419 = vmatpush.bf16.msrb.mxu2 %v5275_v0  ;;  %v5685_v46 = vld [vmem:[#allocation11 + $0x3b4] sm:$0xf0]  ;;  %v4926_v0 = vld [vmem:[#allocation11 + $0x268] sm:$0xf] }
 0x4e3   :  { %3326 = vmatpush.bf16.msra.mxu1 %v5175_v27  ;;  %3339 = vmatpush.bf16.msra.mxu3 %v5303_v52  ;;  %v5271_v27 = vor.u32 %v5732_v21, %v5270_v18  ;;  %v4952_v52 = vld [vmem:[#allocation11 + $0x2b0] sm:$0xf0]  ;;  %v5086_v21 = vld [vmem:[#allocation11 + $0x3a8] sm:$0xf]  ;;  %v4927_v14 = vor.u32 %v5645_v53, %v4926_v0 }
 0x4e4   :  { %v4955_v12 = vor.u32 %v5650_v42, %v4952_v52  ;;  %v5080_v18 = vld [vmem:[#allocation11 + $0x3b0] sm:$0xf0]  ;;  %v5674_v42 = vld [vmem:[#allocation11 + $0x364] sm:$0xf]  ;;  %v5038_v19 = vld [vmem:[#allocation11 + $0x348] sm:$0xf] }
 0x4e5   :  { %v5083_v40 = vor.u32 %v5682_v38, %v5080_v18  ;;  %v5048_v52 = vld [vmem:[#allocation11 + $0x370] sm:$0xf0]  ;;  %v5673_v18 = vld [vmem:[#allocation11 + $0x354] sm:$0xf0] }
 0x4e6   :  { %3452 = vmatpush.bf16.msra.mxu0 %v4991_v3  ;;  %3420 = vmatpush.bf16.msrb.mxu2 %v5259_v11  ;;  %v5642_v3 = vld [vmem:[#allocation11 + $0x264] sm:$0xf]  ;;  %v5641_v11 = vld [vmem:[#allocation11 + $0x254] sm:$0xf0] }
 0x4e7   :  { %3327 = vmatpush.bf16.msra.mxu1 %v5159_v51  ;;  %3340 = vmatpush.bf16.msra.mxu3 %v5287_v36  ;;  %v5112_v51 = vld [vmem:[#allocation11 + $0x3f0] sm:$0xf0] }
 0x4e8   :  { %v5115_v9 = vor.u32 %v5690_v24, %v5112_v51  ;;  %v4936_v36 = vld [vmem:[#allocation11 + $0x290] sm:$0xf0] }
 0x4e9   :  { %v4939_v15 = vor.u32 %v5646_v45, %v4936_v36  ;;  %v5670_v45 = vld [vmem:[#allocation11 + $0x344] sm:$0xf]  ;;  %v5032_v36 = vld [vmem:[#allocation11 + $0x350] sm:$0xf0] }
 0x4ea   :  { %3453 = vmatpush.bf16.msra.mxu0 %v4975_v2  ;;  %3465 = vmatpush.bf16.msra.mxu2 %v5119_v1  ;;  %v5070_v2 = vld [vmem:[#allocation11 + $0x388] sm:$0xf] }
 0x4eb   :  { %3328 = vmatpush.bf16.msra.mxu1 %v5143_v58  ;;  %3341 = vmatpush.bf16.msra.mxu3 %v5271_v27  ;;  %v5686_v58 = vld [vmem:[#allocation11 + $0x3c4] sm:$0xf]  ;;  %v4920_v27 = vld [vmem:[#allocation11 + $0x270] sm:$0xf0]  ;;  %v5071_v51 = vor.u32 %v5681_v41, %v5070_v2  ;;  %v5054_v1 = vld [vmem:[#allocation11 + $0x368] sm:$0xf] }
 0x4ec   :  { %v5099_v50 = vor.u32 %v5686_v58, %v5096_v35  ;;  %v4923_v56 = vor.u32 %v5642_v3, %v4920_v27  ;;  %v2035_v35 = vperm.slane %v7489_v62, 0  ;;  %v5633_v3 = vld [vmem:[#allocation11 + $0x214] sm:$0xf0]  ;;  %v5666_v2 = vld [vmem:[#allocation11 + $0x324] sm:$0xf] }
 0x4ed   :  { %v5016_v41 = vld [vmem:[#allocation11 + $0x330] sm:$0xf0] }
 0x4ee   :  { %3454 = vmatpush.bf16.msra.mxu0 %v4959_v16  ;;  %3466 = vmatpush.bf16.msra.mxu2 %v5103_v17  ;;  %v4888_v16 = vld [vmem:[#allocation11 + $0x230] sm:$0xf0]  ;;  %v5051_v17 = vor.u32 %v5674_v42, %v5048_v52  ;;  %v2036_v42 = vperm.slane %v7489_v62, 1  ;;  %v5019_v52 = vor.u32 %v5666_v2, %v5016_v41 }
 0x4ef   :  { %3329 = vmatpush.bf16.msra.mxu1 %v5127_v20  ;;  %3342 = vmatpush.bf16.msra.mxu3 %v5255_v29  ;;  %v4910_v29 = vld [vmem:[#allocation11 + $0x248] sm:$0xf]  ;;  %v4891_v38 = vor.u32 %v5634_v63, %v4888_v16 }
 0x4f0   :  { %v4911_v32 = vor.u32 %v5641_v11, %v4910_v29  ;;  %v5669_v29 = vld [vmem:[#allocation11 + $0x334] sm:$0xf0] }
 0x4f2   :  { %3455 = vmatpush.bf16.msra.mxu0 %v4943_v44  ;;  %v5055_v44 = vor.u32 %v5677_v10, %v5054_v1 }
 0x4f3   :  { %3374 = vmatpush.bf16.msrb.mxu1 %v4987_v8  ;;  %3387 = vmatpush.bf16.msrb.mxu3 %v5115_v9  ;;  %v5087_v8 = vor.u32 %v5685_v46, %v5086_v21  ;;  %v4907_v9 = vor.u32 %v5638_v57, %v4904_v7  ;;  %v5630_v21 = vld [vmem:[#allocation11 + $0x204] sm:$0xf] }
 0x4f5   :  { %3467 = vmatpush.bf16.msra.mxu2 %v5087_v8  ;;  %v4878_v8 = vld [vmem:[#allocation11 + $0x208] sm:$0xf] }
 0x4f6   :  { %3456 = vmatpush.bf16.msra.mxu0 %v4927_v14  ;;  %v4879_v57 = vor.u32 %v5633_v3, %v4878_v8 }
 0x4f7   :  { %3375 = vmatpush.bf16.msrb.mxu1 %v4971_v48  ;;  %3388 = vmatpush.bf16.msrb.mxu3 %v5099_v50  ;;  %v5678_v48 = vld [vmem:[#allocation11 + $0x384] sm:$0xf]  ;;  %v5637_v50 = vld [vmem:[#allocation11 + $0x234] sm:$0xf0] }
 0x4f8   :  { %v5067_v24 = vor.u32 %v5678_v48, %v5064_v34 }
 0x4f9   :  { %3468 = vmatpush.bf16.msra.mxu2 %v5071_v51 }
 0x4fa   :  { %3457 = vmatpush.bf16.msra.mxu0 %v4911_v32 }
 0x4fb   :  { %3376 = vmatpush.bf16.msrb.mxu1 %v4955_v12  ;;  %3389 = vmatpush.bf16.msrb.mxu3 %v5083_v40  ;;  %v7493_v12 = vld [vmem:[#allocation9 + $0x2] ss:$4 sm:$0x3]  ;;  %v4872_v40 = vld [vmem:[#allocation11 + $0x210] sm:$0xf0] }
 0x4fd   :  { %3469 = vmatpush.bf16.msra.mxu2 %v5055_v44 }
 0x4ff   :  { %3377 = vmatpush.bf16.msrb.mxu1 %v4939_v15  ;;  %3390 = vmatpush.bf16.msrb.mxu3 %v5067_v24 }
 0x503   :  { %3378 = vmatpush.bf16.msrb.mxu1 %v4923_v56  ;;  %v5035_v56 = vor.u32 %v5670_v45, %v5032_v36  ;;  %3391 = vmatpush.bf16.msrb.mxu3 %v5051_v17  ;;  %v2045_v36 = vperm.slane %v7493_v12, 1 }
 0x507   :  { %3379 = vmatpush.bf16.msrb.mxu1 %v4907_v9  ;;  %3392 = vmatpush.bf16.msrb.mxu3 %v5035_v56 }
 0x50b   :  { %3380 = vmatpush.bf16.msrb.mxu1 %v4891_v38  ;;  %3393 = vmatpush.bf16.msrb.mxu3 %v5019_v52 }
 0x52f   :  { %v7485_v39 = vpop.f32.mrf.mxu1 }
 0x530   :  { %v2022_v20 = vperm.slane %v7485_v39, 0  ;;  %v2066_v54 = vperm.slane %v7485_v39, 1 }
 0x532   :  { %v2024_v31 = vsub.f32 %v7281_v6, %v2022_v20  ;;  %v2026_v39 = vsub.f32 %v7279_v13, %v2022_v20  ;;  %v2068_v15 = vsub.f32 %v7307_v49, %v2066_v54  ;;  %v2070_v6 = vsub.f32 %v7323_v22, %v2066_v54 }
 0x533   :  { %v4895_v20 = vor.u32 %v5637_v50, %v4894_v4  ;;  %v2044_v49 = vperm.slane %v7493_v12, 0  ;;  %v5039_v22 = vor.u32 %v5673_v18, %v5038_v19  ;;  %v4875_v54 = vor.u32 %v5630_v21, %v4872_v40  ;;  %v5662_v4 = vld [vmem:[#allocation11 + $0x304] sm:$0xf]  ;;  %v5000_v50 = vld [vmem:[#allocation11 + $0x310] sm:$0xf0] }
 0x534   :  { %v2302_v19 = vperm.slane %v7475_v33, 0  ;;  %v5003_v21 = vor.u32 %v5662_v4, %v5000_v50 }
 0x535   :  { %v7491_v37 = vpop.f32.mrf.mxu3  ;;  %3458 = vmatpush.bf16.msra.mxu0 %v4895_v20  ;;  %3470 = vmatpush.bf16.msra.mxu2 %v5039_v22 }
 0x536   :  { %v2023_v58 = vperm.slane %v7491_v37, 0  ;;  %v2067_v0 = vperm.slane %v7491_v37, 1  ;;  %v5022_v37 = vld [vmem:[#allocation11 + $0x328] sm:$0xf]  ;;  %3381 = vmatpush.bf16.msrb.mxu1 %v4875_v54  ;;  %3394 = vmatpush.bf16.msrb.mxu3 %v5003_v21 }
 0x538   :  { %v2025_v27 = vsub.f32 %v7374_v5, %v2023_v58  ;;  %v2027_v11 = vsub.f32 %v7371_v25, %v2023_v58  ;;  %v2069_v9 = vsub.f32 %v7416_v26, %v2067_v0  ;;  %v5023_v25 = vor.u32 %v5669_v29, %v5022_v37  ;;  %v5006_v26 = vld [vmem:[#allocation11 + $0x308] sm:$0xf]  ;;  %v5665_v58 = vld [vmem:[#allocation11 + $0x314] sm:$0xf0] }
 0x539   :  { %3459 = vmatpush.bf16.msra.mxu0 %v4879_v57  ;;  %v5007_v40 = vor.u32 %v5665_v58, %v5006_v26  ;;  %v5591_v26 = vld [vmem:[#allocation11 + $0xcc] sm:$0xf]  ;;  %v4720_v58 = vld [vmem:[#allocation11 + $0xd8] sm:$0xf0] }
 0x53a   :  { %3471 = vmatpush.bf16.msra.mxu2 %v5023_v25  ;;  %v5593_v25 = vld [vmem:[#allocation11 + $0xd4] sm:$0xf0] }
 0x53e   :  { %3472 = vmatpush.bf16.msra.mxu2 %v5007_v40  ;;  %v5589_v40 = vld [vmem:[#allocation11 + $0xb4] sm:$0xf0] }
 0x549   :  { %v1995_v23 = vpop.f32.mrf.mxu1 }
 0x54a   :  { %v2028_v46 = vperm.slane %v1995_v23, 0  ;;  %v2072_v13 = vperm.slane %v1995_v23, 1 }
 0x54c   :  { %v2030_v53 = vmul.f32 %v2028_v46, %v2024_v31  ;;  %v2032_v48 = vmul.f32 %v2028_v46, %v2026_v39  ;;  %v2074_v34 = vmul.f32 %v2072_v13, %v2068_v15  ;;  %v2076_v14 = vmul.f32 %v2072_v13, %v2070_v6 }
 0x54e   :  { %v2039_v24 = vmul.f32 %v2035_v35, %v2030_v53  ;;  %v2041_v51 = vmul.f32 %v2035_v35, %v2032_v48  ;;  %v2078_v5 = vmul.f32 %v2074_v34, %v2035_v35  ;;  %v2080_v7 = vmul.f32 %v2076_v14, %v2035_v35 }
 0x54f   :  { %v2015_v32 = vpop.f32.mrf.mxu3  ;;  %v2071_v35 = vsub.f32 %v7421_v47, %v2067_v0 }
 0x550   :  { %v2048_v1 = vadd.f32 %v2044_v49, %v2039_v24  ;;  %v2050_v10 = vadd.f32 %v2044_v49, %v2041_v51  ;;  %v2082_v63 = vadd.f32 %v2078_v5, %v2044_v49  ;;  %v2084_v16 = vadd.f32 %v2080_v7, %v2044_v49  ;;  %v4734_v7 = vld [vmem:[#allocation11 + $0xe8] sm:$0xf] }
 0x551   :  { %v2029_v31 = vperm.slane %v2015_v32, 0  ;;  %v2073_v39 = vperm.slane %v2015_v32, 1  ;;  %v3279_v17 = vpop.f32.mrf.mxu1  ;;  %v4736_v32 = vld [vmem:[#allocation11 + $0xf8] sm:$0xf0] }
 0x552   :  { %v2052_v45 = vmax.f32 %v2048_v1, %v2050_v10  ;;  %v2086_v62 = vmax.f32 %v2082_v63, %v2084_v16  ;;  %v3280_v12 = vadd.f32 %v3279_v17, %v2302_v19  ;;  %v5629_v19 = vld [vmem:[#allocation11 + $0x1f4] sm:$0xf0] }
 0x553   :  { %v2031_v15 = vmul.f32 %v2029_v31, %v2025_v27  ;;  %v2033_v23 = vmul.f32 %v2029_v31, %v2027_v11  ;;  %v2075_v44 = vmul.f32 %v2073_v39, %v2069_v9  ;;  %v2077_v38 = vmul.f32 %v2073_v39, %v2071_v35  ;;  %v5597_v11 = vld [vmem:[#allocation11 + $0xf4] sm:$0xf0]  ;;  %v5595_v9 = vld [vmem:[#allocation11 + $0xec] sm:$0xf]  ;;  %v4718_v35 = vld [vmem:[#allocation11 + $0xc8] sm:$0xf] }
 0x554   :  { %v2053_v47 = vrot.slane %v2052_v45, 4  ;;  %v2087_v18 = vrot.slane %v2086_v62, 4  ;;  %v4735_v4 = vor.u32 %v5597_v11, %v4734_v7  ;;  %v4739_v50 = vor.u32 %v5595_v9, %v4736_v32  ;;  %v4832_v7 = vld [vmem:[#allocation11 + $0x1b8] sm:$0xf0]  ;;  %v5579_v11 = vld [vmem:[#allocation11 + $0x6c] sm:$0xf] }
 0x555   :  { %v2040_v6 = vmul.f32 %v2036_v42, %v2031_v15  ;;  %v2042_v46 = vmul.f32 %v2036_v42, %v2033_v23  ;;  %v2079_v13 = vmul.f32 %v2075_v44, %v2036_v42  ;;  %v2081_v20 = vmul.f32 %v2077_v38, %v2036_v42  ;;  %v5627_v44 = vld [vmem:[#allocation11 + $0x1ec] sm:$0xf]  ;;  %v4864_v38 = vld [vmem:[#allocation11 + $0x1f8] sm:$0xf0] }
 0x556   :  { %v2054_v8 = vmax.f32 %v2052_v45, %v2053_v47  ;;  %v2088_v3 = vmax.f32 %v2086_v62, %v2087_v18  ;;  %v4719_v15 = vor.u32 %v5593_v25, %v4718_v35  ;;  %v4723_v23 = vor.u32 %v5591_v26, %v4720_v58  ;;  %v4702_v47 = vld [vmem:[#allocation11 + $0xa8] sm:$0xf]  ;;  %v4672_v9 = vld [vmem:[#allocation11 + $0x78] sm:$0xf0]  ;;  %v5577_v35 = vld [vmem:[#allocation11 + $0x54] sm:$0xf0] }
 0x557   :  { %v2049_v0 = vadd.f32 %v2045_v36, %v2040_v6  ;;  %v2051_v33 = vadd.f32 %v2045_v36, %v2042_v46  ;;  %v2083_v49 = vadd.f32 %v2079_v13, %v2045_v36  ;;  %v2085_v27 = vadd.f32 %v2081_v20, %v2045_v36  ;;  %v3292_v56 = vpop.f32.mrf.mxu3  ;;  %v4862_v36 = vld [vmem:[#allocation11 + $0x1e8] sm:$0xf]  ;;  %v5587_v6 = vld [vmem:[#allocation11 + $0xac] sm:$0xf]  ;;  %v4704_v46 = vld [vmem:[#allocation11 + $0xb8] sm:$0xf0] }
 0x558   :  { %v2055_v53 = vrot.slane %v2054_v8, 2  ;;  %v2089_v48 = vrot.slane %v2088_v3, 2  ;;  %v7510_v34 = vadd.f32 %v3292_v56, %v3280_v12  ;;  %v4863_v20 = vor.u32 %v5629_v19, %v4862_v36  ;;  %v5625_v12 = vld [vmem:[#allocation11 + $0x1d4] sm:$0xf0]  ;;  %v4848_v56 = vld [vmem:[#allocation11 + $0x1d8] sm:$0xf0] }
 0x559   :  { %v2059_v14 = vmax.f32 %v2049_v0, %v2051_v33  ;;  %v2093_v2 = vmax.f32 %v2083_v49, %v2085_v27  ;;  %v3281_v41 = vpop.f32.mrf.mxu1  ;;  %v4703_v33 = vor.u32 %v5589_v40, %v4702_v47  ;;  %v4707_v49 = vor.u32 %v5587_v6, %v4704_v46  ;;  %v5623_v27 = vld [vmem:[#allocation11 + $0x1cc] sm:$0xf]  ;;  %v4798_v58 = vld [vmem:[#allocation11 + $0x168] sm:$0xf]  ;;  %v4800_v36 = vld [vmem:[#allocation11 + $0x178] sm:$0xf0] }
 0x55a   :  { %v2056_v22 = vmax.f32 %v2054_v8, %v2055_v53  ;;  %v2090_v54 = vmax.f32 %v2088_v3, %v2089_v48  ;;  %v4867_v8 = vor.u32 %v5627_v44, %v4864_v38  ;;  %v4846_v3 = vld [vmem:[#allocation11 + $0x1c8] sm:$0xf]  ;;  %v5585_v48 = vld [vmem:[#allocation11 + $0x94] sm:$0xf0]  ;;  %v5571_v38 = vld [vmem:[#allocation11 + $0x2c] sm:$0xf] }
 0x55b   :  { %v2060_v57 = vrot.slane %v2059_v14, 4  ;;  %v2094_v24 = vrot.slane %v2093_v2, 4  ;;  %v4686_v53 = vld [vmem:[#allocation11 + $0x88] sm:$0xf]  ;;  %v4847_v41 = vor.u32 %v5625_v12, %v4846_v3  ;;  %v5573_v44 = vld [vmem:[#allocation11 + $0x34] sm:$0xf0] }
 0x55c   :  { %v2057_v51 = vrot.slane %v2056_v22, 1  ;;  %v2091_v5 = vrot.slane %v2090_v54, 1  ;;  %v4640_v47 = vld [vmem:[#allocation11 + $0x38] sm:$0xf0]  ;;  %v4782_v40 = vld [vmem:[#allocation11 + $0x148] sm:$0xf] }
 0x55d   :  { %v2061_v37 = vmax.f32 %v2059_v14, %v2060_v57  ;;  %v2095_v29 = vmax.f32 %v2093_v2, %v2094_v24  ;;  %v5583_v14 = vld [vmem:[#allocation11 + $0x8c] sm:$0xf]  ;;  %v4688_v2 = vld [vmem:[#allocation11 + $0x98] sm:$0xf0]  ;;  %v4687_v57 = vor.u32 %v5585_v48, %v4686_v53  ;;  %v5609_v6 = vld [vmem:[#allocation11 + $0x154] sm:$0xf0] }
 0x55e   :  { %v2058_v42 = vmax.f32 %v2056_v22, %v2057_v51  ;;  %v2092_v52 = vmax.f32 %v2090_v54, %v2091_v5  ;;  %v4851_v22 = vor.u32 %v5623_v27, %v4848_v56  ;;  %v4830_v54 = vld [vmem:[#allocation11 + $0x1a8] sm:$0xf]  ;;  %v4691_v24 = vor.u32 %v5583_v14, %v4688_v2  ;;  %v5621_v51 = vld [vmem:[#allocation11 + $0x1b4] sm:$0xf0]  ;;  %v5619_v5 = vld [vmem:[#allocation11 + $0x1ac] sm:$0xf] }
 0x55f   :  { %v2062_v1 = vrot.slane %v2061_v37, 2  ;;  %v2096_v10 = vrot.slane %v2095_v29, 2  ;;  %v3294_v63 = vpop.f32.mrf.mxu3  ;;  %v4831_v32 = vor.u32 %v5621_v51, %v4830_v54  ;;  %v5607_v46 = vld [vmem:[#allocation11 + $0x14c] sm:$0xf]  ;;  %v4622_v3 = vld [vmem:[#allocation11 + $0x8] sm:$0xf]  ;;  %v4783_v53 = vor.u32 %v5609_v6, %v4782_v40 }
 0x560   :  { %v2100_v16 = vsel %vm156_vm2, %v2058_v42, %v2092_v52  ;;  %v4835_v42 = vor.u32 %v5619_v5, %v4832_v7  ;;  %v4814_v52 = vld [vmem:[#allocation11 + $0x188] sm:$0xf]  ;;  %v4816_v63 = vld [vmem:[#allocation11 + $0x198] sm:$0xf0]  ;;  %v5569_v12 = vld [vmem:[#allocation11 + $0x14] sm:$0xf0] }
 0x561   :  { %v2063_v31 = vmax.f32 %v2061_v37, %v2062_v1  ;;  %v2097_v39 = vmax.f32 %v2095_v29, %v2096_v10  ;;  %v7513_v17 = vpack.c.bf16 %v2100_v16, %v2100_v16  ;;  %v4670_v37 = vld [vmem:[#allocation11 + $0x68] sm:$0xf]  ;;  %v5581_v29 = vld [vmem:[#allocation11 + $0x74] sm:$0xf0]  ;;  %v5615_v10 = vld [vmem:[#allocation11 + $0x18c] sm:$0xf] }
 0x562   :  { %v5617_v1 = vld [vmem:[#allocation11 + $0x194] sm:$0xf0]  ;;  %v4671_v16 = vor.u32 %v5581_v29, %v4670_v37  ;;  %v4819_v26 = vor.u32 %v5615_v10, %v4816_v63  ;;  %v5246_v27 = vld [vmem:[#allocation11 + $0x4e8] sm:$0xf]  ;;  %v5723_v14 = vld [vmem:[#allocation11 + $0x4ec] sm:$0xf] }
 0x563   :  { %3330 = vmatmul.bf16.vlgmr.msra.gmra.mxu1 %v7513_v17  ;;  %3408 = vmatmul.bf16.vlgmr.msrb.gmra.mxu0 %v7513_v17  ;;  %v2064_v45 = vrot.slane %v2063_v31, 1  ;;  %v2098_v62 = vrot.slane %v2097_v39, 1  ;;  %v4815_v25 = vor.u32 %v5617_v1, %v4814_v52  ;;  %v5725_v56 = vld [vmem:[#allocation11 + $0x4f4] sm:$0xf0]  ;;  %v5248_v2 = vld [vmem:[#allocation11 + $0x4f8] sm:$0xf0] }
 0x564   :  { %3426 = vmatpush.bf16.msra.mxu1 %v4735_v4  ;;  %3504 = vmatpush.bf16.msrb.mxu0 %v4739_v50  ;;  %v4675_v4 = vor.u32 %v5579_v11, %v4672_v9  ;;  %v4654_v50 = vld [vmem:[#allocation11 + $0x48] sm:$0xf]  ;;  %v5603_v54 = vld [vmem:[#allocation11 + $0x12c] sm:$0xf]  ;;  %v5247_v5 = vor.u32 %v5725_v56, %v5246_v27  ;;  %v5251_v7 = vor.u32 %v5723_v14, %v5248_v2  ;;  %v5721_v29 = vld [vmem:[#allocation11 + $0x4d4] sm:$0xf0] }
 0x565   :  { %v2065_v18 = vmax.f32 %v2063_v31, %v2064_v45  ;;  %v2099_v21 = vmax.f32 %v2097_v39, %v2098_v62  ;;  %v5575_v31 = vld [vmem:[#allocation11 + $0x4c] sm:$0xf]  ;;  %v4656_v39 = vld [vmem:[#allocation11 + $0x58] sm:$0xf0]  ;;  %v5613_v45 = vld [vmem:[#allocation11 + $0x174] sm:$0xf0]  ;;  %v4655_v19 = vor.u32 %v5577_v35, %v4654_v50 }
 0x566   :  { %v5611_v62 = vld [vmem:[#allocation11 + $0x16c] sm:$0xf]  ;;  %v5230_v37 = vld [vmem:[#allocation11 + $0x4c8] sm:$0xf]  ;;  %v5601_v1 = vld [vmem:[#allocation11 + $0x114] sm:$0xf0] }
 0x567   :  { %v2101_v13 = vsel %vm156_vm2, %v2065_v18, %v2099_v21  ;;  %v4799_v18 = vor.u32 %v5613_v45, %v4798_v58  ;;  %v4803_v21 = vor.u32 %v5611_v62, %v4800_v36  ;;  %v5719_v11 = vld [vmem:[#allocation11 + $0x4cc] sm:$0xf]  ;;  %v4750_v52 = vld [vmem:[#allocation11 + $0x108] sm:$0xf]  ;;  %v4752_v63 = vld [vmem:[#allocation11 + $0x118] sm:$0xf0] }
 0x568   :  { %3427 = vmatpush.bf16.msra.mxu1 %v4719_v15  ;;  %3505 = vmatpush.bf16.msrb.mxu0 %v4723_v23  ;;  %v7518_v0 = vpack.c.bf16 %v2101_v13, %v2101_v13  ;;  %v4659_v15 = vor.u32 %v5575_v31, %v4656_v39  ;;  %v4638_v23 = vld [vmem:[#allocation11 + $0x28] sm:$0xf]  ;;  %v4784_v13 = vld [vmem:[#allocation11 + $0x158] sm:$0xf0]  ;;  %v5599_v10 = vld [vmem:[#allocation11 + $0x10c] sm:$0xf]  ;;  %v5231_v31 = vor.u32 %v5721_v29, %v5230_v37 }
 0x569   :  { %v4787_v48 = vor.u32 %v5607_v46, %v4784_v13  ;;  %v5755_v50 = vld [vmem:[#allocation11 + $0x5ec] sm:$0xf]  ;;  %v5376_v35 = vld [vmem:[#allocation11 + $0x5f8] sm:$0xf0]  ;;  %v4755_v58 = vor.u32 %v5599_v10, %v4752_v63  ;;  %v5717_v45 = vld [vmem:[#allocation11 + $0x4b4] sm:$0xf0] }
 0x56a   :  { %3343 = vmatmul.bf16.vlgmr.msra.gmra.mxu3 %v7518_v0  ;;  %3421 = vmatmul.bf16.vlgmr.msrb.gmra.mxu2 %v7518_v0  ;;  %v5715_v62 = vld [vmem:[#allocation11 + $0x4ac] sm:$0xf]  ;;  %v5216_v36 = vld [vmem:[#allocation11 + $0x4b8] sm:$0xf0]  ;;  %v5198_v40 = vld [vmem:[#allocation11 + $0x488] sm:$0xf] }
 0x56b   :  { %3439 = vmatpush.bf16.msra.mxu3 %v4863_v20  ;;  %3517 = vmatpush.bf16.msrb.mxu2 %v4867_v8  ;;  %v4639_v20 = vor.u32 %v5573_v44, %v4638_v23  ;;  %v4643_v8 = vor.u32 %v5571_v38, %v4640_v47  ;;  %v5358_v23 = vld [vmem:[#allocation11 + $0x5c8] sm:$0xf]  ;;  %v5753_v44 = vld [vmem:[#allocation11 + $0x5d4] sm:$0xf0]  ;;  %v5751_v38 = vld [vmem:[#allocation11 + $0x5cc] sm:$0xf] }
 0x56c   :  { %3428 = vmatpush.bf16.msra.mxu1 %v4703_v33  ;;  %3506 = vmatpush.bf16.msrb.mxu0 %v4707_v49  ;;  %v5567_v33 = vld [vmem:[#allocation11 + $0xc] sm:$0xf]  ;;  %v4624_v49 = vld [vmem:[#allocation11 + $0x18] sm:$0xf0]  ;;  %v5713_v6 = vld [vmem:[#allocation11 + $0x494] sm:$0xf0] }
 0x56d   :  { %v4627_v51 = vor.u32 %v5567_v33, %v4624_v49  ;;  %v5360_v47 = vld [vmem:[#allocation11 + $0x5d8] sm:$0xf0]  ;;  %v5711_v46 = vld [vmem:[#allocation11 + $0x48c] sm:$0xf]  ;;  %v5199_v49 = vor.u32 %v5713_v6, %v5198_v40  ;;  %v5182_v56 = vld [vmem:[#allocation11 + $0x468] sm:$0xf] }
 0x56e   :  { %v5200_v13 = vld [vmem:[#allocation11 + $0x498] sm:$0xf0]  ;;  %v5705_v37 = vld [vmem:[#allocation11 + $0x454] sm:$0xf0]  ;;  %v5703_v29 = vld [vmem:[#allocation11 + $0x44c] sm:$0xf] }
 0x56f   :  { %3440 = vmatpush.bf16.msra.mxu3 %v4847_v41  ;;  %3518 = vmatpush.bf16.msrb.mxu2 %v4851_v22  ;;  %v4766_v41 = vld [vmem:[#allocation11 + $0x128] sm:$0xf]  ;;  %v5605_v22 = vld [vmem:[#allocation11 + $0x134] sm:$0xf0]  ;;  %v5344_v33 = vld [vmem:[#allocation11 + $0x5b8] sm:$0xf0]  ;;  %v5203_v27 = vor.u32 %v5711_v46, %v5200_v13 }
 0x570   :  { %3429 = vmatpush.bf16.msra.mxu1 %v4687_v57  ;;  %3507 = vmatpush.bf16.msrb.mxu0 %v4691_v24  ;;  %v4768_v57 = vld [vmem:[#allocation11 + $0x138] sm:$0xf0]  ;;  %v4623_v24 = vor.u32 %v5569_v12, %v4622_v3  ;;  %v4767_v9 = vor.u32 %v5605_v22, %v4766_v41  ;;  %v5749_v3 = vld [vmem:[#allocation11 + $0x5b4] sm:$0xf0]  ;;  %v5747_v12 = vld [vmem:[#allocation11 + $0x5ac] sm:$0xf] }
 0x571   :  { %v5184_v14 = vld [vmem:[#allocation11 + $0x478] sm:$0xf0]  ;;  %v5347_v41 = vor.u32 %v5747_v12, %v5344_v33  ;;  %v5326_v22 = vld [vmem:[#allocation11 + $0x588] sm:$0xf]  ;;  %v5733_v6 = vld [vmem:[#allocation11 + $0x534] sm:$0xf0] }
 0x572   :  { %v5278_v40 = vld [vmem:[#allocation11 + $0x528] sm:$0xf]  ;;  %v5731_v46 = vld [vmem:[#allocation11 + $0x52c] sm:$0xf]  ;;  %v5280_v13 = vld [vmem:[#allocation11 + $0x538] sm:$0xf0] }
 0x573   :  { %3441 = vmatpush.bf16.msra.mxu3 %v4831_v32  ;;  %3519 = vmatpush.bf16.msrb.mxu2 %v4835_v42  ;;  %v4771_v32 = vor.u32 %v5603_v54, %v4768_v57  ;;  %v5232_v42 = vld [vmem:[#allocation11 + $0x4d8] sm:$0xf0]  ;;  %v5745_v54 = vld [vmem:[#allocation11 + $0x594] sm:$0xf0]  ;;  %v5743_v57 = vld [vmem:[#allocation11 + $0x58c] sm:$0xf]  ;;  %v5283_v12 = vor.u32 %v5731_v46, %v5280_v13 }
 0x574   :  { %3382 = vmatmul.bf16.vlgmr.msrb.gmra.mxu1 %v7401_v59  ;;  %3460 = vmatmul.bf16.vlgmr.msra.gmra.mxu0 %v7401_v59  ;;  %v5235_v39 = vor.u32 %v5719_v11, %v5232_v42  ;;  %v5168_v11 = vld [vmem:[#allocation11 + $0x458] sm:$0xf0]  ;;  %v5741_v42 = vld [vmem:[#allocation11 + $0x574] sm:$0xf0]  ;;  %v5655_v33 = vld [vmem:[#allocation11 + $0x2cc] sm:$0xf] }
 0x575   :  { %3430 = vmatpush.bf16.msra.mxu1 %v4671_v16  ;;  %3508 = vmatpush.bf16.msrb.mxu0 %v4675_v4  ;;  %v5374_v16 = vld [vmem:[#allocation11 + $0x5e8] sm:$0xf]  ;;  %v5757_v4 = vld [vmem:[#allocation11 + $0x5f4] sm:$0xf0]  ;;  %v5171_v63 = vor.u32 %v5703_v29, %v5168_v11  ;;  %v5647_v29 = vld [vmem:[#allocation11 + $0x28c] sm:$0xf] }
 0x576   :  { %v4944_v11 = vld [vmem:[#allocation11 + $0x298] sm:$0xf0]  ;;  %v7543_v46 = vld [vmem:[%s8153_s9 + $0x70] sm:$0xff] }
 0x577   :  { %3442 = vmatpush.bf16.msra.mxu3 %v4815_v25  ;;  %3520 = vmatpush.bf16.msrb.mxu2 %v4819_v26  ;;  %v5214_v25 = vld [vmem:[#allocation11 + $0x4a8] sm:$0xf]  ;;  %v4751_v26 = vor.u32 %v5601_v1, %v4750_v52  ;;  %v5739_v52 = vld [vmem:[#allocation11 + $0x56c] sm:$0xf]  ;;  %v5312_v1 = vld [vmem:[#allocation11 + $0x578] sm:$0xf0] }
 0x579   :  { %3431 = vmatpush.bf16.msra.mxu1 %v4655_v19  ;;  %3509 = vmatpush.bf16.msrb.mxu0 %v4659_v15  ;;  %v5375_v19 = vor.u32 %v5757_v4, %v5374_v16  ;;  %v5379_v15 = vor.u32 %v5755_v50, %v5376_v35  ;;  %v5150_v16 = vld [vmem:[#allocation11 + $0x428] sm:$0xf]  ;;  %v5701_v4 = vld [vmem:[#allocation11 + $0x434] sm:$0xf0]  ;;  %v5699_v50 = vld [vmem:[#allocation11 + $0x42c] sm:$0xf] }
 0x57a   :  { %3395 = vmatmul.bf16.vlgmr.msrb.gmra.mxu3 %v7455_v30  ;;  %3473 = vmatmul.bf16.vlgmr.msra.gmra.mxu2 %v7455_v30  ;;  %v5152_v35 = vld [vmem:[#allocation11 + $0x438] sm:$0xf0] }
 0x57b   :  { %3443 = vmatpush.bf16.msra.mxu3 %v4799_v18  ;;  %3521 = vmatpush.bf16.msrb.mxu2 %v4803_v21  ;;  %v5215_v18 = vor.u32 %v5717_v45, %v5214_v25  ;;  %v5219_v21 = vor.u32 %v5715_v62, %v5216_v36  ;;  %v5294_v25 = vld [vmem:[#allocation11 + $0x548] sm:$0xf]  ;;  %v5296_v45 = vld [vmem:[#allocation11 + $0x558] sm:$0xf0]  ;;  %v5151_v62 = vor.u32 %v5701_v4, %v5150_v16  ;;  %v5639_v4 = vld [vmem:[#allocation11 + $0x24c] sm:$0xf] }
 0x57c   :  { %v5155_v36 = vor.u32 %v5699_v50, %v5152_v35  ;;  %v4912_v50 = vld [vmem:[#allocation11 + $0x258] sm:$0xf0] }
 0x57d   :  { %3432 = vmatpush.bf16.msra.mxu1 %v4639_v20  ;;  %3510 = vmatpush.bf16.msrb.mxu0 %v4643_v8  ;;  %v5359_v20 = vor.u32 %v5753_v44, %v5358_v23  ;;  %v5342_v8 = vld [vmem:[#allocation11 + $0x5a8] sm:$0xf]  ;;  %v5695_v23 = vld [vmem:[#allocation11 + $0x40c] sm:$0xf]  ;;  %v5136_v44 = vld [vmem:[#allocation11 + $0x418] sm:$0xf0] }
 0x57e   :  { %v5343_v2 = vor.u32 %v5749_v3, %v5342_v8  ;;  %v5279_v3 = vor.u32 %v5733_v6, %v5278_v40  ;;  %v5663_v40 = vld [vmem:[#allocation11 + $0x30c] sm:$0xf]  ;;  %v5008_v6 = vld [vmem:[#allocation11 + $0x318] sm:$0xf0] }
 0x57f   :  { %3444 = vmatpush.bf16.msra.mxu3 %v4783_v53  ;;  %3522 = vmatpush.bf16.msrb.mxu2 %v4787_v48  ;;  %v5709_v53 = vld [vmem:[#allocation11 + $0x474] sm:$0xf0]  ;;  %v5707_v48 = vld [vmem:[#allocation11 + $0x46c] sm:$0xf]  ;;  %v5011_v13 = vor.u32 %v5663_v40, %v5008_v6  ;;  %v7859_v6 = vld [vmem:[%s8153_s9 + $0x1f0] sm:$0xff] }
 0x580   :  { %v7854_v40 = vld [vmem:[%s8153_s9 + $0x1f8] sm:$0xff] }
 0x581   :  { %3433 = vmatpush.bf16.msra.mxu1 %v4623_v24  ;;  %3511 = vmatpush.bf16.msrb.mxu0 %v4627_v51  ;;  %v5328_v24 = vld [vmem:[#allocation11 + $0x598] sm:$0xf0]  ;;  %v5183_v51 = vor.u32 %v5709_v53, %v5182_v56  ;;  %v5729_v56 = vld [vmem:[#allocation11 + $0x514] sm:$0xf0]  ;;  %v5727_v53 = vld [vmem:[#allocation11 + $0x50c] sm:$0xf] }
 0x583   :  { %3445 = vmatpush.bf16.msra.mxu3 %v4767_v9  ;;  %3523 = vmatpush.bf16.msrb.mxu2 %v4771_v32  ;;  %v5331_v9 = vor.u32 %v5743_v57, %v5328_v24  ;;  %v5310_v32 = vld [vmem:[#allocation11 + $0x568] sm:$0xf]  ;;  %v5651_v57 = vld [vmem:[#allocation11 + $0x2ac] sm:$0xf]  ;;  %v4960_v24 = vld [vmem:[#allocation11 + $0x2b8] sm:$0xf0] }
 0x584   :  { %3434 = vmatmul.bf16.vlgmr.msra.gmra.mxu1 %v7442_v55  ;;  %3512 = vmatmul.bf16.vlgmr.msrb.gmra.mxu0 %v7442_v55  ;;  %v5363_v55 = vor.u32 %v5751_v38, %v5360_v47 }
 0x585   :  { %3478 = vmatpush.bf16.msrb.mxu1 %v5247_v5  ;;  %3556 = vmatpush.bf16.msra.mxu0 %v5251_v7  ;;  %v5187_v5 = vor.u32 %v5707_v48, %v5184_v14  ;;  %v5166_v7 = vld [vmem:[#allocation11 + $0x448] sm:$0xf]  ;;  %v5264_v48 = vld [vmem:[#allocation11 + $0x518] sm:$0xf0]  ;;  %v5691_v14 = vld [vmem:[#allocation11 + $0x3ec] sm:$0xf] }
 0x586   :  { %v5167_v10 = vor.u32 %v5705_v37, %v5166_v7  ;;  %v5104_v7 = vld [vmem:[#allocation11 + $0x3d8] sm:$0xf0]  ;;  %v4963_v37 = vor.u32 %v5651_v57, %v4960_v24 }
 0x587   :  { %3446 = vmatpush.bf16.msra.mxu3 %v4751_v26  ;;  %3524 = vmatpush.bf16.msrb.mxu2 %v4755_v58  ;;  %v5737_v26 = vld [vmem:[#allocation11 + $0x554] sm:$0xf0]  ;;  %v5735_v58 = vld [vmem:[#allocation11 + $0x54c] sm:$0xf] }
 0x588   :  { %v5295_v38 = vor.u32 %v5737_v26, %v5294_v25  ;;  %v5299_v47 = vor.u32 %v5735_v58, %v5296_v45  ;;  %v4915_v25 = vor.u32 %v5639_v4, %v4912_v50  ;;  %v5635_v26 = vld [vmem:[#allocation11 + $0x22c] sm:$0xf]  ;;  %v4896_v58 = vld [vmem:[#allocation11 + $0x238] sm:$0xf0]  ;;  %v7769_v50 = vld [vmem:[%s8153_s9 + $0x150] sm:$0xff] }
 0x589   :  { %3479 = vmatpush.bf16.msrb.mxu1 %v5231_v31  ;;  %3557 = vmatpush.bf16.msra.mxu0 %v5235_v39  ;;  %v5311_v31 = vor.u32 %v5741_v42, %v5310_v32  ;;  %v5315_v39 = vor.u32 %v5739_v52, %v5312_v1  ;;  %v5088_v32 = vld [vmem:[#allocation11 + $0x3b8] sm:$0xf0]  ;;  %v4947_v42 = vor.u32 %v5647_v29, %v4944_v11  ;;  %v5671_v45 = vld [vmem:[#allocation11 + $0x34c] sm:$0xf]  ;;  %v7692_v29 = vld [vmem:[%s8153_s9 + $0xa0] sm:$0xff] }
 0x58a   :  { %3447 = vmatmul.bf16.vlgmr.msra.gmra.mxu3 %v7459_v28  ;;  %3525 = vmatmul.bf16.vlgmr.msrb.gmra.mxu2 %v7459_v28  ;;  %v5327_v28 = vor.u32 %v5745_v54, %v5326_v22  ;;  %v5267_v54 = vor.u32 %v5727_v53, %v5264_v48  ;;  %v4928_v52 = vld [vmem:[#allocation11 + $0x278] sm:$0xf0]  ;;  %v7620_v48 = vld [vmem:[%s8153_s9 + $0xd0] sm:$0xff] }
 0x58b   :  { %3491 = vmatpush.bf16.msrb.mxu3 %v5375_v19  ;;  %3569 = vmatpush.bf16.msra.mxu2 %v5379_v15  ;;  %v5134_v19 = vld [vmem:[#allocation11 + $0x408] sm:$0xf]  ;;  %v5697_v15 = vld [vmem:[#allocation11 + $0x414] sm:$0xf0] }
 0x58c   :  { %v7615_v53 = vld [vmem:[%s8153_s9 + $0x38] sm:$0xff] }
 0x58d   :  { %3480 = vmatpush.bf16.msrb.mxu1 %v5215_v18  ;;  %3558 = vmatpush.bf16.msra.mxu0 %v5219_v21  ;;  %v5659_v18 = vld [vmem:[#allocation11 + $0x2ec] sm:$0xf]  ;;  %v4992_v21 = vld [vmem:[#allocation11 + $0x2f8] sm:$0xf0] }
 0x58e   :  { %v4995_v8 = vor.u32 %v5659_v18, %v4992_v21  ;;  %v7537_v18 = vld [vmem:[%s8153_s9 + $0x78] sm:$0xff] }
 0x58f   :  { %3492 = vmatpush.bf16.msrb.mxu3 %v5359_v20  ;;  %3570 = vmatpush.bf16.msra.mxu2 %v5363_v55  ;;  %v5135_v20 = vor.u32 %v5697_v15, %v5134_v19  ;;  %v5139_v55 = vor.u32 %v5695_v23, %v5136_v44  ;;  %v5631_v19 = vld [vmem:[#allocation11 + $0x20c] sm:$0xf]  ;;  %v4880_v15 = vld [vmem:[#allocation11 + $0x218] sm:$0xf0] }
 0x590   :  { %v5667_v44 = vld [vmem:[#allocation11 + $0x32c] sm:$0xf]  ;;  %v7656_v57 = vld [vmem:[%s8153_s9 + $0xb8] sm:$0xff] }
 0x591   :  { %3481 = vmatpush.bf16.msrb.mxu1 %v5199_v49  ;;  %3559 = vmatpush.bf16.msra.mxu0 %v5203_v27  ;;  %v4976_v49 = vld [vmem:[#allocation11 + $0x2d8] sm:$0xf0]  ;;  %v5262_v27 = vld [vmem:[#allocation11 + $0x508] sm:$0xf] }
 0x592   :  { %v5263_v22 = vor.u32 %v5729_v56, %v5262_v27  ;;  %v7603_v27 = vld [vmem:[%s8153_s9 + $0x40] sm:$0xff]  ;;  %v7608_v56 = vld [vmem:[%s8153_s9 + $0xd8] sm:$0xff] }
 0x593   :  { %3493 = vmatpush.bf16.msrb.mxu3 %v5343_v2  ;;  %3571 = vmatpush.bf16.msra.mxu2 %v5347_v41  ;;  %v5120_v2 = vld [vmem:[#allocation11 + $0x3f8] sm:$0xf0]  ;;  %v4979_v41 = vor.u32 %v5655_v33, %v4976_v49  ;;  %v7584_v33 = vld [vmem:[%s8153_s9 + $0xe8] sm:$0xff] }
 0x594   :  { %v7591_v49 = vld [vmem:[%s8153_s9 + $0x48] sm:$0xff]  ;;  %v7663_v24 = vld [vmem:[%s8153_s9 + $0x18] sm:$0xff] }
 0x595   :  { %3482 = vmatpush.bf16.msrb.mxu1 %v5183_v51  ;;  %3560 = vmatpush.bf16.msra.mxu0 %v5187_v5  ;;  %v5123_v51 = vor.u32 %v5691_v14, %v5120_v2  ;;  %v5687_v5 = vld [vmem:[#allocation11 + $0x3cc] sm:$0xf]  ;;  %v7627_v14 = vld [vmem:[%s8153_s9 + $0x30] sm:$0xff]  ;;  %v7697_v11 = vld [vmem:[%s8153_s9 + $0x178] sm:$0xff] }
 0x596   :  { %v7632_v2 = vld [vmem:[%s8153_s9 + $0xc8] sm:$0xff]  ;;  %v7764_v4 = vld [vmem:[%s8153_s9 + $0x158] sm:$0xff] }
 0x597   :  { %3494 = vmatpush.bf16.msrb.mxu3 %v5327_v28  ;;  %3572 = vmatpush.bf16.msra.mxu2 %v5331_v9  ;;  %v5107_v28 = vor.u32 %v5687_v5, %v5104_v7  ;;  %v5683_v9 = vld [vmem:[#allocation11 + $0x3ac] sm:$0xf]  ;;  %v7675_v5 = vld [vmem:[%s8153_s9 + $0x10] sm:$0xff] }
 0x598   :  { %v5091_v1 = vor.u32 %v5683_v9, %v5088_v32  ;;  %v7680_v7 = vld [vmem:[%s8153_s9 + $0xa8] sm:$0xff]  ;;  %v7709_v9 = vld [vmem:[%s8153_s9 + $0x98] sm:$0xff]  ;;  %v7715_v32 = vld [vmem:[%s8153_s9 + $0x170] sm:$0xff] }
 0x599   :  { %3483 = vmatpush.bf16.msrb.mxu1 %v5167_v10  ;;  %3561 = vmatpush.bf16.msra.mxu0 %v5171_v63  ;;  %v5679_v10 = vld [vmem:[#allocation11 + $0x38c] sm:$0xf]  ;;  %v5072_v63 = vld [vmem:[#allocation11 + $0x398] sm:$0xf0] }
 0x59a   :  { %v5075_v35 = vor.u32 %v5679_v10, %v5072_v63  ;;  %v7749_v10 = vld [vmem:[%s8153_s9 + $0x80] sm:$0xff] }
 0x59b   :  { %3495 = vmatpush.bf16.msrb.mxu3 %v5311_v31  ;;  %3573 = vmatpush.bf16.msra.mxu2 %v5315_v39  ;;  %v5675_v31 = vld [vmem:[#allocation11 + $0x36c] sm:$0xf]  ;;  %v5056_v39 = vld [vmem:[#allocation11 + $0x378] sm:$0xf0] }
 0x59d   :  { %3484 = vmatpush.bf16.msrb.mxu1 %v5151_v62  ;;  %3562 = vmatpush.bf16.msra.mxu0 %v5155_v36  ;;  %v5040_v62 = vld [vmem:[#allocation11 + $0x358] sm:$0xf0]  ;;  %v4899_v36 = vor.u32 %v5635_v26, %v4896_v58 }
 0x59e   :  { %v5043_v23 = vor.u32 %v5671_v45, %v5040_v62  ;;  %v7796_v26 = vld [vmem:[%s8153_s9 + $0x138] sm:$0xff] }
 0x59f   :  { %3496 = vmatpush.bf16.msrb.mxu3 %v5295_v38  ;;  %3574 = vmatpush.bf16.msra.mxu2 %v5299_v47  ;;  %v5024_v38 = vld [vmem:[#allocation11 + $0x338] sm:$0xf0]  ;;  %v4883_v47 = vor.u32 %v5631_v19, %v4880_v15  ;;  %v7822_v19 = vld [vmem:[%s8153_s9 + $0x120] sm:$0xff] }
 0x5a0   :  { %v5027_v21 = vor.u32 %v5667_v44, %v5024_v38  ;;  %v7833_v44 = vld [vmem:[%s8153_s9 + $0x118] sm:$0xff]  ;;  %v7841_v38 = vld [vmem:[%s8153_s9 + $0x110] sm:$0xff] }
 0x5a1   :  { %3485 = vmatpush.bf16.msrb.mxu1 %v5135_v20  ;;  %3563 = vmatpush.bf16.msra.mxu0 %v5139_v55  ;;  %v7549_v20 = vld [vmem:[%s8153_s9 + $0x68] sm:$0xff]  ;;  %v7555_v55 = vld [vmem:[%s8153_s9 + $0xf8] sm:$0xff] }
 0x5a3   :  { %3497 = vmatpush.bf16.msrb.mxu3 %v5279_v3  ;;  %3575 = vmatpush.bf16.msra.mxu2 %v5283_v12  ;;  %v7572_v3 = vld [vmem:[%s8153_s9 + $0xf0] sm:$0xff] }
 0x5a4   :  { %3486 = vmatmul.bf16.vlgmr.msrb.gmra.mxu1 %v7513_v17  ;;  %3564 = vmatmul.bf16.vlgmr.msra.gmra.mxu0 %v7513_v17  ;;  %v5643_v17 = vld [vmem:[#allocation11 + $0x26c] sm:$0xf]  ;;  %v7579_v12 = vld [vmem:[%s8153_s9 + $0x50] sm:$0xff] }
 0x5a5   :  { %3530 = vmatpush.bf16.msra.mxu1 %v4995_v8  ;;  %v4931_v16 = vor.u32 %v5643_v17, %v4928_v52  ;;  %v7560_v8 = vld [vmem:[%s8153_s9 + $0x60] sm:$0xff]  ;;  %3686 = vmatpush.msrb.mxu0 %v7697_v11  ;;  %v7730_v17 = vld [vmem:[%s8153_s9 + $0x168] sm:$0xff] }
 0x5a6   :  { %v7735_v52 = vld [vmem:[%s8153_s9 + $0x160] sm:$0xff] }
 0x5a7   :  { %3498 = vmatpush.bf16.msrb.mxu3 %v5263_v22  ;;  %3576 = vmatpush.bf16.msra.mxu2 %v5267_v54  ;;  %v7644_v22 = vld [vmem:[%s8153_s9 + $0xc0] sm:$0xff] }
 0x5a8   :  { %v7651_v54 = vld [vmem:[%s8153_s9 + $0x20] sm:$0xff]  ;;  %3687 = vmatpush.msrb.mxu0 %v7715_v32 }
 0x5a9   :  { %3531 = vmatpush.bf16.msra.mxu1 %v4979_v41  ;;  %v7639_v41 = vld [vmem:[%s8153_s9 + $0x28] sm:$0xff] }
 0x5aa   :  { %3499 = vmatmul.bf16.vlgmr.msrb.gmra.mxu3 %v7518_v0  ;;  %3577 = vmatmul.bf16.vlgmr.msra.gmra.mxu2 %v7518_v0  ;;  %v5059_v0 = vor.u32 %v5675_v31, %v5056_v39  ;;  %v7779_v31 = vld [vmem:[%s8153_s9 + $0x148] sm:$0xff] }
 0x5ab   :  { %3543 = vmatpush.bf16.msra.mxu3 %v5123_v51  ;;  %v7668_v51 = vld [vmem:[%s8153_s9 + $0xb0] sm:$0xff]  ;;  %3688 = vmatpush.msrb.mxu0 %v7730_v17 }
 0x5ac   :  { %3706 = vmatpush.msrb.mxu2 %v7854_v40 }
 0x5ad   :  { %3532 = vmatpush.bf16.msra.mxu1 %v4963_v37  ;;  %v7687_v37 = vld [vmem:[%s8153_s9 + $0x8] sm:$0xff]  ;;  %3689 = vmatpush.msrb.mxu0 %v7735_v52 }
 0x5ae   :  { %3707 = vmatpush.msrb.mxu2 %v7859_v6 }
 0x5af   :  { %3544 = vmatpush.bf16.msra.mxu3 %v5107_v28  ;;  %v7704_v28 = vld [vmem:[%s8153_s9] sm:$0xff]  ;;  %3690 = vmatpush.msrb.mxu0 %v7764_v4 }
 0x5b1   :  { %3533 = vmatpush.bf16.msra.mxu1 %v4947_v42  ;;  %v7722_v42 = vld [vmem:[%s8153_s9 + $0x90] sm:$0xff]  ;;  %3691 = vmatpush.msrb.mxu0 %v7769_v50 }
 0x5b3   :  { %3545 = vmatpush.bf16.msra.mxu3 %v5091_v1  ;;  %v7741_v1 = vld [vmem:[%s8153_s9 + $0x88] sm:$0xff]  ;;  %3692 = vmatpush.msrb.mxu0 %v7779_v31 }
 0x5b5   :  { %3534 = vmatpush.bf16.msra.mxu1 %v4931_v16 }
 0x5b7   :  { %3546 = vmatpush.bf16.msra.mxu3 %v5075_v35  ;;  %v3306_v35 = vadd.f32 %v7462_v43, %v7510_v34  ;;  %v7787_v43 = vld [vmem:[%s8153_s9 + $0x140] sm:$0xff] }
 0x5b8   :  { %3693 = vmatpush.msrb.mxu0 %v7787_v43 }
 0x5b9   :  { %3535 = vmatpush.bf16.msra.mxu1 %v4915_v25  ;;  %v3319_v34 = vadd.f32 %v7470_v60, %v3306_v35  ;;  %v7804_v60 = vld [vmem:[%s8153_s9 + $0x130] sm:$0xff] }
 0x5ba   :  { %3694 = vmatpush.msrb.mxu0 %v7796_v26 }
 0x5bb   :  { %3547 = vmatpush.bf16.msra.mxu3 %v5059_v0 }
 0x5bc   :  { %3695 = vmatpush.msrb.mxu0 %v7804_v60 }
 0x5bd   :  { %3536 = vmatpush.bf16.msra.mxu1 %v4899_v36  ;;  %v7814_v36 = vld [vmem:[%s8153_s9 + $0x128] sm:$0xff] }
 0x5be   :  { %3696 = vmatpush.msrb.mxu0 %v7814_v36 }
 0x5bf   :  { %3548 = vmatpush.bf16.msra.mxu3 %v5043_v23 }
 0x5c0   :  { %3697 = vmatpush.msrb.mxu0 %v7822_v19 }
 0x5c1   :  { %3537 = vmatpush.bf16.msra.mxu1 %v4883_v47 }
 0x5c2   :  { %3698 = vmatpush.msrb.mxu0 %v7833_v44 }
 0x5c3   :  { %3549 = vmatpush.bf16.msra.mxu3 %v5027_v21  ;;  %v7849_v21 = vld [vmem:[%s8153_s9 + $0x108] sm:$0xff] }
 0x5c4   :  { %3538 = vmatmul.bf16.vlgmr.msra.gmra.mxu1 %v7401_v59  ;;  %v7566_v59 = vld [vmem:[%s8153_s9 + $0x58] sm:$0xff]  ;;  %3699 = vmatpush.msrb.mxu0 %v7841_v38 }
 0x5c5   :  { %3646 = vmatpush.msrb.mxu1 %v7537_v18 }
 0x5c6   :  { %3700 = vmatpush.msrb.mxu0 %v7849_v21 }
 0x5c7   :  { %3647 = vmatpush.msrb.mxu1 %v7543_v46  ;;  %3550 = vmatpush.bf16.msra.mxu3 %v5011_v13 }
 0x5c9   :  { %3648 = vmatpush.msrb.mxu1 %v7549_v20 }
 0x5ca   :  { %3551 = vmatmul.bf16.vlgmr.msra.gmra.mxu3 %v7455_v30  ;;  %v7596_v30 = vld [vmem:[%s8153_s9 + $0xe0] sm:$0xff] }
 0x5cb   :  { %3666 = vmatpush.msrb.mxu3 %v7555_v55  ;;  %3649 = vmatpush.msrb.mxu1 %v7560_v8 }
 0x5cd   :  { %3650 = vmatpush.msrb.mxu1 %v7566_v59  ;;  %3667 = vmatpush.msrb.mxu3 %v7572_v3 }
 0x5cf   :  { %3651 = vmatpush.msrb.mxu1 %v7579_v12  ;;  %3668 = vmatpush.msrb.mxu3 %v7584_v33 }
 0x5d1   :  { %3652 = vmatpush.msrb.mxu1 %v7591_v49  ;;  %3669 = vmatpush.msrb.mxu3 %v7596_v30 }
 0x5d3   :  { %3653 = vmatpush.msrb.mxu1 %v7603_v27  ;;  %3670 = vmatpush.msrb.mxu3 %v7608_v56 }
 0x5d5   :  { %3654 = vmatpush.msrb.mxu1 %v7615_v53  ;;  %3671 = vmatpush.msrb.mxu3 %v7620_v48 }
 0x5d7   :  { %3655 = vmatpush.msrb.mxu1 %v7627_v14  ;;  %3672 = vmatpush.msrb.mxu3 %v7632_v2 }
 0x5d9   :  { %3656 = vmatpush.msrb.mxu1 %v7639_v41  ;;  %3673 = vmatpush.msrb.mxu3 %v7644_v22 }
 0x5db   :  { %3657 = vmatpush.msrb.mxu1 %v7651_v54  ;;  %3674 = vmatpush.msrb.mxu3 %v7656_v57 }
 0x5dd   :  { %3658 = vmatpush.msrb.mxu1 %v7663_v24  ;;  %3675 = vmatpush.msrb.mxu3 %v7668_v51 }
 0x5df   :  { %3659 = vmatpush.msrb.mxu1 %v7675_v5  ;;  %3676 = vmatpush.msrb.mxu3 %v7680_v7 }
 0x5e0   :  { %v3331_v63 = vpop.f32.mrf.mxu1  ;;  %v7754_v16 = vpop.f32.mrf.mxu0 }
 0x5e1   :  { %3660 = vmatpush.msrb.mxu1 %v7687_v37  ;;  %3677 = vmatpush.msrb.mxu3 %v7692_v29  ;;  %v3332_v58 = vadd.f32 %v3331_v63, %v3319_v34 }
 0x5e3   :  { %3661 = vmatpush.msrb.mxu1 %v7704_v28  ;;  %3678 = vmatpush.msrb.mxu3 %v7709_v9 }
 0x5e5   :  { %3738 = vmatpush.msra.mxu1 %v7537_v18  ;;  %3679 = vmatpush.msrb.mxu3 %v7722_v42 }
 0x5e7   :  { %3739 = vmatpush.msra.mxu1 %v7543_v46  ;;  %3680 = vmatpush.msrb.mxu3 %v7741_v1  ;;  %v7868_v46 = vld [vmem:[%s8153_s9 + $0x100] sm:$0xff] }
 0x5e8   :  { %v3333_v39 = vpop.f32.mrf.mxu1  ;;  %v3411_v25 = vpop.f32.mrf.mxu0  ;;  %3701 = vmatpush.msrb.mxu0 %v7868_v46 }
 0x5e9   :  { %3740 = vmatpush.msra.mxu1 %v7549_v20  ;;  %3681 = vmatpush.msrb.mxu3 %v7749_v10 }
 0x5ea   :  { %3778 = vmatpush.msra.mxu0 %v7697_v11  ;;  %v3634_v11 = vld [vmem:[%s8153_s9 + $0x1a0] sm:$0xff] }
 0x5eb   :  { %3741 = vmatpush.msra.mxu1 %v7560_v8  ;;  %3758 = vmatpush.msra.mxu3 %v7555_v55  ;;  %v7879_v8 = vld [vmem:[%s8153_s9 + $0x1e8] sm:$0xff] }
 0x5ec   :  { %3708 = vmatpush.msrb.mxu2 %v7879_v8  ;;  %3779 = vmatpush.msra.mxu0 %v7715_v32  ;;  %v3631_v32 = vld [vmem:[%s8153_s9 + $0x188] sm:$0xff] }
 0x5ed   :  { %3742 = vmatpush.msra.mxu1 %v7566_v59  ;;  %3759 = vmatpush.msra.mxu3 %v7572_v3  ;;  %v3344_v0 = vpop.f32.mrf.mxu3  ;;  %v3422_v45 = vpop.f32.mrf.mxu2 }
 0x5ee   :  { %v7808_v62 = vadd.f32 %v3344_v0, %v3332_v58  ;;  %3780 = vmatpush.msra.mxu0 %v7730_v17 }
 0x5ef   :  { %3743 = vmatpush.msra.mxu1 %v7579_v12  ;;  %3760 = vmatpush.msra.mxu3 %v7584_v33 }
 0x5f0   :  { %3662 = vmatmul.f32.vlgmr.msrb.gmra.mxu1 %v7808_v62  ;;  %v3734_v13 = vmul.f32 %v7808_v62, %v7808_v62  ;;  %3781 = vmatpush.msra.mxu0 %v7735_v52  ;;  %v3630_v52 = vld [vmem:[%s8153_s9 + $0x180] sm:$0xff] }
 0x5f1   :  { %3744 = vmatpush.msra.mxu1 %v7591_v49  ;;  %3761 = vmatpush.msra.mxu3 %v7596_v30  ;;  %v3383_v15 = vpop.f32.mrf.mxu1  ;;  %v7825_v23 = vpop.f32.mrf.mxu0  ;;  %v7893_v49 = vld [vmem:[%s8153_s9 + $0x1e0] sm:$0xff]  ;;  %v7901_v30 = vld [vmem:[%s8153_s9 + $0x1d8] sm:$0xff] }
 0x5f2   :  { %v3384_v59 = vadd.f32 %v3383_v15, %v7481_v61  ;;  %3709 = vmatpush.msrb.mxu2 %v7893_v49  ;;  %3782 = vmatpush.msra.mxu0 %v7764_v4 }
 0x5f3   :  { %3745 = vmatpush.msra.mxu1 %v7603_v27  ;;  %3762 = vmatpush.msra.mxu3 %v7608_v56 }
 0x5f4   :  { %3710 = vmatpush.msrb.mxu2 %v7901_v30  ;;  %3783 = vmatpush.msra.mxu0 %v7769_v50 }
 0x5f5   :  { %3746 = vmatpush.msra.mxu1 %v7615_v53  ;;  %3763 = vmatpush.msra.mxu3 %v7620_v48  ;;  %v3346_v47 = vpop.f32.mrf.mxu3  ;;  %v3424_v18 = vpop.f32.mrf.mxu2  ;;  %v3640_v48 = vld [vmem:[%s8153_s9 + $0x1d0] sm:$0xff] }
 0x5f6   :  { %3711 = vmatpush.msrb.mxu2 %v3640_v48  ;;  %3784 = vmatpush.msra.mxu0 %v7779_v31 }
 0x5f7   :  { %3747 = vmatpush.msra.mxu1 %v7627_v14  ;;  %3764 = vmatpush.msra.mxu3 %v7632_v2  ;;  %v3639_v14 = vld [vmem:[%s8153_s9 + $0x1c8] sm:$0xff] }
 0x5f8   :  { %3712 = vmatpush.msrb.mxu2 %v3639_v14  ;;  %3785 = vmatpush.msra.mxu0 %v7787_v43 }
 0x5f9   :  { %3748 = vmatpush.msra.mxu1 %v7639_v41  ;;  %3765 = vmatpush.msra.mxu3 %v7644_v22  ;;  %v3385_v20 = vpop.f32.mrf.mxu1  ;;  %v3463_v55 = vpop.f32.mrf.mxu0  ;;  %v3638_v22 = vld [vmem:[%s8153_s9 + $0x1c0] sm:$0xff] }
 0x5fa   :  { %3713 = vmatpush.msrb.mxu2 %v3638_v22  ;;  %3786 = vmatpush.msra.mxu0 %v7796_v26  ;;  %v3835_v20 = vld [vmem:[%s8154_s10 + $0x68] sm:$0xff]  ;;  %v3836_v55 = vld [vmem:[%s8154_s10 + $0x70] sm:$0xff] }
 0x5fb   :  { %3749 = vmatpush.msra.mxu1 %v7651_v54  ;;  %3766 = vmatpush.msra.mxu3 %v7656_v57  ;;  %v3637_v54 = vld [vmem:[%s8153_s9 + $0x1b8] sm:$0xff] }
 0x5fc   :  { %3714 = vmatpush.msrb.mxu2 %v3637_v54  ;;  %3787 = vmatpush.msra.mxu0 %v7804_v60 }
 0x5fd   :  { %3750 = vmatpush.msra.mxu1 %v7663_v24  ;;  %3767 = vmatpush.msra.mxu3 %v7668_v51  ;;  %v3396_v3 = vpop.f32.mrf.mxu3  ;;  %v7885_v12 = vpop.f32.mrf.mxu2 }
 0x5fe   :  { %v3397_v33 = vadd.f32 %v3396_v3, %v3384_v59  ;;  %3788 = vmatpush.msra.mxu0 %v7814_v36  ;;  %v3831_v59 = vld [vmem:[%s8154_s10 + $0x48] sm:$0xff]  ;;  %v3832_v3 = vld [vmem:[%s8154_s10 + $0x50] sm:$0xff] }
 0x5ff   :  { %3751 = vmatpush.msra.mxu1 %v7675_v5  ;;  %3768 = vmatpush.msra.mxu3 %v7680_v7  ;;  %v3636_v5 = vld [vmem:[%s8153_s9 + $0x1b0] sm:$0xff]  ;;  %v3635_v7 = vld [vmem:[%s8153_s9 + $0x1a8] sm:$0xff] }
 0x600   :  { %v3410_v61 = vadd.f32 %v7754_v16, %v3397_v33  ;;  %3715 = vmatpush.msrb.mxu2 %v3636_v5  ;;  %3789 = vmatpush.msra.mxu0 %v7822_v19  ;;  %v3827_v33 = vld [vmem:[%s8154_s10 + $0x28] sm:$0xff] }
 0x601   :  { %3752 = vmatpush.msra.mxu1 %v7687_v37  ;;  %3769 = vmatpush.msra.mxu3 %v7692_v29  ;;  %v3435_v27 = vpop.f32.mrf.mxu1  ;;  %v7903_v56 = vpop.f32.mrf.mxu0 }
 0x602   :  { %v7906_v53 = vadd.f32 %v3422_v45, %v3410_v61  ;;  %3716 = vmatpush.msrb.mxu2 %v3635_v7  ;;  %3790 = vmatpush.msra.mxu0 %v7833_v44  ;;  %v3822_v61 = vld [vmem:[%s8154_s10] sm:$0xff] }
 0x603   :  { %3753 = vmatpush.msra.mxu1 %v7704_v28  ;;  %3770 = vmatpush.msra.mxu3 %v7709_v9  ;;  %v3633_v28 = vld [vmem:[%s8153_s9 + $0x198] sm:$0xff]  ;;  %v3632_v9 = vld [vmem:[%s8153_s9 + $0x190] sm:$0xff] }
 0x604   :  { %3754 = vmatmul.f32.vlgmr.msra.gmra.mxu1 %v3734_v13  ;;  %3682 = vmatmul.f32.vlgmr.msrb.gmra.mxu3 %v7906_v53  ;;  %v3735_v51 = vmul.f32 %v7906_v53, %v7906_v53  ;;  %v3834_v13 = vld [vmem:[%s8154_s10 + $0x60] sm:$0xff] }
 0x605   :  { %3771 = vmatpush.msra.mxu3 %v7722_v42  ;;  %v3398_v2 = vpop.f32.mrf.mxu3  ;;  %v3476_v41 = vpop.f32.mrf.mxu2  ;;  %3717 = vmatpush.msrb.mxu2 %v3634_v11 }
 0x606   :  { %3791 = vmatpush.msra.mxu0 %v7841_v38  ;;  %3853 = vmatpush.msrb.mxu1 %v3834_v13  ;;  %v3833_v41 = vld [vmem:[%s8154_s10 + $0x58] sm:$0xff] }
 0x607   :  { %3772 = vmatpush.msra.mxu3 %v7741_v1  ;;  %3718 = vmatpush.msrb.mxu2 %v3633_v28  ;;  %v5867_v1 = vld [vmem:[%s8156_s12] sm:$0xf] }
 0x608   :  { %3792 = vmatpush.msra.mxu0 %v7849_v21  ;;  %v2305_v19 = vperm.slane %v5867_v1, 3 }
 0x609   :  { %3773 = vmatpush.msra.mxu3 %v7749_v10  ;;  %v3437_v57 = vpop.f32.mrf.mxu1  ;;  %v3515_v24 = vpop.f32.mrf.mxu0  ;;  %3719 = vmatpush.msrb.mxu2 %v3632_v9  ;;  %v2304_v10 = vperm.slane %v5867_v1, 2 }
 0x60a   :  { %3793 = vmatpush.msra.mxu0 %v7868_v46  ;;  %v3514_v15 = vadd.f32 %v7903_v56, %v2305_v19  ;;  %v3837_v56 = vld [vmem:[%s8154_s10 + $0x78] sm:$0xff] }
 0x60b   :  { %3720 = vmatpush.msrb.mxu2 %v3631_v32  ;;  %v3436_v63 = vadd.f32 %v3435_v27, %v2304_v10  ;;  %3873 = vmatpush.msrb.mxu3 %v3835_v20  ;;  %v3824_v27 = vld [vmem:[%s8154_s10 + $0x10] sm:$0xff]  ;;  %v3825_v57 = vld [vmem:[%s8154_s10 + $0x18] sm:$0xff] }
 0x60c   :  { %3774 = vmatmul.f32.vlgmr.msra.gmra.mxu3 %v3735_v51  ;;  %v5781_v19 = vld [vmem:[%s8159_s15 + $0xb8] sm:$0xff] }
 0x60d   :  { %v3448_v37 = vpop.f32.mrf.mxu3  ;;  %v3526_v29 = vpop.f32.mrf.mxu2  ;;  %3721 = vmatpush.msrb.mxu2 %v3630_v52  ;;  %3874 = vmatpush.msrb.mxu3 %v3831_v59 }
 0x60e   :  { %v3449_v50 = vadd.f32 %v3448_v37, %v3436_v63  ;;  %v3527_v44 = vadd.f32 %v3526_v29, %v3514_v15  ;;  %v5789_v15 = vld [vmem:[%s8159_s15 + $0xf8] sm:$0xff] }
 0x60f   :  { %3798 = vmatpush.msra.mxu2 %v7854_v40  ;;  %3875 = vmatpush.msrb.mxu3 %v3827_v33 }
 0x610   :  { %v3462_v35 = vadd.f32 %v7825_v23, %v3449_v50 }
 0x611   :  { %3799 = vmatpush.msra.mxu2 %v7859_v6 }
 0x612   :  { %v3475_v25 = vadd.f32 %v7885_v12, %v3462_v35  ;;  %v3826_v12 = vld [vmem:[%s8154_s10 + $0x20] sm:$0xff] }
 0x613   :  { %3800 = vmatpush.msra.mxu2 %v7879_v8  ;;  %v3830_v8 = vld [vmem:[%s8154_s10 + $0x40] sm:$0xff] }
 0x614   :  { %3854 = vmatpush.msrb.mxu1 %v3830_v8 }
 0x615   :  { %v3450_v42 = vpop.f32.mrf.mxu3  ;;  %v3528_v17 = vpop.f32.mrf.mxu2  ;;  %3801 = vmatpush.msra.mxu2 %v7893_v49  ;;  %v3828_v49 = vld [vmem:[%s8154_s10 + $0x30] sm:$0xff] }
 0x616   :  { %3855 = vmatpush.msrb.mxu1 %v3826_v12 }
 0x617   :  { %3802 = vmatpush.msra.mxu2 %v7901_v30  ;;  %v3823_v30 = vld [vmem:[%s8154_s10 + $0x8] sm:$0xff] }
 0x618   :  { %3856 = vmatpush.msrb.mxu1 %v3822_v61  ;;  %3876 = vmatpush.msrb.mxu3 %v3823_v30 }
 0x619   :  { %3803 = vmatpush.msra.mxu2 %v3640_v48  ;;  %v6061_v48 = vmov 16.0  }
 0x61a   :  { %5822 = vrcp.f32 %v6061_v48  ;;  %3913 = vmatpush.msra.mxu1 %v3837_v56  ;;  %3967 = vmatpush.msra.mxu3 %v3835_v20  ;;  %v5771_v20 = vld [vmem:[%s8159_s15 + $0x68] sm:$0xff] }
 0x61b   :  { %3804 = vmatpush.msra.mxu2 %v3639_v14  ;;  %v5783_v48 = vld [vmem:[%s8159_s15 + $0xc8] sm:$0xff] }
 0x61c   :  { %3968 = vmatpush.msra.mxu3 %v3831_v59  ;;  %3914 = vmatpush.msra.mxu1 %v3833_v41  ;;  %v5762_v59 = vld [vmem:[%s8159_s15 + $0x20] sm:$0xff] }
 0x61d   :  { %3805 = vmatpush.msra.mxu2 %v3638_v22 }
 0x61e   :  { %3969 = vmatpush.msra.mxu3 %v3827_v33  ;;  %v5785_v33 = vld [vmem:[%s8159_s15 + $0xd8] sm:$0xff] }
 0x61f   :  { %3806 = vmatpush.msra.mxu2 %v3637_v54  ;;  %v3829_v54 = vld [vmem:[%s8154_s10 + $0x38] sm:$0xff] }
 0x620   :  { %v5823_v14 = vpop.eup %5822  ;;  %3970 = vmatpush.msra.mxu3 %v3823_v30  ;;  %3915 = vmatpush.msra.mxu1 %v3829_v54  ;;  %v5761_v30 = vld [vmem:[%s8159_s15 + $0x18] sm:$0xff] }
 0x621   :  { %v3487_v16 = vpop.f32.mrf.mxu1  ;;  %v3565_v4 = vpop.f32.mrf.mxu0  ;;  %3807 = vmatpush.msra.mxu2 %v3636_v5  ;;  %v3727_v2 = vmul.f32 16.0, %v5823_v14  ;;  %vm3731_vm2 = vweird.f32 %v5823_v14 }
 0x622   :  { %v3488_v43 = vadd.f32 %v3487_v16, %v3475_v25  ;;  %3916 = vmatpush.msra.mxu1 %v3825_v57 }
 0x623   :  { %3808 = vmatpush.msra.mxu2 %v3635_v7  ;;  %v3728_v22 = vsub.f32 1.0, %v3727_v2  ;;  %v5760_v2 = vld [vmem:[%s8159_s15 + $0x10] sm:$0xff] }
 0x625   :  { %3809 = vmatpush.msra.mxu2 %v3634_v11  ;;  %v3729_v51 = vmul.f32 %v5823_v14, %v3728_v22  ;;  %v5774_v22 = vld [vmem:[%s8159_s15 + $0x80] sm:$0xff] }
 0x627   :  { %3810 = vmatpush.msra.mxu2 %v3633_v28  ;;  %v3730_v37 = vadd.f32 %v5823_v14, %v3729_v51  ;;  %v5758_v51 = vld [vmem:[%s8159_s15] sm:$0xff] }
 0x629   :  { %v3489_v31 = vpop.f32.mrf.mxu1  ;;  %v3567_v39 = vpop.f32.mrf.mxu0  ;;  %3811 = vmatpush.msra.mxu2 %v3632_v9  ;;  %v3732_v9 = vsel %vm3731_vm2, %v5823_v14, %v3730_v37 }
 0x62b   :  { %3812 = vmatpush.msra.mxu2 %v3631_v32 }
 0x62d   :  { %v3500_v34 = vpop.f32.mrf.mxu3  ;;  %v3578_v58 = vpop.f32.mrf.mxu2  ;;  %3813 = vmatpush.msra.mxu2 %v3630_v52 }
 0x62e   :  { %v7968_v26 = vadd.f32 %v3500_v34, %v3488_v43 }
 0x630   :  { %3702 = vmatmul.f32.vlgmr.msrb.gmra.mxu0 %v7968_v26  ;;  %v3736_v0 = vmul.f32 %v7968_v26, %v7968_v26 }
 0x631   :  { %3893 = vmatpush.msrb.mxu0 %v3836_v55 }
 0x633   :  { %3894 = vmatpush.msrb.mxu0 %v3832_v3 }
 0x635   :  { %v3502_v60 = vpop.f32.mrf.mxu3  ;;  %v3580_v45 = vpop.f32.mrf.mxu2  ;;  %3895 = vmatpush.msrb.mxu0 %v3828_v49 }
 0x637   :  { %3896 = vmatpush.msrb.mxu0 %v3824_v27 }
 0x638   :  { %3794 = vmatmul.f32.vlgmr.msra.gmra.mxu0 %v3736_v0 }
 0x639   :  { %3987 = vmatpush.msra.mxu0 %v3836_v55  ;;  %v5778_v55 = vld [vmem:[%s8159_s15 + $0xa0] sm:$0xff] }
 0x63b   :  { %3988 = vmatpush.msra.mxu0 %v3832_v3  ;;  %v5770_v3 = vld [vmem:[%s8159_s15 + $0x60] sm:$0xff] }
 0x63d   :  { %3989 = vmatpush.msra.mxu0 %v3828_v49  ;;  %v5776_v49 = vld [vmem:[%s8159_s15 + $0x90] sm:$0xff] }
 0x63f   :  { %3990 = vmatpush.msra.mxu0 %v3824_v27  ;;  %v5769_v27 = vld [vmem:[%s8159_s15 + $0x58] sm:$0xff] }
 0x641   :  { %v3539_v36 = vpop.f32.mrf.mxu1 }
 0x642   :  { %v3540_v38 = vadd.f32 %v3539_v36, %v3527_v44  ;;  %v5773_v44 = vld [vmem:[%s8159_s15 + $0x78] sm:$0xff] }
 0x649   :  { %v3541_v23 = vpop.f32.mrf.mxu1 }
 0x64a   :  { %v5765_v23 = vld [vmem:[%s8159_s15 + $0x38] sm:$0xff] }
 0x64d   :  { %v3552_v47 = vpop.f32.mrf.mxu3 }
 0x64e   :  { %v3553_v18 = vadd.f32 %v3552_v47, %v3540_v38  ;;  %v5780_v38 = vld [vmem:[%s8159_s15 + $0xb0] sm:$0xff] }
 0x64f   :  { %v5788_v47 = vld [vmem:[%s8159_s15 + $0xf0] sm:$0xff] }
 0x650   :  { %v3566_v21 = vadd.f32 %v3565_v4, %v3553_v18  ;;  %v5764_v18 = vld [vmem:[%s8159_s15 + $0x30] sm:$0xff] }
 0x652   :  { %v7974_v40 = vadd.f32 %v3578_v58, %v3566_v21  ;;  %v5772_v21 = vld [vmem:[%s8159_s15 + $0x70] sm:$0xff] }
 0x654   :  { %3722 = vmatmul.f32.vlgmr.msrb.gmra.mxu2 %v7974_v40  ;;  %v3737_v46 = vmul.f32 %v7974_v40, %v7974_v40 }
 0x655   :  { %v3554_v6 = vpop.f32.mrf.mxu3  ;;  %3947 = vmatpush.msrb.mxu2 %v3834_v13  ;;  %v5763_v13 = vld [vmem:[%s8159_s15 + $0x28] sm:$0xff] }
 0x656   :  { %v5779_v6 = vld [vmem:[%s8159_s15 + $0xa8] sm:$0xff] }
 0x657   :  { %3948 = vmatpush.msrb.mxu2 %v3830_v8  ;;  %v5786_v8 = vld [vmem:[%s8159_s15 + $0xe0] sm:$0xff] }
 0x659   :  { %3949 = vmatpush.msrb.mxu2 %v3826_v12  ;;  %v5777_v12 = vld [vmem:[%s8159_s15 + $0x98] sm:$0xff] }
 0x65b   :  { %3950 = vmatpush.msrb.mxu2 %v3822_v61  ;;  %v5784_v61 = vld [vmem:[%s8159_s15 + $0xd0] sm:$0xff] }
 0x65c   :  { %3814 = vmatmul.f32.vlgmr.msra.gmra.mxu2 %v3737_v46  ;;  %v5787_v46 = vld [vmem:[%s8159_s15 + $0xe8] sm:$0xff] }
 0x65d   :  { %4319 = vmatpush.bf16.msra.mxu2 %v5765_v23 }
 0x661   :  { %4320 = vmatpush.bf16.msra.mxu2 %v5764_v18 }
 0x665   :  { %4321 = vmatpush.bf16.msra.mxu2 %v5763_v13 }
 0x669   :  { %4322 = vmatpush.bf16.msra.mxu2 %v5762_v59  ;;  %v5811_v59 = vld [vmem:[%s8160_s16] ss:$0 sm:$0xff] }
 0x66d   :  { %v3663_v5 = vpop.f32.mrf.mxu1  ;;  %4323 = vmatpush.bf16.msra.mxu2 %v5761_v30 }
 0x671   :  { %4324 = vmatpush.bf16.msra.mxu2 %v5760_v2 }
 0x681   :  { %v3755_v52 = vpop.f32.mrf.mxu1 }
 0x687   :  { %v3683_v24 = vpop.f32.mrf.mxu3 }
 0x688   :  { %v3684_v29 = vadd.f32 %v3683_v24, %v3663_v5  ;;  %v5767_v24 = vld [vmem:[%s8159_s15 + $0x48] sm:$0xff]  ;;  %v5766_v5 = vld [vmem:[%s8159_s15 + $0x40] sm:$0xff] }
 0x68f   :  { %v3775_v42 = vpop.f32.mrf.mxu3 }
 0x690   :  { %v3776_v10 = vadd.f32 %v3775_v42, %v3755_v52 }
 0x6ad   :  { %v3703_v7 = vpop.f32.mrf.mxu0 }
 0x6ae   :  { %v3704_v11 = vadd.f32 %v3703_v7, %v3684_v29  ;;  %v4023_v29 = vld [vmem:[%s8157_s13] sm:$0xf] }
 0x6af   :  { %v4027_v42 = vperm.slane %v4023_v29, 2 }
 0x6b5   :  { %v3795_v1 = vpop.f32.mrf.mxu0 }
 0x6b6   :  { %v3796_v63 = vadd.f32 %v3795_v1, %v3776_v10 }
 0x6d7   :  { %v3723_v28 = vpop.f32.mrf.mxu2 }
 0x6d8   :  { %v3724_v32 = vadd.f32 %v3723_v28, %v3704_v11  ;;  %v4037_v28 = vld [vmem:[#allocation12] sm:$0xf] }
 0x6da   :  { %v3733_v17 = vmul.f32 %v3732_v9, %v3724_v32 }
 0x6dc   :  { %5380 = vmatmul.msk.f32.vlgmr.msrb.gmra.mxu1 %vm247_vm10, %v3733_v17  ;;  %5381 = vmatmul.msk.f32.vlgmr.msrb.gmra.mxu3 %vm247_vm10, %v3733_v17  ;;  %v3819_v35 = vmul.f32 %v3733_v17, %v3733_v17 }
 0x6dd   :  { %5382 = vmatmul.msk.f32.vlgmr.msrb.gmra.mxu0 %vm247_vm10, %v3733_v17  ;;  %4007 = vmatpush.msrb.mxu1 %v3837_v56  ;;  %v5775_v56 = vld [vmem:[%s8159_s15 + $0x88] sm:$0xff] }
 0x6de   :  { %4345 = vmatpush.bf16.msrb.mxu0 %v5781_v19  ;;  %4332 = vmatpush.bf16.msrb.mxu3 %v5773_v44 }
 0x6df   :  { %v3815_v16 = vpop.f32.mrf.mxu2  ;;  %4008 = vmatpush.msrb.mxu1 %v3833_v41  ;;  %v5768_v41 = vld [vmem:[%s8159_s15 + $0x50] sm:$0xff] }
 0x6e0   :  { %v3816_v4 = vadd.f32 %v3815_v16, %v3796_v63  ;;  %v4041_v63 = vperm.slane %v4037_v28, 2 }
 0x6e1   :  { %4009 = vmatpush.msrb.mxu1 %v3829_v54  ;;  %v5782_v54 = vld [vmem:[%s8159_s15 + $0xc0] sm:$0xff] }
 0x6e2   :  { %v3818_v50 = vmul.f32 %v3816_v4, %v3732_v9  ;;  %4346 = vmatpush.bf16.msrb.mxu0 %v5780_v38  ;;  %4333 = vmatpush.bf16.msrb.mxu3 %v5772_v21  ;;  %v4042_v4 = vperm.slane %v4037_v28, 3 }
 0x6e3   :  { %4010 = vmatpush.msrb.mxu1 %v3825_v57  ;;  %v5759_v57 = vld [vmem:[%s8159_s15 + $0x8] sm:$0xff] }
 0x6e4   :  { %v3820_v31 = vsub.f32 %v3818_v50, %v3819_v35  ;;  %5383 = vmatmul.msk.f32.vlgmr.msra.gmra.mxu1 %vm247_vm10, %v3733_v17  ;;  %4325 = vmatpush.bf16.msra.mxu2 %v5759_v57  ;;  %v4028_v17 = vperm.slane %v4023_v29, 3 }
 0x6e5   :  { %4358 = vmatpush.bf16.msra.mxu1 %v5789_v15 }
 0x6e6   :  { %v3821_v39 = vmax.f32 %v3820_v31, 0.0  ;;  %4347 = vmatpush.bf16.msrb.mxu0 %v5779_v6  ;;  %4334 = vmatpush.bf16.msrb.mxu3 %v5771_v20 }
 0x6e8   :  { %v3921_v25 = vadd.f32 1e-05, %v3821_v39  ;;  %4326 = vmatpush.bf16.msra.mxu2 %v5758_v51 }
 0x6e9   :  { %4359 = vmatpush.bf16.msra.mxu1 %v5788_v47 }
 0x6ea   :  { %5824 = vrsqrt.f32 %v3921_v25  ;;  %vm3928_vm0 = vweird.f32 %v3921_v25  ;;  %4348 = vmatpush.bf16.msrb.mxu0 %v5778_v55  ;;  %4335 = vmatpush.bf16.msrb.mxu3 %v5770_v3 }
 0x6ed   :  { %4360 = vmatpush.bf16.msra.mxu1 %v5787_v46 }
 0x6ee   :  { %4349 = vmatpush.bf16.msrb.mxu0 %v5777_v12  ;;  %4336 = vmatpush.bf16.msrb.mxu3 %v5769_v27 }
 0x6f0   :  { %v5825_v43 = vpop.eup %5824 }
 0x6f1   :  { %v3923_v34 = vmul.f32 %v5825_v43, %v3921_v25  ;;  %vm3929_vm15 = vweird.f32 %v5825_v43  ;;  %4361 = vmatpush.bf16.msra.mxu1 %v5786_v8  ;;  %v4025_v25 = vperm.slane %v4023_v29, 0 }
 0x6f2   :  { %vm3930_vm1 = vmor %vm3928_vm0, %vm3929_vm15  ;;  %4350 = vmatpush.bf16.msrb.mxu0 %v5776_v49  ;;  %4337 = vmatpush.bf16.msrb.mxu3 %v5768_v41 }
 0x6f3   :  { %v3924_v58 = vmul.f32 %v5825_v43, %v3923_v34 }
 0x6f5   :  { %v3925_v60 = vmul.f32 0.5, %v3924_v58  ;;  %4362 = vmatpush.bf16.msra.mxu1 %v5785_v33 }
 0x6f6   :  { %4351 = vmatpush.bf16.msrb.mxu0 %v5775_v56  ;;  %4338 = vmatpush.bf16.msrb.mxu3 %v5767_v24 }
 0x6f7   :  { %v3926_v0 = vsub.f32 1.5, %v3925_v60 }
 0x6f9   :  { %v3927_v45 = vmul.f32 %v5825_v43, %v3926_v0  ;;  %4363 = vmatpush.bf16.msra.mxu1 %v5784_v61  ;;  %v4039_v0 = vperm.slane %v4037_v28, 0 }
 0x6fa   :  { %4352 = vmatpush.bf16.msrb.mxu0 %v5774_v22  ;;  %4339 = vmatpush.bf16.msrb.mxu3 %v5766_v5 }
 0x6fb   :  { %v3931_v36 = vsel %vm3930_vm1, %v5825_v43, %v3927_v45  ;;  %v4026_v43 = vperm.slane %v4023_v29, 1 }
 0x6fc   :  { %5384 = vmatmul.msk.f32.vlgmr.msrb.gmra.mxu2 %vm247_vm10, %v3931_v36  ;;  %5385 = vmatmul.msk.f32.vlgmr.msra.gmra.mxu3 %vm247_vm10, %v3931_v36 }
 0x6fd   :  { %5386 = vmatmul.msk.f32.vlgmr.msra.gmra.mxu0 %vm247_vm10, %v3931_v36  ;;  %5387 = vmatmul.msk.f32.vlgmr.msrb.gmra.mxu1 %vm247_vm10, %v3931_v36  ;;  %v4040_v36 = vperm.slane %v4037_v28, 1 }
 0x6fe   :  { %4364 = vmatpush.bf16.msra.mxu1 %v5783_v48 }
 0x702   :  { %4365 = vmatpush.bf16.msra.mxu1 %v5782_v54 }
 0x759   :  { %v3858_v14 = vpop.f32.mrf.mxu1 }
 0x75a   :  { %v3898_v7 = vpop.f32.mrf.mxu0  ;;  %v4015_v31 = vsub.f32 %v7808_v62, %v3858_v14 }
 0x75b   :  { %v4017_v9 = vsub.f32 %v7968_v26, %v3898_v7 }
 0x75f   :  { %v3878_v11 = vpop.f32.mrf.mxu3 }
 0x760   :  { %v4016_v39 = vsub.f32 %v7906_v53, %v3878_v11 }
 0x761   :  { %v3918_v37 = vpop.f32.mrf.mxu1 }
 0x762   :  { %v4018_v32 = vsub.f32 %v7974_v40, %v3918_v37 }
 0x77a   :  { %v3992_v52 = vpop.f32.mrf.mxu0  ;;  %v4012_v1 = vpop.f32.mrf.mxu1 }
 0x77b   :  { %v4021_v10 = vmul.f32 %v4017_v9, %v3992_v52  ;;  %v4022_v16 = vmul.f32 %v4018_v32, %v4012_v1 }
 0x77d   :  { %v4035_v50 = vmul.f32 %v4027_v42, %v4021_v10  ;;  %v4036_v35 = vmul.f32 %v4028_v17, %v4022_v16 }
 0x77f   :  { %v4049_v34 = vadd.f32 %v4041_v63, %v4035_v50  ;;  %v4050_v26 = vadd.f32 %v4042_v4, %v4036_v35  ;;  %v3952_v58 = vpop.f32.mrf.mxu2  ;;  %v3972_v40 = vpop.f32.mrf.mxu3 }
 0x780   :  { %v4019_v60 = vmul.f32 %v4015_v31, %v3952_v58  ;;  %v4020_v45 = vmul.f32 %v4016_v39, %v3972_v40 }
 0x781   :  { %v4053_v19 = vmax.f32 %v4049_v34, 0.0  ;;  %v4054_v15 = vmax.f32 %v4050_v26, 0.0 }
 0x782   :  { %v4033_v23 = vmul.f32 %v4025_v25, %v4019_v60  ;;  %v4034_v44 = vmul.f32 %v4026_v43, %v4020_v45 }
 0x783   :  { %v4057_v38 = vpack.c.bf16 %v4053_v19, %v4053_v19  ;;  %v4058_v47 = vpack.c.bf16 %v4054_v15, %v4054_v15 }
 0x784   :  { %v4047_v18 = vadd.f32 %v4039_v0, %v4033_v23  ;;  %v4048_v62 = vadd.f32 %v4040_v36, %v4034_v44 }
 0x785   :  { %4353 = vmatmul.bf16.vlgmr.msrb.gmra.mxu0 %v4057_v38  ;;  %4366 = vmatmul.bf16.vlgmr.msra.gmra.mxu1 %v4058_v47 }
 0x786   :  { %v4051_v53 = vmax.f32 %v4047_v18, 0.0  ;;  %v4052_v21 = vmax.f32 %v4048_v62, 0.0 }
 0x788   :  { %v4055_v6 = vpack.c.bf16 %v4051_v53, %v4051_v53  ;;  %v4056_v46 = vpack.c.bf16 %v4052_v21, %v4052_v21 }
 0x78a   :  { %4327 = vmatmul.bf16.vlgmr.msra.gmra.mxu2 %v4055_v6  ;;  %4340 = vmatmul.bf16.vlgmr.msrb.gmra.mxu3 %v4056_v46 }
 0x802   :  { %v4354_v13 = vpop.f32.mrf.mxu0  ;;  %v4367_v20 = vpop.f32.mrf.mxu1 }
 0x80a   :  { %v4356_v55 = vpop.f32.mrf.mxu0  ;;  %v4369_v8 = vpop.f32.mrf.mxu1 }
 0x80d   :  { %v4328_v3 = vpop.f32.mrf.mxu2  ;;  %v4341_v12 = vpop.f32.mrf.mxu3 }
 0x80e   :  { %v4329_v33 = vadd.f32 %v5811_v59, %v4328_v3 }
 0x810   :  { %v4342_v49 = vadd.f32 %v4341_v12, %v4329_v33 }
 0x812   :  { %v4355_v61 = vadd.f32 %v4354_v13, %v4342_v49 }
 0x814   :  { %v4368_v30 = vadd.f32 %v4367_v20, %v4355_v61 }
 0x815   :  { %v4330_v27 = vpop.f32.mrf.mxu2  ;;  %v4343_v56 = vpop.f32.mrf.mxu3 }
 0x816   :  { %4371 = vst [vmem:[#allocation14] sm:$0x3] %v4368_v30 }
 0x817   :  { %4382 = dma.vmem_to_hbm [thread:$0]  %s4378_s20, 32, %s4380_s6, [#allocation5]  }
 0x818   :  { %6044 = dma.done.wait [#allocation5], 32  }
 0x819   :  { %6045 = vsyncadd [#allocation5], 4294967264 }
 0x81a   :  { %4387 = vsyncpa [#allocation4], 1 }
 0x81b   :  { %4388 = vsyncpa [#allocation7], 1 }
 0x81c   :  { %4389 = vsyncpa [#allocation10], 1 }
 0x81d   :  { %4390 = vsyncpa [#allocation13], 1 }
 0x81e   :  { %4391 = vsyncpa [#allocation5], 1 }

</bundles_post_ra>
